<compile_context>
chip_gen: v7x
topology: tpu7x:2x2x1
jax: 0.10.0
libtpu: 0.0.40
codegen_flags: <defaults>
</compile_context>

<pallas_src>
import functools

import numpy as np

import jax
import jax.numpy as jnp
from jax.experimental import pallas as pl
from jax.experimental.pallas import tpu as pltpu


def _round_up(x, m):
    return ((x + m - 1) // m) * m


def _tree_kernel(x_ref, w_ref, wr_ref, bias_ref, mask_ref, o_ref,
                 buf_ref, col_ref, *, H, W, C, dilation, front, root_residual):
    """One batch element per grid step.  Channels-major, flat-spatial layout.

    x_ref:    (1, C, H*W)   input image, lane-dense spatial axis
    w_ref:    (4, C, 9*C)   BN-scale-folded im2col conv weights (out = W @ col)
    wr_ref:   (C, 2*C)      BN-scale-folded Root 1x1 weight (cols 0..C-1 -> x2)
    bias_ref: (5, C, 1)     folded BN biases (4 convs + root), column vectors
    mask_ref: (2, H*W)      row 0: left-edge mask (kw=0 taps), row 1: right-edge
    o_ref:    (1, C, H*W)   output image
    buf_ref:  VMEM (C, front + H*W + front) f32   zero-margin flat staging buffer
    col_ref:  VMEM (9*C, H*W)                     im2col matrix (transposed form)
    """
    d = dilation
    HW = H * W
    L = HW + 2 * front
    f32 = jnp.float32

    # Zero only the flat margins, once per grid step (the interior is fully
    # overwritten before every conv).  Margins absorb the +-d row shifts of the
    # 3x3 taps; the +-d column wrap-around is killed by the lane masks.  Scratch
    # is per-core and not zero-initialized, so a one-time init guarded on
    # program_id would be unsafe under "parallel" semantics.
    buf_ref[:, 0:front] = jnp.zeros((C, front), f32)
    buf_ref[:, front + HW:L] = jnp.zeros((C, front), f32)

    mask_l = mask_ref[0:1, :]           # (1, HW): zero where w <  d
    mask_r = mask_ref[1:2, :]           # (1, HW): zero where w >= W - d

    def stage(img):
        # One contiguous, lane-aligned store of the current image into the
        # buffer interior (front is a multiple of 128).
        buf_ref[:, front:front + HW] = img

    def conv3x3_bn(idx):
        """3x3 conv (padding=dilation=d, stride=1) + folded BN bias -> (C, HW) f32."""
        for kh in range(3):
            for kw in range(3):
                t = kh * 3 + kw
                # Flat shift: reading at q + (kh-1)*d*W + (kw-1)*d over the whole
                # image gives tap (kh, kw); H-overflow lands in the zero margins,
                # W-wraps are zeroed by the masks below.
                start = front + (kh - 1) * d * W + (kw - 1) * d
                tap = buf_ref[:, start:start + HW]
                if kw == 0:
                    tap = tap * mask_l
                elif kw == 2:
                    tap = tap * mask_r
                # Sublane-aligned (t*C), fully lane-dense store.
                col_ref[t * C:(t + 1) * C, :] = tap.astype(col_ref.dtype)
        y = jnp.dot(w_ref[idx], col_ref[...], preferred_element_type=f32)
        return y + bias_ref[idx]        # (C, 1) broadcast along lanes

    # ---- tree1 = BasicBlock(x, residual=x)
    stage(x_ref[0].astype(f32))
    h = jnp.maximum(conv3x3_bn(0), 0.0)
    stage(h)
    x1 = jnp.maximum(conv3x3_bn(1) + x_ref[0].astype(f32), 0.0)

    # ---- tree2 = BasicBlock(x1, residual=x1)
    stage(x1)
    h2 = jnp.maximum(conv3x3_bn(2), 0.0)
    stage(h2)
    x2 = jnp.maximum(conv3x3_bn(3) + x1, 0.0)

    # ---- root = relu( bn( conv1x1(cat([x2, x1], C)) ) [+ x2] )
    # One K=2C matmul: stack x2 | x1 into the first 2C rows of the col scratch.
    col_ref[0:C, :] = x2.astype(col_ref.dtype)
    col_ref[C:2 * C, :] = x1.astype(col_ref.dtype)
    r = jnp.dot(wr_ref[...], col_ref[0:2 * C, :], preferred_element_type=f32)
    r = r + bias_ref[4]
    if root_residual:
        r = r + x2
    o_ref[0] = jnp.maximum(r, 0.0).astype(o_ref.dtype)


def _fold_bn(g, b, m, v, eps):
    s = g / jnp.sqrt(v + eps)
    return s, b - m * s


def _conv3x3_to_mat(w, scale):
    """torch (Cout, Cin, 3, 3) -> (Cout, 9*Cin), tap-major, BN scale folded in."""
    cout, cin = w.shape[0], w.shape[1]
    wm = jnp.transpose(w, (0, 2, 3, 1)).reshape(cout, 9 * cin)
    return wm * scale[:, None]


def tree_forward_pallas(x_nchw, params, *, dilation=1, eps=1e-5,
                        root_residual=False, staging_dtype=jnp.float32):
    """Fused leaf-Tree forward.  x_nchw: (N, C, H, W) f32.

    params = {
      'tree1': (w1, g1, b1, m1, v1, w2, g2, b2, m2, v2),   # BasicBlock 1
      'tree2': (w1, g1, b1, m1, v1, w2, g2, b2, m2, v2),   # BasicBlock 2
      'root':  (wr, gr, br, mr, vr),                       # 1x1 conv + BN
    }
    conv weights in torch layout (Cout, Cin, kh, kw), all convs bias=False.
    staging_dtype: dtype of the im2col scratch + conv weights (use jnp.bfloat16
    on v7x to halve the dominant VMEM consumer; accumulation stays f32).
    """
    N, C, H, W = x_nchw.shape
    d = dilation
    HW = H * W
    # Zero margin of the flat staging buffer: d*(W+1) elements are required to
    # absorb the +-d row / +-d column flat shifts of the 3x3 taps; rounded up to
    # a full vreg lane width so the interior store stays aligned.
    front = _round_up(d * (W + 1), 128)
    L = HW + 2 * front

    # NCHW -> (N, C, H*W): a pure reshape (no transpose, no copy) that makes the
    # last (lane) dimension of every block spatial-dense.
    x_flat = x_nchw.reshape(N, C, HW)

    def _prep_block(p):
        w1, g1, b1, m1, v1, w2, g2, b2, m2, v2 = p
        s1, t1 = _fold_bn(g1, b1, m1, v1, eps)
        s2, t2 = _fold_bn(g2, b2, m2, v2, eps)
        return [_conv3x3_to_mat(w1, s1), _conv3x3_to_mat(w2, s2)], [t1, t2]

    wA, bA = _prep_block(params['tree1'])
    wB, bB = _prep_block(params['tree2'])
    wts = jnp.stack(wA + wB).astype(staging_dtype)                  # (4, C, 9C)

    wr, gr, br_, mr, vr = params['root']
    sr, tr = _fold_bn(gr, br_, mr, vr, eps)
    wr_mat = (wr[:, :, 0, 0] * sr[:, None]).astype(staging_dtype)   # (C, 2C)

    bias = jnp.stack(bA + bB + [tr]).astype(jnp.float32)[:, :, None]  # (5, C, 1)

    # Edge masks killing the W-direction wrap-around of the flat tap slices.
    w_pos = jnp.arange(HW, dtype=jnp.int32) % W
    masks = jnp.stack([(w_pos >= d), (w_pos < W - d)]).astype(jnp.float32)  # (2, HW)

    kernel = functools.partial(_tree_kernel, H=H, W=W, C=C, dilation=d,
                               front=front, root_residual=root_residual)

    # Generation-aware VMEM budget (v5e/v6e: 128 MiB, v7x: 64 MiB per TC).
    try:
        vmem_cap = int(pltpu.get_tpu_info().vmem_capacity_bytes)
    except Exception:
        vmem_cap = 64 << 20                       # smallest per-TC physical (v7x)
    stage_b = np.dtype(staging_dtype).itemsize
    need = (
        2 * 2 * C * HW * 4                        # in + out blocks, double-buffered
        + 2 * (wts.size * stage_b + wr_mat.size * stage_b
               + 5 * C * 128 * 4 + 2 * HW * 4)    # constants (worst case: x2)
        + C * L * 4                               # flat staging scratch
        + 9 * C * HW * stage_b                    # im2col scratch
        + 6 * C * HW * 4)                         # live intermediates / spill slack
    vmem_limit = int(min(max(int(need * 1.5), 8 << 20), int(vmem_cap * 0.9)))

    out_shape = jax.ShapeDtypeStruct((N, C, HW), x_flat.dtype)

    def _run(single_buffer_consts):
        cmode = ({"pipeline_mode": pl.Buffered(buffer_count=1)}
                 if single_buffer_consts else {})
        grid_spec = pltpu.PrefetchScalarGridSpec(
            num_scalar_prefetch=0,
            grid=(N,),
            in_specs=[
                pl.BlockSpec((1, C, HW), lambda n: (n, 0, 0)),
                pl.BlockSpec((4, C, 9 * C), lambda n: (0, 0, 0), **cmode),
                pl.BlockSpec((C, 2 * C), lambda n: (0, 0), **cmode),
                pl.BlockSpec((5, C, 1), lambda n: (0, 0, 0), **cmode),
                pl.BlockSpec((2, HW), lambda n: (0, 0), **cmode),
            ],
            out_specs=pl.BlockSpec((1, C, HW), lambda n: (n, 0, 0)),
            scratch_shapes=[
                pltpu.VMEM((C, L), jnp.float32),          # flat staging buffer
                pltpu.VMEM((9 * C, HW), staging_dtype),   # im2col matrix
            ],
        )
        call = pl.pallas_call(
            kernel,
            out_shape=out_shape,
            grid_spec=grid_spec,
            compiler_params=pltpu.CompilerParams(
                dimension_semantics=("parallel",),
                vmem_limit_bytes=vmem_limit,
            ),
        )
        return jax.block_until_ready(call(x_flat, wts, wr_mat, bias, masks))

    try:
        out_flat = _run(True)     # single-buffered constants (saves VMEM)
    except Exception:
        out_flat = _run(False)    # fallback if pipeline_mode=Buffered(1) unsupported

    return out_flat.reshape(N, C, H, W)


def tree_forward_reference(x, params, *, dilation=1, eps=1e-5, root_residual=False):
    """Pure-JAX NCHW reference for verification."""
    d = dilation

    def conv3x3(inp, w):
        return jax.lax.conv_general_dilated(
            inp, w, window_strides=(1, 1), padding=((d, d), (d, d)),
            rhs_dilation=(d, d), dimension_numbers=('NCHW', 'OIHW', 'NCHW'))

    def bn(inp, g, b, m, v):
        s = g / jnp.sqrt(v + eps)
        return inp * s[None, :, None, None] + (b - m * s)[None, :, None, None]

    def basic_block(inp, p, residual):
        w1, g1, b1, m1, v1, w2, g2, b2, m2, v2 = p
        out = jax.nn.relu(bn(conv3x3(inp, w1), g1, b1, m1, v1))
        out = bn(conv3x3(out, w2), g2, b2, m2, v2) + residual
        return jax.nn.relu(out)

    x1 = basic_block(x, params['tree1'], x)
    x2 = basic_block(x1, params['tree2'], x1)

    wr, gr, br_, mr, vr = params['root']
    cat = jnp.concatenate([x2, x1], axis=1)
    r = jax.lax.conv_general_dilated(
        cat, wr, (1, 1), ((0, 0), (0, 0)),
        dimension_numbers=('NCHW', 'OIHW', 'NCHW'))
    r = bn(r, gr, br_, mr, vr)
    if root_residual:
        r = r + x2
    return jax.nn.relu(r)


if __name__ == "__main__":
    N, C, H, W = 2, 8, 16, 16      # in_channels == out_channels (leaf Tree, no project)
    dilation = 1

    key = jax.random.PRNGKey(0)

    def bn_params(k):
        k1, k2, k3, k4 = jax.random.split(k, 4)
        g = 1.0 + 0.1 * jax.random.normal(k1, (C,), jnp.float32)
        b = 0.1 * jax.random.normal(k2, (C,), jnp.float32)
        m = 0.1 * jax.random.normal(k3, (C,), jnp.float32)
        v = 1.0 + 0.1 * jax.random.uniform(k4, (C,), jnp.float32)
        return g, b, m, v

    def block_params_init(k):
        k1, k2, k3, k4 = jax.random.split(k, 4)
        w1 = 0.1 * jax.random.normal(k1, (C, C, 3, 3), jnp.float32)
        w2 = 0.1 * jax.random.normal(k2, (C, C, 3, 3), jnp.float32)
        return (w1,) + bn_params(k3) + (w2,) + bn_params(k4)

    kx, kA, kB, kR1, kR2 = jax.random.split(key, 5)
    x = jax.random.normal(kx, (N, C, H, W), jnp.float32)
    params = {
        'tree1': block_params_init(kA),
        'tree2': block_params_init(kB),
        'root': (0.1 * jax.random.normal(kR1, (C, 2 * C, 1, 1), jnp.float32),)
                + bn_params(kR2),
    }

    out = tree_forward_pallas(x, params, dilation=dilation)
    out = jax.block_until_ready(out)

    ref = jax.block_until_ready(tree_forward_reference(x, params, dilation=dilation))

    assert out.shape == (N, C, H, W)
    max_err = float(jnp.max(jnp.abs(out - ref)))
    assert jnp.allclose(out, ref, atol=1e-3, rtol=1e-3), max_err
    print("KERNEL_OK")
</pallas_src>

<mosaic_0001>
module attributes {stable_mosaic.version = 11 : i64} {
  func.func @_tree_kernel(%arg0: i32, %arg1: memref<1x8x256xf32, #tpu.memory_space<vmem>>, %arg2: memref<4x8x72xf32, #tpu.memory_space<vmem>>, %arg3: memref<8x16xf32, #tpu.memory_space<vmem>>, %arg4: memref<5x8x1xf32, #tpu.memory_space<vmem>>, %arg5: memref<2x256xf32, #tpu.memory_space<vmem>>, %arg6: memref<1x8x256xf32, #tpu.memory_space<vmem>>, %arg7: memref<8x512xf32, #tpu.memory_space<vmem>>, %arg8: memref<72x256xf32, #tpu.memory_space<vmem>>) attributes {dimension_semantics = [#tpu.dimension_semantics<parallel>], iteration_bounds = array<i64: 2>, scalar_prefetch = 0 : i64, scratch_operands = 2 : i64, tpu.core_type = #tpu.core_type<tc>, window_params = [{transform_indices = @transform_0, window_bounds = array<i64: 1, 8, 256>}, {pipeline_mode = #tpu.pipeline_mode<synchronous>, transform_indices = @transform_1, window_bounds = array<i64: 4, 8, 72>}, {pipeline_mode = #tpu.pipeline_mode<synchronous>, transform_indices = @transform_2, window_bounds = array<i64: 8, 16>}, {pipeline_mode = #tpu.pipeline_mode<synchronous>, transform_indices = @transform_3, window_bounds = array<i64: 5, 8, 1>}, {pipeline_mode = #tpu.pipeline_mode<synchronous>, transform_indices = @transform_4, window_bounds = array<i64: 2, 256>}, {transform_indices = @transform_5, window_bounds = array<i64: 1, 8, 256>}]} {
    %cst = arith.constant 0.000000e+00 : f32
    %0 = vector.broadcast %cst : f32 to vector<8x128xf32>
    %c0 = arith.constant 0 : index
    %c0_0 = arith.constant 0 : index
    %1 = vector.load %arg7[%c0, %c0_0] : memref<8x512xf32, #tpu.memory_space<vmem>>, vector<8x128xf32>
    tpu.vector_store %arg7[%c0, %c0_0], %0 {strides = array<i32>} : memref<8x512xf32, #tpu.memory_space<vmem>>, vector<8x128xf32>,
    %cst_1 = arith.constant 0.000000e+00 : f32
    %2 = vector.broadcast %cst_1 : f32 to vector<8x128xf32>
    %c0_2 = arith.constant 0 : index
    %c384 = arith.constant 384 : index
    %3 = vector.load %arg7[%c0_2, %c384] : memref<8x512xf32, #tpu.memory_space<vmem>>, vector<8x128xf32>
    tpu.vector_store %arg7[%c0_2, %c384], %2 {strides = array<i32>} : memref<8x512xf32, #tpu.memory_space<vmem>>, vector<8x128xf32>,
    %c0_3 = arith.constant 0 : index
    %c0_4 = arith.constant 0 : index
    %4 = vector.load %arg5[%c0_3, %c0_4] : memref<2x256xf32, #tpu.memory_space<vmem>>, vector<1x256xf32>
    %c1 = arith.constant 1 : index
    %c0_5 = arith.constant 0 : index
    %5 = vector.load %arg5[%c1, %c0_5] : memref<2x256xf32, #tpu.memory_space<vmem>>, vector<1x256xf32>
    %c0_6 = arith.constant 0 : index
    %c0_7 = arith.constant 0 : index
    %c0_8 = arith.constant 0 : index
    %6 = vector.load %arg1[%c0_6, %c0_7, %c0_8] : memref<1x8x256xf32, #tpu.memory_space<vmem>>, vector<1x8x256xf32>
    %7 = vector.shape_cast %6 : vector<1x8x256xf32> to vector<8x256xf32>
    %c0_9 = arith.constant 0 : index
    %c128 = arith.constant 128 : index
    %8 = vector.load %arg7[%c0_9, %c128] : memref<8x512xf32, #tpu.memory_space<vmem>>, vector<8x256xf32>
    tpu.vector_store %arg7[%c0_9, %c128], %7 {strides = array<i32>} : memref<8x512xf32, #tpu.memory_space<vmem>>, vector<8x256xf32>,
    %c0_10 = arith.constant 0 : index
    %c111 = arith.constant 111 : index
    %9 = vector.load %arg7[%c0_10, %c111] : memref<8x512xf32, #tpu.memory_space<vmem>>, vector<8x256xf32>
    %10 = vector.broadcast %4 : vector<1x256xf32> to vector<8x256xf32>
    %11 = arith.mulf %9, %10 : vector<8x256xf32>
    %c0_11 = arith.constant 0 : index
    %c0_12 = arith.constant 0 : index
    %12 = vector.load %arg8[%c0_11, %c0_12] : memref<72x256xf32, #tpu.memory_space<vmem>>, vector<8x256xf32>
    tpu.vector_store %arg8[%c0_11, %c0_12], %11 {strides = array<i32>} : memref<72x256xf32, #tpu.memory_space<vmem>>, vector<8x256xf32>,
    %c0_13 = arith.constant 0 : index
    %c112 = arith.constant 112 : index
    %13 = vector.load %arg7[%c0_13, %c112] : memref<8x512xf32, #tpu.memory_space<vmem>>, vector<8x256xf32>
    %c8 = arith.constant 8 : index
    %c0_14 = arith.constant 0 : index
    %14 = vector.load %arg8[%c8, %c0_14] : memref<72x256xf32, #tpu.memory_space<vmem>>, vector<8x256xf32>
    tpu.vector_store %arg8[%c8, %c0_14], %13 {strides = array<i32>} : memref<72x256xf32, #tpu.memory_space<vmem>>, vector<8x256xf32>,
    %c0_15 = arith.constant 0 : index
    %c113 = arith.constant 113 : index
    %15 = vector.load %arg7[%c0_15, %c113] : memref<8x512xf32, #tpu.memory_space<vmem>>, vector<8x256xf32>
    %16 = vector.broadcast %5 : vector<1x256xf32> to vector<8x256xf32>
    %17 = arith.mulf %15, %16 : vector<8x256xf32>
    %c16 = arith.constant 16 : index
    %c0_16 = arith.constant 0 : index
    %18 = vector.load %arg8[%c16, %c0_16] : memref<72x256xf32, #tpu.memory_space<vmem>>, vector<8x256xf32>
    tpu.vector_store %arg8[%c16, %c0_16], %17 {strides = array<i32>} : memref<72x256xf32, #tpu.memory_space<vmem>>, vector<8x256xf32>,
    %c0_17 = arith.constant 0 : index
    %c127 = arith.constant 127 : index
    %19 = vector.load %arg7[%c0_17, %c127] : memref<8x512xf32, #tpu.memory_space<vmem>>, vector<8x256xf32>
    %20 = vector.broadcast %4 : vector<1x256xf32> to vector<8x256xf32>
    %21 = arith.mulf %19, %20 : vector<8x256xf32>
    %c24 = arith.constant 24 : index
    %c0_18 = arith.constant 0 : index
    %22 = vector.load %arg8[%c24, %c0_18] : memref<72x256xf32, #tpu.memory_space<vmem>>, vector<8x256xf32>
    tpu.vector_store %arg8[%c24, %c0_18], %21 {strides = array<i32>} : memref<72x256xf32, #tpu.memory_space<vmem>>, vector<8x256xf32>,
    %c0_19 = arith.constant 0 : index
    %c128_20 = arith.constant 128 : index
    %23 = vector.load %arg7[%c0_19, %c128_20] : memref<8x512xf32, #tpu.memory_space<vmem>>, vector<8x256xf32>
    %c32 = arith.constant 32 : index
    %c0_21 = arith.constant 0 : index
    %24 = vector.load %arg8[%c32, %c0_21] : memref<72x256xf32, #tpu.memory_space<vmem>>, vector<8x256xf32>
    tpu.vector_store %arg8[%c32, %c0_21], %23 {strides = array<i32>} : memref<72x256xf32, #tpu.memory_space<vmem>>, vector<8x256xf32>,
    %c0_22 = arith.constant 0 : index
    %c129 = arith.constant 129 : index
    %25 = vector.load %arg7[%c0_22, %c129] : memref<8x512xf32, #tpu.memory_space<vmem>>, vector<8x256xf32>
    %26 = vector.broadcast %5 : vector<1x256xf32> to vector<8x256xf32>
    %27 = arith.mulf %25, %26 : vector<8x256xf32>
    %c40 = arith.constant 40 : index
    %c0_23 = arith.constant 0 : index
    %28 = vector.load %arg8[%c40, %c0_23] : memref<72x256xf32, #tpu.memory_space<vmem>>, vector<8x256xf32>
    tpu.vector_store %arg8[%c40, %c0_23], %27 {strides = array<i32>} : memref<72x256xf32, #tpu.memory_space<vmem>>, vector<8x256xf32>,
    %c0_24 = arith.constant 0 : index
    %c143 = arith.constant 143 : index
    %29 = vector.load %arg7[%c0_24, %c143] : memref<8x512xf32, #tpu.memory_space<vmem>>, vector<8x256xf32>
    %30 = vector.broadcast %4 : vector<1x256xf32> to vector<8x256xf32>
    %31 = arith.mulf %29, %30 : vector<8x256xf32>
    %c48 = arith.constant 48 : index
    %c0_25 = arith.constant 0 : index
    %32 = vector.load %arg8[%c48, %c0_25] : memref<72x256xf32, #tpu.memory_space<vmem>>, vector<8x256xf32>
    tpu.vector_store %arg8[%c48, %c0_25], %31 {strides = array<i32>} : memref<72x256xf32, #tpu.memory_space<vmem>>, vector<8x256xf32>,
    %c0_26 = arith.constant 0 : index
    %c144 = arith.constant 144 : index
    %33 = vector.load %arg7[%c0_26, %c144] : memref<8x512xf32, #tpu.memory_space<vmem>>, vector<8x256xf32>
    %c56 = arith.constant 56 : index
    %c0_27 = arith.constant 0 : index
    %34 = vector.load %arg8[%c56, %c0_27] : memref<72x256xf32, #tpu.memory_space<vmem>>, vector<8x256xf32>
    tpu.vector_store %arg8[%c56, %c0_27], %33 {strides = array<i32>} : memref<72x256xf32, #tpu.memory_space<vmem>>, vector<8x256xf32>,
    %c0_28 = arith.constant 0 : index
    %c145 = arith.constant 145 : index
    %35 = vector.load %arg7[%c0_28, %c145] : memref<8x512xf32, #tpu.memory_space<vmem>>, vector<8x256xf32>
    %36 = vector.broadcast %5 : vector<1x256xf32> to vector<8x256xf32>
    %37 = arith.mulf %35, %36 : vector<8x256xf32>
    %c64 = arith.constant 64 : index
    %c0_29 = arith.constant 0 : index
    %38 = vector.load %arg8[%c64, %c0_29] : memref<72x256xf32, #tpu.memory_space<vmem>>, vector<8x256xf32>
    tpu.vector_store %arg8[%c64, %c0_29], %37 {strides = array<i32>} : memref<72x256xf32, #tpu.memory_space<vmem>>, vector<8x256xf32>,
    %c0_30 = arith.constant 0 : index
    %c0_31 = arith.constant 0 : index
    %c0_32 = arith.constant 0 : index
    %39 = vector.load %arg2[%c0_30, %c0_31, %c0_32] : memref<4x8x72xf32, #tpu.memory_space<vmem>>, vector<1x8x72xf32>
    %40 = vector.shape_cast %39 : vector<1x8x72xf32> to vector<8x72xf32>
    %c0_33 = arith.constant 0 : index
    %c0_34 = arith.constant 0 : index
    %41 = vector.load %arg8[%c0_33, %c0_34] : memref<72x256xf32, #tpu.memory_space<vmem>>, vector<72x256xf32>
    %cst_35 = arith.constant dense<0.000000e+00> : vector<8x256xf32>
    %42 = tpu.matmul %40, %41, %cst_35 {dimension_numbers = #tpu.dot_dimension_numbers<[1], [0], [0], [1], [0, 0, 1, 1], [], []>} : vector<8x72xf32>, vector<72x256xf32>, vector<8x256xf32> -> vector<8x256xf32>
    %c0_36 = arith.constant 0 : index
    %c0_37 = arith.constant 0 : index
    %c0_38 = arith.constant 0 : index
    %43 = vector.load %arg4[%c0_36, %c0_37, %c0_38] : memref<5x8x1xf32, #tpu.memory_space<vmem>>, vector<1x8x1xf32>
    %44 = vector.shape_cast %43 : vector<1x8x1xf32> to vector<8x1xf32>
    %45 = vector.broadcast %44 : vector<8x1xf32> to vector<8x256xf32>
    %46 = arith.addf %42, %45 : vector<8x256xf32>
    %cst_39 = arith.constant 0.000000e+00 : f32
    %47 = vector.broadcast %cst_39 : f32 to vector<8x256xf32>
    %48 = arith.maximumf %46, %47 : vector<8x256xf32>
    %c0_40 = arith.constant 0 : index
    %c128_41 = arith.constant 128 : index
    %49 = vector.load %arg7[%c0_40, %c128_41] : memref<8x512xf32, #tpu.memory_space<vmem>>, vector<8x256xf32>
    tpu.vector_store %arg7[%c0_40, %c128_41], %48 {strides = array<i32>} : memref<8x512xf32, #tpu.memory_space<vmem>>, vector<8x256xf32>,
    %c0_42 = arith.constant 0 : index
    %c111_43 = arith.constant 111 : index
    %50 = vector.load %arg7[%c0_42, %c111_43] : memref<8x512xf32, #tpu.memory_space<vmem>>, vector<8x256xf32>
    %51 = vector.broadcast %4 : vector<1x256xf32> to vector<8x256xf32>
    %52 = arith.mulf %50, %51 : vector<8x256xf32>
    %c0_44 = arith.constant 0 : index
    %c0_45 = arith.constant 0 : index
    %53 = vector.load %arg8[%c0_44, %c0_45] : memref<72x256xf32, #tpu.memory_space<vmem>>, vector<8x256xf32>
    tpu.vector_store %arg8[%c0_44, %c0_45], %52 {strides = array<i32>} : memref<72x256xf32, #tpu.memory_space<vmem>>, vector<8x256xf32>,
    %c0_46 = arith.constant 0 : index
    %c112_47 = arith.constant 112 : index
    %54 = vector.load %arg7[%c0_46, %c112_47] : memref<8x512xf32, #tpu.memory_space<vmem>>, vector<8x256xf32>
    %c8_48 = arith.constant 8 : index
    %c0_49 = arith.constant 0 : index
    %55 = vector.load %arg8[%c8_48, %c0_49] : memref<72x256xf32, #tpu.memory_space<vmem>>, vector<8x256xf32>
    tpu.vector_store %arg8[%c8_48, %c0_49], %54 {strides = array<i32>} : memref<72x256xf32, #tpu.memory_space<vmem>>, vector<8x256xf32>,
    %c0_50 = arith.constant 0 : index
    %c113_51 = arith.constant 113 : index
    %56 = vector.load %arg7[%c0_50, %c113_51] : memref<8x512xf32, #tpu.memory_space<vmem>>, vector<8x256xf32>
    %57 = vector.broadcast %5 : vector<1x256xf32> to vector<8x256xf32>
    %58 = arith.mulf %56, %57 : vector<8x256xf32>
    %c16_52 = arith.constant 16 : index
    %c0_53 = arith.constant 0 : index
    %59 = vector.load %arg8[%c16_52, %c0_53] : memref<72x256xf32, #tpu.memory_space<vmem>>, vector<8x256xf32>
    tpu.vector_store %arg8[%c16_52, %c0_53], %58 {strides = array<i32>} : memref<72x256xf32, #tpu.memory_space<vmem>>, vector<8x256xf32>,
    %c0_54 = arith.constant 0 : index
    %c127_55 = arith.constant 127 : index
    %60 = vector.load %arg7[%c0_54, %c127_55] : memref<8x512xf32, #tpu.memory_space<vmem>>, vector<8x256xf32>
    %61 = vector.broadcast %4 : vector<1x256xf32> to vector<8x256xf32>
    %62 = arith.mulf %60, %61 : vector<8x256xf32>
    %c24_56 = arith.constant 24 : index
    %c0_57 = arith.constant 0 : index
    %63 = vector.load %arg8[%c24_56, %c0_57] : memref<72x256xf32, #tpu.memory_space<vmem>>, vector<8x256xf32>
    tpu.vector_store %arg8[%c24_56, %c0_57], %62 {strides = array<i32>} : memref<72x256xf32, #tpu.memory_space<vmem>>, vector<8x256xf32>,
    %c0_58 = arith.constant 0 : index
    %c128_59 = arith.constant 128 : index
    %64 = vector.load %arg7[%c0_58, %c128_59] : memref<8x512xf32, #tpu.memory_space<vmem>>, vector<8x256xf32>
    %c32_60 = arith.constant 32 : index
    %c0_61 = arith.constant 0 : index
    %65 = vector.load %arg8[%c32_60, %c0_61] : memref<72x256xf32, #tpu.memory_space<vmem>>, vector<8x256xf32>
    tpu.vector_store %arg8[%c32_60, %c0_61], %64 {strides = array<i32>} : memref<72x256xf32, #tpu.memory_space<vmem>>, vector<8x256xf32>,
    %c0_62 = arith.constant 0 : index
    %c129_63 = arith.constant 129 : index
    %66 = vector.load %arg7[%c0_62, %c129_63] : memref<8x512xf32, #tpu.memory_space<vmem>>, vector<8x256xf32>
    %67 = vector.broadcast %5 : vector<1x256xf32> to vector<8x256xf32>
    %68 = arith.mulf %66, %67 : vector<8x256xf32>
    %c40_64 = arith.constant 40 : index
    %c0_65 = arith.constant 0 : index
    %69 = vector.load %arg8[%c40_64, %c0_65] : memref<72x256xf32, #tpu.memory_space<vmem>>, vector<8x256xf32>
    tpu.vector_store %arg8[%c40_64, %c0_65], %68 {strides = array<i32>} : memref<72x256xf32, #tpu.memory_space<vmem>>, vector<8x256xf32>,
    %c0_66 = arith.constant 0 : index
    %c143_67 = arith.constant 143 : index
    %70 = vector.load %arg7[%c0_66, %c143_67] : memref<8x512xf32, #tpu.memory_space<vmem>>, vector<8x256xf32>
    %71 = vector.broadcast %4 : vector<1x256xf32> to vector<8x256xf32>
    %72 = arith.mulf %70, %71 : vector<8x256xf32>
    %c48_68 = arith.constant 48 : index
    %c0_69 = arith.constant 0 : index
    %73 = vector.load %arg8[%c48_68, %c0_69] : memref<72x256xf32, #tpu.memory_space<vmem>>, vector<8x256xf32>
    tpu.vector_store %arg8[%c48_68, %c0_69], %72 {strides = array<i32>} : memref<72x256xf32, #tpu.memory_space<vmem>>, vector<8x256xf32>,
    %c0_70 = arith.constant 0 : index
    %c144_71 = arith.constant 144 : index
    %74 = vector.load %arg7[%c0_70, %c144_71] : memref<8x512xf32, #tpu.memory_space<vmem>>, vector<8x256xf32>
    %c56_72 = arith.constant 56 : index
    %c0_73 = arith.constant 0 : index
    %75 = vector.load %arg8[%c56_72, %c0_73] : memref<72x256xf32, #tpu.memory_space<vmem>>, vector<8x256xf32>
    tpu.vector_store %arg8[%c56_72, %c0_73], %74 {strides = array<i32>} : memref<72x256xf32, #tpu.memory_space<vmem>>, vector<8x256xf32>,
    %c0_74 = arith.constant 0 : index
    %c145_75 = arith.constant 145 : index
    %76 = vector.load %arg7[%c0_74, %c145_75] : memref<8x512xf32, #tpu.memory_space<vmem>>, vector<8x256xf32>
    %77 = vector.broadcast %5 : vector<1x256xf32> to vector<8x256xf32>
    %78 = arith.mulf %76, %77 : vector<8x256xf32>
    %c64_76 = arith.constant 64 : index
    %c0_77 = arith.constant 0 : index
    %79 = vector.load %arg8[%c64_76, %c0_77] : memref<72x256xf32, #tpu.memory_space<vmem>>, vector<8x256xf32>
    tpu.vector_store %arg8[%c64_76, %c0_77], %78 {strides = array<i32>} : memref<72x256xf32, #tpu.memory_space<vmem>>, vector<8x256xf32>,
    %c1_78 = arith.constant 1 : index
    %c0_79 = arith.constant 0 : index
    %c0_80 = arith.constant 0 : index
    %80 = vector.load %arg2[%c1_78, %c0_79, %c0_80] : memref<4x8x72xf32, #tpu.memory_space<vmem>>, vector<1x8x72xf32>
    %81 = vector.shape_cast %80 : vector<1x8x72xf32> to vector<8x72xf32>
    %c0_81 = arith.constant 0 : index
    %c0_82 = arith.constant 0 : index
    %82 = vector.load %arg8[%c0_81, %c0_82] : memref<72x256xf32, #tpu.memory_space<vmem>>, vector<72x256xf32>
    %cst_83 = arith.constant dense<0.000000e+00> : vector<8x256xf32>
    %83 = tpu.matmul %81, %82, %cst_83 {dimension_numbers = #tpu.dot_dimension_numbers<[1], [0], [0], [1], [0, 0, 1, 1], [], []>} : vector<8x72xf32>, vector<72x256xf32>, vector<8x256xf32> -> vector<8x256xf32>
    %c1_84 = arith.constant 1 : index
    %c0_85 = arith.constant 0 : index
    %c0_86 = arith.constant 0 : index
    %84 = vector.load %arg4[%c1_84, %c0_85, %c0_86] : memref<5x8x1xf32, #tpu.memory_space<vmem>>, vector<1x8x1xf32>
    %85 = vector.shape_cast %84 : vector<1x8x1xf32> to vector<8x1xf32>
    %86 = vector.broadcast %85 : vector<8x1xf32> to vector<8x256xf32>
    %87 = arith.addf %83, %86 : vector<8x256xf32>
    %c0_87 = arith.constant 0 : index
    %c0_88 = arith.constant 0 : index
    %c0_89 = arith.constant 0 : index
    %88 = vector.load %arg1[%c0_87, %c0_88, %c0_89] : memref<1x8x256xf32, #tpu.memory_space<vmem>>, vector<1x8x256xf32>
    %89 = vector.shape_cast %88 : vector<1x8x256xf32> to vector<8x256xf32>
    %90 = arith.addf %87, %89 : vector<8x256xf32>
    %cst_90 = arith.constant 0.000000e+00 : f32
    %91 = vector.broadcast %cst_90 : f32 to vector<8x256xf32>
    %92 = arith.maximumf %90, %91 : vector<8x256xf32>
    %c0_91 = arith.constant 0 : index
    %c128_92 = arith.constant 128 : index
    %93 = vector.load %arg7[%c0_91, %c128_92] : memref<8x512xf32, #tpu.memory_space<vmem>>, vector<8x256xf32>
    tpu.vector_store %arg7[%c0_91, %c128_92], %92 {strides = array<i32>} : memref<8x512xf32, #tpu.memory_space<vmem>>, vector<8x256xf32>,
    %c0_93 = arith.constant 0 : index
    %c111_94 = arith.constant 111 : index
    %94 = vector.load %arg7[%c0_93, %c111_94] : memref<8x512xf32, #tpu.memory_space<vmem>>, vector<8x256xf32>
    %95 = vector.broadcast %4 : vector<1x256xf32> to vector<8x256xf32>
    %96 = arith.mulf %94, %95 : vector<8x256xf32>
    %c0_95 = arith.constant 0 : index
    %c0_96 = arith.constant 0 : index
    %97 = vector.load %arg8[%c0_95, %c0_96] : memref<72x256xf32, #tpu.memory_space<vmem>>, vector<8x256xf32>
    tpu.vector_store %arg8[%c0_95, %c0_96], %96 {strides = array<i32>} : memref<72x256xf32, #tpu.memory_space<vmem>>, vector<8x256xf32>,
    %c0_97 = arith.constant 0 : index
    %c112_98 = arith.constant 112 : index
    %98 = vector.load %arg7[%c0_97, %c112_98] : memref<8x512xf32, #tpu.memory_space<vmem>>, vector<8x256xf32>
    %c8_99 = arith.constant 8 : index
    %c0_100 = arith.constant 0 : index
    %99 = vector.load %arg8[%c8_99, %c0_100] : memref<72x256xf32, #tpu.memory_space<vmem>>, vector<8x256xf32>
    tpu.vector_store %arg8[%c8_99, %c0_100], %98 {strides = array<i32>} : memref<72x256xf32, #tpu.memory_space<vmem>>, vector<8x256xf32>,
    %c0_101 = arith.constant 0 : index
    %c113_102 = arith.constant 113 : index
    %100 = vector.load %arg7[%c0_101, %c113_102] : memref<8x512xf32, #tpu.memory_space<vmem>>, vector<8x256xf32>
    %101 = vector.broadcast %5 : vector<1x256xf32> to vector<8x256xf32>
    %102 = arith.mulf %100, %101 : vector<8x256xf32>
    %c16_103 = arith.constant 16 : index
    %c0_104 = arith.constant 0 : index
    %103 = vector.load %arg8[%c16_103, %c0_104] : memref<72x256xf32, #tpu.memory_space<vmem>>, vector<8x256xf32>
    tpu.vector_store %arg8[%c16_103, %c0_104], %102 {strides = array<i32>} : memref<72x256xf32, #tpu.memory_space<vmem>>, vector<8x256xf32>,
    %c0_105 = arith.constant 0 : index
    %c127_106 = arith.constant 127 : index
    %104 = vector.load %arg7[%c0_105, %c127_106] : memref<8x512xf32, #tpu.memory_space<vmem>>, vector<8x256xf32>
    %105 = vector.broadcast %4 : vector<1x256xf32> to vector<8x256xf32>
    %106 = arith.mulf %104, %105 : vector<8x256xf32>
    %c24_107 = arith.constant 24 : index
    %c0_108 = arith.constant 0 : index
    %107 = vector.load %arg8[%c24_107, %c0_108] : memref<72x256xf32, #tpu.memory_space<vmem>>, vector<8x256xf32>
    tpu.vector_store %arg8[%c24_107, %c0_108], %106 {strides = array<i32>} : memref<72x256xf32, #tpu.memory_space<vmem>>, vector<8x256xf32>,
    %c0_109 = arith.constant 0 : index
    %c128_110 = arith.constant 128 : index
    %108 = vector.load %arg7[%c0_109, %c128_110] : memref<8x512xf32, #tpu.memory_space<vmem>>, vector<8x256xf32>
    %c32_111 = arith.constant 32 : index
    %c0_112 = arith.constant 0 : index
    %109 = vector.load %arg8[%c32_111, %c0_112] : memref<72x256xf32, #tpu.memory_space<vmem>>, vector<8x256xf32>
    tpu.vector_store %arg8[%c32_111, %c0_112], %108 {strides = array<i32>} : memref<72x256xf32, #tpu.memory_space<vmem>>, vector<8x256xf32>,
    %c0_113 = arith.constant 0 : index
    %c129_114 = arith.constant 129 : index
    %110 = vector.load %arg7[%c0_113, %c129_114] : memref<8x512xf32, #tpu.memory_space<vmem>>, vector<8x256xf32>
    %111 = vector.broadcast %5 : vector<1x256xf32> to vector<8x256xf32>
    %112 = arith.mulf %110, %111 : vector<8x256xf32>
    %c40_115 = arith.constant 40 : index
    %c0_116 = arith.constant 0 : index
    %113 = vector.load %arg8[%c40_115, %c0_116] : memref<72x256xf32, #tpu.memory_space<vmem>>, vector<8x256xf32>
    tpu.vector_store %arg8[%c40_115, %c0_116], %112 {strides = array<i32>} : memref<72x256xf32, #tpu.memory_space<vmem>>, vector<8x256xf32>,
    %c0_117 = arith.constant 0 : index
    %c143_118 = arith.constant 143 : index
    %114 = vector.load %arg7[%c0_117, %c143_118] : memref<8x512xf32, #tpu.memory_space<vmem>>, vector<8x256xf32>
    %115 = vector.broadcast %4 : vector<1x256xf32> to vector<8x256xf32>
    %116 = arith.mulf %114, %115 : vector<8x256xf32>
    %c48_119 = arith.constant 48 : index
    %c0_120 = arith.constant 0 : index
    %117 = vector.load %arg8[%c48_119, %c0_120] : memref<72x256xf32, #tpu.memory_space<vmem>>, vector<8x256xf32>
    tpu.vector_store %arg8[%c48_119, %c0_120], %116 {strides = array<i32>} : memref<72x256xf32, #tpu.memory_space<vmem>>, vector<8x256xf32>,
    %c0_121 = arith.constant 0 : index
    %c144_122 = arith.constant 144 : index
    %118 = vector.load %arg7[%c0_121, %c144_122] : memref<8x512xf32, #tpu.memory_space<vmem>>, vector<8x256xf32>
    %c56_123 = arith.constant 56 : index
    %c0_124 = arith.constant 0 : index
    %119 = vector.load %arg8[%c56_123, %c0_124] : memref<72x256xf32, #tpu.memory_space<vmem>>, vector<8x256xf32>
    tpu.vector_store %arg8[%c56_123, %c0_124], %118 {strides = array<i32>} : memref<72x256xf32, #tpu.memory_space<vmem>>, vector<8x256xf32>,
    %c0_125 = arith.constant 0 : index
    %c145_126 = arith.constant 145 : index
    %120 = vector.load %arg7[%c0_125, %c145_126] : memref<8x512xf32, #tpu.memory_space<vmem>>, vector<8x256xf32>
    %121 = vector.broadcast %5 : vector<1x256xf32> to vector<8x256xf32>
    %122 = arith.mulf %120, %121 : vector<8x256xf32>
    %c64_127 = arith.constant 64 : index
    %c0_128 = arith.constant 0 : index
    %123 = vector.load %arg8[%c64_127, %c0_128] : memref<72x256xf32, #tpu.memory_space<vmem>>, vector<8x256xf32>
    tpu.vector_store %arg8[%c64_127, %c0_128], %122 {strides = array<i32>} : memref<72x256xf32, #tpu.memory_space<vmem>>, vector<8x256xf32>,
    %c2 = arith.constant 2 : index
    %c0_129 = arith.constant 0 : index
    %c0_130 = arith.constant 0 : index
    %124 = vector.load %arg2[%c2, %c0_129, %c0_130] : memref<4x8x72xf32, #tpu.memory_space<vmem>>, vector<1x8x72xf32>
    %125 = vector.shape_cast %124 : vector<1x8x72xf32> to vector<8x72xf32>
    %c0_131 = arith.constant 0 : index
    %c0_132 = arith.constant 0 : index
    %126 = vector.load %arg8[%c0_131, %c0_132] : memref<72x256xf32, #tpu.memory_space<vmem>>, vector<72x256xf32>
    %cst_133 = arith.constant dense<0.000000e+00> : vector<8x256xf32>
    %127 = tpu.matmul %125, %126, %cst_133 {dimension_numbers = #tpu.dot_dimension_numbers<[1], [0], [0], [1], [0, 0, 1, 1], [], []>} : vector<8x72xf32>, vector<72x256xf32>, vector<8x256xf32> -> vector<8x256xf32>
    %c2_134 = arith.constant 2 : index
    %c0_135 = arith.constant 0 : index
    %c0_136 = arith.constant 0 : index
    %128 = vector.load %arg4[%c2_134, %c0_135, %c0_136] : memref<5x8x1xf32, #tpu.memory_space<vmem>>, vector<1x8x1xf32>
    %129 = vector.shape_cast %128 : vector<1x8x1xf32> to vector<8x1xf32>
    %130 = vector.broadcast %129 : vector<8x1xf32> to vector<8x256xf32>
    %131 = arith.addf %127, %130 : vector<8x256xf32>
    %cst_137 = arith.constant 0.000000e+00 : f32
    %132 = vector.broadcast %cst_137 : f32 to vector<8x256xf32>
    %133 = arith.maximumf %131, %132 : vector<8x256xf32>
    %c0_138 = arith.constant 0 : index
    %c128_139 = arith.constant 128 : index
    %134 = vector.load %arg7[%c0_138, %c128_139] : memref<8x512xf32, #tpu.memory_space<vmem>>, vector<8x256xf32>
    tpu.vector_store %arg7[%c0_138, %c128_139], %133 {strides = array<i32>} : memref<8x512xf32, #tpu.memory_space<vmem>>, vector<8x256xf32>,
    %c0_140 = arith.constant 0 : index
    %c111_141 = arith.constant 111 : index
    %135 = vector.load %arg7[%c0_140, %c111_141] : memref<8x512xf32, #tpu.memory_space<vmem>>, vector<8x256xf32>
    %136 = vector.broadcast %4 : vector<1x256xf32> to vector<8x256xf32>
    %137 = arith.mulf %135, %136 : vector<8x256xf32>
    %c0_142 = arith.constant 0 : index
    %c0_143 = arith.constant 0 : index
    %138 = vector.load %arg8[%c0_142, %c0_143] : memref<72x256xf32, #tpu.memory_space<vmem>>, vector<8x256xf32>
    tpu.vector_store %arg8[%c0_142, %c0_143], %137 {strides = array<i32>} : memref<72x256xf32, #tpu.memory_space<vmem>>, vector<8x256xf32>,
    %c0_144 = arith.constant 0 : index
    %c112_145 = arith.constant 112 : index
    %139 = vector.load %arg7[%c0_144, %c112_145] : memref<8x512xf32, #tpu.memory_space<vmem>>, vector<8x256xf32>
    %c8_146 = arith.constant 8 : index
    %c0_147 = arith.constant 0 : index
    %140 = vector.load %arg8[%c8_146, %c0_147] : memref<72x256xf32, #tpu.memory_space<vmem>>, vector<8x256xf32>
    tpu.vector_store %arg8[%c8_146, %c0_147], %139 {strides = array<i32>} : memref<72x256xf32, #tpu.memory_space<vmem>>, vector<8x256xf32>,
    %c0_148 = arith.constant 0 : index
    %c113_149 = arith.constant 113 : index
    %141 = vector.load %arg7[%c0_148, %c113_149] : memref<8x512xf32, #tpu.memory_space<vmem>>, vector<8x256xf32>
    %142 = vector.broadcast %5 : vector<1x256xf32> to vector<8x256xf32>
    %143 = arith.mulf %141, %142 : vector<8x256xf32>
    %c16_150 = arith.constant 16 : index
    %c0_151 = arith.constant 0 : index
    %144 = vector.load %arg8[%c16_150, %c0_151] : memref<72x256xf32, #tpu.memory_space<vmem>>, vector<8x256xf32>
    tpu.vector_store %arg8[%c16_150, %c0_151], %143 {strides = array<i32>} : memref<72x256xf32, #tpu.memory_space<vmem>>, vector<8x256xf32>,
    %c0_152 = arith.constant 0 : index
    %c127_153 = arith.constant 127 : index
    %145 = vector.load %arg7[%c0_152, %c127_153] : memref<8x512xf32, #tpu.memory_space<vmem>>, vector<8x256xf32>
    %146 = vector.broadcast %4 : vector<1x256xf32> to vector<8x256xf32>
    %147 = arith.mulf %145, %146 : vector<8x256xf32>
    %c24_154 = arith.constant 24 : index
    %c0_155 = arith.constant 0 : index
    %148 = vector.load %arg8[%c24_154, %c0_155] : memref<72x256xf32, #tpu.memory_space<vmem>>, vector<8x256xf32>
    tpu.vector_store %arg8[%c24_154, %c0_155], %147 {strides = array<i32>} : memref<72x256xf32, #tpu.memory_space<vmem>>, vector<8x256xf32>,
    %c0_156 = arith.constant 0 : index
    %c128_157 = arith.constant 128 : index
    %149 = vector.load %arg7[%c0_156, %c128_157] : memref<8x512xf32, #tpu.memory_space<vmem>>, vector<8x256xf32>
    %c32_158 = arith.constant 32 : index
    %c0_159 = arith.constant 0 : index
    %150 = vector.load %arg8[%c32_158, %c0_159] : memref<72x256xf32, #tpu.memory_space<vmem>>, vector<8x256xf32>
    tpu.vector_store %arg8[%c32_158, %c0_159], %149 {strides = array<i32>} : memref<72x256xf32, #tpu.memory_space<vmem>>, vector<8x256xf32>,
    %c0_160 = arith.constant 0 : index
    %c129_161 = arith.constant 129 : index
    %151 = vector.load %arg7[%c0_160, %c129_161] : memref<8x512xf32, #tpu.memory_space<vmem>>, vector<8x256xf32>
    %152 = vector.broadcast %5 : vector<1x256xf32> to vector<8x256xf32>
    %153 = arith.mulf %151, %152 : vector<8x256xf32>
    %c40_162 = arith.constant 40 : index
    %c0_163 = arith.constant 0 : index
    %154 = vector.load %arg8[%c40_162, %c0_163] : memref<72x256xf32, #tpu.memory_space<vmem>>, vector<8x256xf32>
    tpu.vector_store %arg8[%c40_162, %c0_163], %153 {strides = array<i32>} : memref<72x256xf32, #tpu.memory_space<vmem>>, vector<8x256xf32>,
    %c0_164 = arith.constant 0 : index
    %c143_165 = arith.constant 143 : index
    %155 = vector.load %arg7[%c0_164, %c143_165] : memref<8x512xf32, #tpu.memory_space<vmem>>, vector<8x256xf32>
    %156 = vector.broadcast %4 : vector<1x256xf32> to vector<8x256xf32>
    %157 = arith.mulf %155, %156 : vector<8x256xf32>
    %c48_166 = arith.constant 48 : index
    %c0_167 = arith.constant 0 : index
    %158 = vector.load %arg8[%c48_166, %c0_167] : memref<72x256xf32, #tpu.memory_space<vmem>>, vector<8x256xf32>
    tpu.vector_store %arg8[%c48_166, %c0_167], %157 {strides = array<i32>} : memref<72x256xf32, #tpu.memory_space<vmem>>, vector<8x256xf32>,
    %c0_168 = arith.constant 0 : index
    %c144_169 = arith.constant 144 : index
    %159 = vector.load %arg7[%c0_168, %c144_169] : memref<8x512xf32, #tpu.memory_space<vmem>>, vector<8x256xf32>
    %c56_170 = arith.constant 56 : index
    %c0_171 = arith.constant 0 : index
    %160 = vector.load %arg8[%c56_170, %c0_171] : memref<72x256xf32, #tpu.memory_space<vmem>>, vector<8x256xf32>
    tpu.vector_store %arg8[%c56_170, %c0_171], %159 {strides = array<i32>} : memref<72x256xf32, #tpu.memory_space<vmem>>, vector<8x256xf32>,
    %c0_172 = arith.constant 0 : index
    %c145_173 = arith.constant 145 : index
    %161 = vector.load %arg7[%c0_172, %c145_173] : memref<8x512xf32, #tpu.memory_space<vmem>>, vector<8x256xf32>
    %162 = vector.broadcast %5 : vector<1x256xf32> to vector<8x256xf32>
    %163 = arith.mulf %161, %162 : vector<8x256xf32>
    %c64_174 = arith.constant 64 : index
    %c0_175 = arith.constant 0 : index
    %164 = vector.load %arg8[%c64_174, %c0_175] : memref<72x256xf32, #tpu.memory_space<vmem>>, vector<8x256xf32>
    tpu.vector_store %arg8[%c64_174, %c0_175], %163 {strides = array<i32>} : memref<72x256xf32, #tpu.memory_space<vmem>>, vector<8x256xf32>,
    %c3 = arith.constant 3 : index
    %c0_176 = arith.constant 0 : index
    %c0_177 = arith.constant 0 : index
    %165 = vector.load %arg2[%c3, %c0_176, %c0_177] : memref<4x8x72xf32, #tpu.memory_space<vmem>>, vector<1x8x72xf32>
    %166 = vector.shape_cast %165 : vector<1x8x72xf32> to vector<8x72xf32>
    %c0_178 = arith.constant 0 : index
    %c0_179 = arith.constant 0 : index
    %167 = vector.load %arg8[%c0_178, %c0_179] : memref<72x256xf32, #tpu.memory_space<vmem>>, vector<72x256xf32>
    %cst_180 = arith.constant dense<0.000000e+00> : vector<8x256xf32>
    %168 = tpu.matmul %166, %167, %cst_180 {dimension_numbers = #tpu.dot_dimension_numbers<[1], [0], [0], [1], [0, 0, 1, 1], [], []>} : vector<8x72xf32>, vector<72x256xf32>, vector<8x256xf32> -> vector<8x256xf32>
    %c3_181 = arith.constant 3 : index
    %c0_182 = arith.constant 0 : index
    %c0_183 = arith.constant 0 : index
    %169 = vector.load %arg4[%c3_181, %c0_182, %c0_183] : memref<5x8x1xf32, #tpu.memory_space<vmem>>, vector<1x8x1xf32>
    %170 = vector.shape_cast %169 : vector<1x8x1xf32> to vector<8x1xf32>
    %171 = vector.broadcast %170 : vector<8x1xf32> to vector<8x256xf32>
    %172 = arith.addf %168, %171 : vector<8x256xf32>
    %173 = arith.addf %172, %92 : vector<8x256xf32>
    %cst_184 = arith.constant 0.000000e+00 : f32
    %174 = vector.broadcast %cst_184 : f32 to vector<8x256xf32>
    %175 = arith.maximumf %173, %174 : vector<8x256xf32>
    %c0_185 = arith.constant 0 : index
    %c0_186 = arith.constant 0 : index
    %176 = vector.load %arg8[%c0_185, %c0_186] : memref<72x256xf32, #tpu.memory_space<vmem>>, vector<8x256xf32>
    tpu.vector_store %arg8[%c0_185, %c0_186], %175 {strides = array<i32>} : memref<72x256xf32, #tpu.memory_space<vmem>>, vector<8x256xf32>,
    %c8_187 = arith.constant 8 : index
    %c0_188 = arith.constant 0 : index
    %177 = vector.load %arg8[%c8_187, %c0_188] : memref<72x256xf32, #tpu.memory_space<vmem>>, vector<8x256xf32>
    tpu.vector_store %arg8[%c8_187, %c0_188], %92 {strides = array<i32>} : memref<72x256xf32, #tpu.memory_space<vmem>>, vector<8x256xf32>,
    %c0_189 = arith.constant 0 : index
    %c0_190 = arith.constant 0 : index
    %178 = vector.load %arg3[%c0_189, %c0_190] : memref<8x16xf32, #tpu.memory_space<vmem>>, vector<8x16xf32>
    %c0_191 = arith.constant 0 : index
    %c0_192 = arith.constant 0 : index
    %179 = vector.load %arg8[%c0_191, %c0_192] : memref<72x256xf32, #tpu.memory_space<vmem>>, vector<16x256xf32>
    %cst_193 = arith.constant dense<0.000000e+00> : vector<8x256xf32>
    %180 = tpu.matmul %178, %179, %cst_193 {dimension_numbers = #tpu.dot_dimension_numbers<[1], [0], [0], [1], [0, 0, 1, 1], [], []>} : vector<8x16xf32>, vector<16x256xf32>, vector<8x256xf32> -> vector<8x256xf32>
    %c4 = arith.constant 4 : index
    %c0_194 = arith.constant 0 : index
    %c0_195 = arith.constant 0 : index
    %181 = vector.load %arg4[%c4, %c0_194, %c0_195] : memref<5x8x1xf32, #tpu.memory_space<vmem>>, vector<1x8x1xf32>
    %182 = vector.shape_cast %181 : vector<1x8x1xf32> to vector<8x1xf32>
    %183 = vector.broadcast %182 : vector<8x1xf32> to vector<8x256xf32>
    %184 = arith.addf %180, %183 : vector<8x256xf32>
    %cst_196 = arith.constant 0.000000e+00 : f32
    %185 = vector.broadcast %cst_196 : f32 to vector<8x256xf32>
    %186 = arith.maximumf %184, %185 : vector<8x256xf32>
    %c0_197 = arith.constant 0 : index
    %c0_198 = arith.constant 0 : index
    %c0_199 = arith.constant 0 : index
    %187 = vector.load %arg6[%c0_197, %c0_198, %c0_199] : memref<1x8x256xf32, #tpu.memory_space<vmem>>, vector<1x8x256xf32>
    %188 = vector.shape_cast %187 : vector<1x8x256xf32> to vector<8x256xf32>
    %189 = vector.shape_cast %186 : vector<8x256xf32> to vector<1x8x256xf32>
    tpu.vector_store %arg6[%c0_197, %c0_198, %c0_199], %189 {strides = array<i32>} : memref<1x8x256xf32, #tpu.memory_space<vmem>>, vector<1x8x256xf32>,
    return
  }
  func.func @transform_0(%arg0: i32) -> (i32, i32, i32) {
    %c0_i32 = arith.constant 0 : i32
    %c0_i32_0 = arith.constant 0 : i32
    %c0_i32_1 = arith.constant 0 : i32
    return %arg0, %c0_i32, %c0_i32_0 : i32, i32, i32
  }
  func.func @transform_1(%arg0: i32) -> (i32, i32, i32) {
    %c0_i32 = arith.constant 0 : i32
    %c0_i32_0 = arith.constant 0 : i32
    %c0_i32_1 = arith.constant 0 : i32
    %c0_i32_2 = arith.constant 0 : i32
    return %c0_i32, %c0_i32_0, %c0_i32_1 : i32, i32, i32
  }
  func.func @transform_2(%arg0: i32) -> (i32, i32) {
    %c0_i32 = arith.constant 0 : i32
    %c0_i32_0 = arith.constant 0 : i32
    %c0_i32_1 = arith.constant 0 : i32
    return %c0_i32, %c0_i32_0 : i32, i32
  }
  func.func @transform_3(%arg0: i32) -> (i32, i32, i32) {
    %c0_i32 = arith.constant 0 : i32
    %c0_i32_0 = arith.constant 0 : i32
    %c0_i32_1 = arith.constant 0 : i32
    %c0_i32_2 = arith.constant 0 : i32
    return %c0_i32, %c0_i32_0, %c0_i32_1 : i32, i32, i32
  }
  func.func @transform_4(%arg0: i32) -> (i32, i32) {
    %c0_i32 = arith.constant 0 : i32
    %c0_i32_0 = arith.constant 0 : i32
    %c0_i32_1 = arith.constant 0 : i32
    return %c0_i32, %c0_i32_0 : i32, i32
  }
  func.func @transform_5(%arg0: i32) -> (i32, i32, i32) {
    %c0_i32 = arith.constant 0 : i32
    %c0_i32_0 = arith.constant 0 : i32
    %c0_i32_1 = arith.constant 0 : i32
    return %arg0, %c0_i32, %c0_i32_0 : i32, i32, i32
  }
}

module attributes {stable_mosaic.version = 11 : i64} {
  func.func @_tree_kernel(%arg0: i32, %arg1: memref<1x8x256xf32, #tpu.memory_space<vmem>>, %arg2: memref<4x8x72xf32, #tpu.memory_space<vmem>>, %arg3: memref<8x16xf32, #tpu.memory_space<vmem>>, %arg4: memref<5x8x1xf32, #tpu.memory_space<vmem>>, %arg5: memref<2x256xf32, #tpu.memory_space<vmem>>, %arg6: memref<1x8x256xf32, #tpu.memory_space<vmem>>, %arg7: memref<8x512xf32, #tpu.memory_space<vmem>>, %arg8: memref<72x256xf32, #tpu.memory_space<vmem>>) attributes {dimension_semantics = [#tpu.dimension_semantics<parallel>], iteration_bounds = array<i64: 2>, scalar_prefetch = 0 : i64, scratch_operands = 2 : i64, tpu.core_type = #tpu.core_type<tc>, window_params = [{transform_indices = @transform_0, window_bounds = array<i64: 1, 8, 256>}, {pipeline_mode = #tpu.pipeline_mode<synchronous>, transform_indices = @transform_1, window_bounds = array<i64: 4, 8, 72>}, {pipeline_mode = #tpu.pipeline_mode<synchronous>, transform_indices = @transform_2, window_bounds = array<i64: 8, 16>}, {pipeline_mode = #tpu.pipeline_mode<synchronous>, transform_indices = @transform_3, window_bounds = array<i64: 5, 8, 1>}, {pipeline_mode = #tpu.pipeline_mode<synchronous>, transform_indices = @transform_4, window_bounds = array<i64: 2, 256>}, {transform_indices = @transform_5, window_bounds = array<i64: 1, 8, 256>}]} {
    %cst = arith.constant 0.000000e+00 : f32
    %0 = vector.broadcast %cst : f32 to vector<8x128xf32>
    %c0 = arith.constant 0 : index
    %c0_0 = arith.constant 0 : index
    %1 = vector.load %arg7[%c0, %c0_0] : memref<8x512xf32, #tpu.memory_space<vmem>>, vector<8x128xf32>
    tpu.vector_store %arg7[%c0, %c0_0], %0 {strides = array<i32>} : memref<8x512xf32, #tpu.memory_space<vmem>>, vector<8x128xf32>,
    %cst_1 = arith.constant 0.000000e+00 : f32
    %2 = vector.broadcast %cst_1 : f32 to vector<8x128xf32>
    %c0_2 = arith.constant 0 : index
    %c384 = arith.constant 384 : index
    %3 = vector.load %arg7[%c0_2, %c384] : memref<8x512xf32, #tpu.memory_space<vmem>>, vector<8x128xf32>
    tpu.vector_store %arg7[%c0_2, %c384], %2 {strides = array<i32>} : memref<8x512xf32, #tpu.memory_space<vmem>>, vector<8x128xf32>,
    %c0_3 = arith.constant 0 : index
    %c0_4 = arith.constant 0 : index
    %4 = vector.load %arg5[%c0_3, %c0_4] : memref<2x256xf32, #tpu.memory_space<vmem>>, vector<1x256xf32>
    %c1 = arith.constant 1 : index
    %c0_5 = arith.constant 0 : index
    %5 = vector.load %arg5[%c1, %c0_5] : memref<2x256xf32, #tpu.memory_space<vmem>>, vector<1x256xf32>
    %c0_6 = arith.constant 0 : index
    %c0_7 = arith.constant 0 : index
    %c0_8 = arith.constant 0 : index
    %6 = vector.load %arg1[%c0_6, %c0_7, %c0_8] : memref<1x8x256xf32, #tpu.memory_space<vmem>>, vector<1x8x256xf32>
    %7 = vector.shape_cast %6 : vector<1x8x256xf32> to vector<8x256xf32>
    %c0_9 = arith.constant 0 : index
    %c128 = arith.constant 128 : index
    %8 = vector.load %arg7[%c0_9, %c128] : memref<8x512xf32, #tpu.memory_space<vmem>>, vector<8x256xf32>
    tpu.vector_store %arg7[%c0_9, %c128], %7 {strides = array<i32>} : memref<8x512xf32, #tpu.memory_space<vmem>>, vector<8x256xf32>,
    %c0_10 = arith.constant 0 : index
    %c111 = arith.constant 111 : index
    %9 = vector.load %arg7[%c0_10, %c111] : memref<8x512xf32, #tpu.memory_space<vmem>>, vector<8x256xf32>
    %10 = vector.broadcast %4 : vector<1x256xf32> to vector<8x256xf32>
    %11 = arith.mulf %9, %10 : vector<8x256xf32>
    %c0_11 = arith.constant 0 : index
    %c0_12 = arith.constant 0 : index
    %12 = vector.load %arg8[%c0_11, %c0_12] : memref<72x256xf32, #tpu.memory_space<vmem>>, vector<8x256xf32>
    tpu.vector_store %arg8[%c0_11, %c0_12], %11 {strides = array<i32>} : memref<72x256xf32, #tpu.memory_space<vmem>>, vector<8x256xf32>,
    %c0_13 = arith.constant 0 : index
    %c112 = arith.constant 112 : index
    %13 = vector.load %arg7[%c0_13, %c112] : memref<8x512xf32, #tpu.memory_space<vmem>>, vector<8x256xf32>
    %c8 = arith.constant 8 : index
    %c0_14 = arith.constant 0 : index
    %14 = vector.load %arg8[%c8, %c0_14] : memref<72x256xf32, #tpu.memory_space<vmem>>, vector<8x256xf32>
    tpu.vector_store %arg8[%c8, %c0_14], %13 {strides = array<i32>} : memref<72x256xf32, #tpu.memory_space<vmem>>, vector<8x256xf32>,
    %c0_15 = arith.constant 0 : index
    %c113 = arith.constant 113 : index
    %15 = vector.load %arg7[%c0_15, %c113] : memref<8x512xf32, #tpu.memory_space<vmem>>, vector<8x256xf32>
    %16 = vector.broadcast %5 : vector<1x256xf32> to vector<8x256xf32>
    %17 = arith.mulf %15, %16 : vector<8x256xf32>
    %c16 = arith.constant 16 : index
    %c0_16 = arith.constant 0 : index
    %18 = vector.load %arg8[%c16, %c0_16] : memref<72x256xf32, #tpu.memory_space<vmem>>, vector<8x256xf32>
    tpu.vector_store %arg8[%c16, %c0_16], %17 {strides = array<i32>} : memref<72x256xf32, #tpu.memory_space<vmem>>, vector<8x256xf32>,
    %c0_17 = arith.constant 0 : index
    %c127 = arith.constant 127 : index
    %19 = vector.load %arg7[%c0_17, %c127] : memref<8x512xf32, #tpu.memory_space<vmem>>, vector<8x256xf32>
    %20 = vector.broadcast %4 : vector<1x256xf32> to vector<8x256xf32>
    %21 = arith.mulf %19, %20 : vector<8x256xf32>
    %c24 = arith.constant 24 : index
    %c0_18 = arith.constant 0 : index
    %22 = vector.load %arg8[%c24, %c0_18] : memref<72x256xf32, #tpu.memory_space<vmem>>, vector<8x256xf32>
    tpu.vector_store %arg8[%c24, %c0_18], %21 {strides = array<i32>} : memref<72x256xf32, #tpu.memory_space<vmem>>, vector<8x256xf32>,
    %c0_19 = arith.constant 0 : index
    %c128_20 = arith.constant 128 : index
    %23 = vector.load %arg7[%c0_19, %c128_20] : memref<8x512xf32, #tpu.memory_space<vmem>>, vector<8x256xf32>
    %c32 = arith.constant 32 : index
    %c0_21 = arith.constant 0 : index
    %24 = vector.load %arg8[%c32, %c0_21] : memref<72x256xf32, #tpu.memory_space<vmem>>, vector<8x256xf32>
    tpu.vector_store %arg8[%c32, %c0_21], %23 {strides = array<i32>} : memref<72x256xf32, #tpu.memory_space<vmem>>, vector<8x256xf32>,
    %c0_22 = arith.constant 0 : index
    %c129 = arith.constant 129 : index
    %25 = vector.load %arg7[%c0_22, %c129] : memref<8x512xf32, #tpu.memory_space<vmem>>, vector<8x256xf32>
    %26 = vector.broadcast %5 : vector<1x256xf32> to vector<8x256xf32>
    %27 = arith.mulf %25, %26 : vector<8x256xf32>
    %c40 = arith.constant 40 : index
    %c0_23 = arith.constant 0 : index
    %28 = vector.load %arg8[%c40, %c0_23] : memref<72x256xf32, #tpu.memory_space<vmem>>, vector<8x256xf32>
    tpu.vector_store %arg8[%c40, %c0_23], %27 {strides = array<i32>} : memref<72x256xf32, #tpu.memory_space<vmem>>, vector<8x256xf32>,
    %c0_24 = arith.constant 0 : index
    %c143 = arith.constant 143 : index
    %29 = vector.load %arg7[%c0_24, %c143] : memref<8x512xf32, #tpu.memory_space<vmem>>, vector<8x256xf32>
    %30 = vector.broadcast %4 : vector<1x256xf32> to vector<8x256xf32>
    %31 = arith.mulf %29, %30 : vector<8x256xf32>
    %c48 = arith.constant 48 : index
    %c0_25 = arith.constant 0 : index
    %32 = vector.load %arg8[%c48, %c0_25] : memref<72x256xf32, #tpu.memory_space<vmem>>, vector<8x256xf32>
    tpu.vector_store %arg8[%c48, %c0_25], %31 {strides = array<i32>} : memref<72x256xf32, #tpu.memory_space<vmem>>, vector<8x256xf32>,
    %c0_26 = arith.constant 0 : index
    %c144 = arith.constant 144 : index
    %33 = vector.load %arg7[%c0_26, %c144] : memref<8x512xf32, #tpu.memory_space<vmem>>, vector<8x256xf32>
    %c56 = arith.constant 56 : index
    %c0_27 = arith.constant 0 : index
    %34 = vector.load %arg8[%c56, %c0_27] : memref<72x256xf32, #tpu.memory_space<vmem>>, vector<8x256xf32>
    tpu.vector_store %arg8[%c56, %c0_27], %33 {strides = array<i32>} : memref<72x256xf32, #tpu.memory_space<vmem>>, vector<8x256xf32>,
    %c0_28 = arith.constant 0 : index
    %c145 = arith.constant 145 : index
    %35 = vector.load %arg7[%c0_28, %c145] : memref<8x512xf32, #tpu.memory_space<vmem>>, vector<8x256xf32>
    %36 = vector.broadcast %5 : vector<1x256xf32> to vector<8x256xf32>
    %37 = arith.mulf %35, %36 : vector<8x256xf32>
    %c64 = arith.constant 64 : index
    %c0_29 = arith.constant 0 : index
    %38 = vector.load %arg8[%c64, %c0_29] : memref<72x256xf32, #tpu.memory_space<vmem>>, vector<8x256xf32>
    tpu.vector_store %arg8[%c64, %c0_29], %37 {strides = array<i32>} : memref<72x256xf32, #tpu.memory_space<vmem>>, vector<8x256xf32>,
    %c0_30 = arith.constant 0 : index
    %c0_31 = arith.constant 0 : index
    %c0_32 = arith.constant 0 : index
    %39 = vector.load %arg2[%c0_30, %c0_31, %c0_32] : memref<4x8x72xf32, #tpu.memory_space<vmem>>, vector<1x8x72xf32>
    %40 = vector.shape_cast %39 : vector<1x8x72xf32> to vector<8x72xf32>
    %c0_33 = arith.constant 0 : index
    %c0_34 = arith.constant 0 : index
    %41 = vector.load %arg8[%c0_33, %c0_34] : memref<72x256xf32, #tpu.memory_space<vmem>>, vector<72x256xf32>
    %cst_35 = arith.constant dense<0.000000e+00> : vector<8x256xf32>
    %42 = tpu.matmul %40, %41, %cst_35 {dimension_numbers = #tpu.dot_dimension_numbers<[1], [0], [0], [1], [0, 0, 1, 1], [], []>} : vector<8x72xf32>, vector<72x256xf32>, vector<8x256xf32> -> vector<8x256xf32>
    %c0_36 = arith.constant 0 : index
    %c0_37 = arith.constant 0 : index
    %c0_38 = arith.constant 0 : index
    %43 = vector.load %arg4[%c0_36, %c0_37, %c0_38] : memref<5x8x1xf32, #tpu.memory_space<vmem>>, vector<1x8x1xf32>
    %44 = vector.shape_cast %43 : vector<1x8x1xf32> to vector<8x1xf32>
    %45 = vector.broadcast %44 : vector<8x1xf32> to vector<8x256xf32>
    %46 = arith.addf %42, %45 : vector<8x256xf32>
    %cst_39 = arith.constant 0.000000e+00 : f32
    %47 = vector.broadcast %cst_39 : f32 to vector<8x256xf32>
    %48 = arith.maximumf %46, %47 : vector<8x256xf32>
    %c0_40 = arith.constant 0 : index
    %c128_41 = arith.constant 128 : index
    %49 = vector.load %arg7[%c0_40, %c128_41] : memref<8x512xf32, #tpu.memory_space<vmem>>, vector<8x256xf32>
    tpu.vector_store %arg7[%c0_40, %c128_41], %48 {strides = array<i32>} : memref<8x512xf32, #tpu.memory_space<vmem>>, vector<8x256xf32>,
    %c0_42 = arith.constant 0 : index
    %c111_43 = arith.constant 111 : index
    %50 = vector.load %arg7[%c0_42, %c111_43] : memref<8x512xf32, #tpu.memory_space<vmem>>, vector<8x256xf32>
    %51 = vector.broadcast %4 : vector<1x256xf32> to vector<8x256xf32>
    %52 = arith.mulf %50, %51 : vector<8x256xf32>
    %c0_44 = arith.constant 0 : index
    %c0_45 = arith.constant 0 : index
    %53 = vector.load %arg8[%c0_44, %c0_45] : memref<72x256xf32, #tpu.memory_space<vmem>>, vector<8x256xf32>
    tpu.vector_store %arg8[%c0_44, %c0_45], %52 {strides = array<i32>} : memref<72x256xf32, #tpu.memory_space<vmem>>, vector<8x256xf32>,
    %c0_46 = arith.constant 0 : index
    %c112_47 = arith.constant 112 : index
    %54 = vector.load %arg7[%c0_46, %c112_47] : memref<8x512xf32, #tpu.memory_space<vmem>>, vector<8x256xf32>
    %c8_48 = arith.constant 8 : index
    %c0_49 = arith.constant 0 : index
    %55 = vector.load %arg8[%c8_48, %c0_49] : memref<72x256xf32, #tpu.memory_space<vmem>>, vector<8x256xf32>
    tpu.vector_store %arg8[%c8_48, %c0_49], %54 {strides = array<i32>} : memref<72x256xf32, #tpu.memory_space<vmem>>, vector<8x256xf32>,
    %c0_50 = arith.constant 0 : index
    %c113_51 = arith.constant 113 : index
    %56 = vector.load %arg7[%c0_50, %c113_51] : memref<8x512xf32, #tpu.memory_space<vmem>>, vector<8x256xf32>
    %57 = vector.broadcast %5 : vector<1x256xf32> to vector<8x256xf32>
    %58 = arith.mulf %56, %57 : vector<8x256xf32>
    %c16_52 = arith.constant 16 : index
    %c0_53 = arith.constant 0 : index
    %59 = vector.load %arg8[%c16_52, %c0_53] : memref<72x256xf32, #tpu.memory_space<vmem>>, vector<8x256xf32>
    tpu.vector_store %arg8[%c16_52, %c0_53], %58 {strides = array<i32>} : memref<72x256xf32, #tpu.memory_space<vmem>>, vector<8x256xf32>,
    %c0_54 = arith.constant 0 : index
    %c127_55 = arith.constant 127 : index
    %60 = vector.load %arg7[%c0_54, %c127_55] : memref<8x512xf32, #tpu.memory_space<vmem>>, vector<8x256xf32>
    %61 = vector.broadcast %4 : vector<1x256xf32> to vector<8x256xf32>
    %62 = arith.mulf %60, %61 : vector<8x256xf32>
    %c24_56 = arith.constant 24 : index
    %c0_57 = arith.constant 0 : index
    %63 = vector.load %arg8[%c24_56, %c0_57] : memref<72x256xf32, #tpu.memory_space<vmem>>, vector<8x256xf32>
    tpu.vector_store %arg8[%c24_56, %c0_57], %62 {strides = array<i32>} : memref<72x256xf32, #tpu.memory_space<vmem>>, vector<8x256xf32>,
    %c0_58 = arith.constant 0 : index
    %c128_59 = arith.constant 128 : index
    %64 = vector.load %arg7[%c0_58, %c128_59] : memref<8x512xf32, #tpu.memory_space<vmem>>, vector<8x256xf32>
    %c32_60 = arith.constant 32 : index
    %c0_61 = arith.constant 0 : index
    %65 = vector.load %arg8[%c32_60, %c0_61] : memref<72x256xf32, #tpu.memory_space<vmem>>, vector<8x256xf32>
    tpu.vector_store %arg8[%c32_60, %c0_61], %64 {strides = array<i32>} : memref<72x256xf32, #tpu.memory_space<vmem>>, vector<8x256xf32>,
    %c0_62 = arith.constant 0 : index
    %c129_63 = arith.constant 129 : index
    %66 = vector.load %arg7[%c0_62, %c129_63] : memref<8x512xf32, #tpu.memory_space<vmem>>, vector<8x256xf32>
    %67 = vector.broadcast %5 : vector<1x256xf32> to vector<8x256xf32>
    %68 = arith.mulf %66, %67 : vector<8x256xf32>
    %c40_64 = arith.constant 40 : index
    %c0_65 = arith.constant 0 : index
    %69 = vector.load %arg8[%c40_64, %c0_65] : memref<72x256xf32, #tpu.memory_space<vmem>>, vector<8x256xf32>
    tpu.vector_store %arg8[%c40_64, %c0_65], %68 {strides = array<i32>} : memref<72x256xf32, #tpu.memory_space<vmem>>, vector<8x256xf32>,
    %c0_66 = arith.constant 0 : index
    %c143_67 = arith.constant 143 : index
    %70 = vector.load %arg7[%c0_66, %c143_67] : memref<8x512xf32, #tpu.memory_space<vmem>>, vector<8x256xf32>
    %71 = vector.broadcast %4 : vector<1x256xf32> to vector<8x256xf32>
    %72 = arith.mulf %70, %71 : vector<8x256xf32>
    %c48_68 = arith.constant 48 : index
    %c0_69 = arith.constant 0 : index
    %73 = vector.load %arg8[%c48_68, %c0_69] : memref<72x256xf32, #tpu.memory_space<vmem>>, vector<8x256xf32>
    tpu.vector_store %arg8[%c48_68, %c0_69], %72 {strides = array<i32>} : memref<72x256xf32, #tpu.memory_space<vmem>>, vector<8x256xf32>,
    %c0_70 = arith.constant 0 : index
    %c144_71 = arith.constant 144 : index
    %74 = vector.load %arg7[%c0_70, %c144_71] : memref<8x512xf32, #tpu.memory_space<vmem>>, vector<8x256xf32>
    %c56_72 = arith.constant 56 : index
    %c0_73 = arith.constant 0 : index
    %75 = vector.load %arg8[%c56_72, %c0_73] : memref<72x256xf32, #tpu.memory_space<vmem>>, vector<8x256xf32>
    tpu.vector_store %arg8[%c56_72, %c0_73], %74 {strides = array<i32>} : memref<72x256xf32, #tpu.memory_space<vmem>>, vector<8x256xf32>,
    %c0_74 = arith.constant 0 : index
    %c145_75 = arith.constant 145 : index
    %76 = vector.load %arg7[%c0_74, %c145_75] : memref<8x512xf32, #tpu.memory_space<vmem>>, vector<8x256xf32>
    %77 = vector.broadcast %5 : vector<1x256xf32> to vector<8x256xf32>
    %78 = arith.mulf %76, %77 : vector<8x256xf32>
    %c64_76 = arith.constant 64 : index
    %c0_77 = arith.constant 0 : index
    %79 = vector.load %arg8[%c64_76, %c0_77] : memref<72x256xf32, #tpu.memory_space<vmem>>, vector<8x256xf32>
    tpu.vector_store %arg8[%c64_76, %c0_77], %78 {strides = array<i32>} : memref<72x256xf32, #tpu.memory_space<vmem>>, vector<8x256xf32>,
    %c1_78 = arith.constant 1 : index
    %c0_79 = arith.constant 0 : index
    %c0_80 = arith.constant 0 : index
    %80 = vector.load %arg2[%c1_78, %c0_79, %c0_80] : memref<4x8x72xf32, #tpu.memory_space<vmem>>, vector<1x8x72xf32>
    %81 = vector.shape_cast %80 : vector<1x8x72xf32> to vector<8x72xf32>
    %c0_81 = arith.constant 0 : index
    %c0_82 = arith.constant 0 : index
    %82 = vector.load %arg8[%c0_81, %c0_82] : memref<72x256xf32, #tpu.memory_space<vmem>>, vector<72x256xf32>
    %cst_83 = arith.constant dense<0.000000e+00> : vector<8x256xf32>
    %83 = tpu.matmul %81, %82, %cst_83 {dimension_numbers = #tpu.dot_dimension_numbers<[1], [0], [0], [1], [0, 0, 1, 1], [], []>} : vector<8x72xf32>, vector<72x256xf32>, vector<8x256xf32> -> vector<8x256xf32>
    %c1_84 = arith.constant 1 : index
    %c0_85 = arith.constant 0 : index
    %c0_86 = arith.constant 0 : index
    %84 = vector.load %arg4[%c1_84, %c0_85, %c0_86] : memref<5x8x1xf32, #tpu.memory_space<vmem>>, vector<1x8x1xf32>
    %85 = vector.shape_cast %84 : vector<1x8x1xf32> to vector<8x1xf32>
    %86 = vector.broadcast %85 : vector<8x1xf32> to vector<8x256xf32>
    %87 = arith.addf %83, %86 : vector<8x256xf32>
    %c0_87 = arith.constant 0 : index
    %c0_88 = arith.constant 0 : index
    %c0_89 = arith.constant 0 : index
    %88 = vector.load %arg1[%c0_87, %c0_88, %c0_89] : memref<1x8x256xf32, #tpu.memory_space<vmem>>, vector<1x8x256xf32>
    %89 = vector.shape_cast %88 : vector<1x8x256xf32> to vector<8x256xf32>
    %90 = arith.addf %87, %89 : vector<8x256xf32>
    %cst_90 = arith.constant 0.000000e+00 : f32
    %91 = vector.broadcast %cst_90 : f32 to vector<8x256xf32>
    %92 = arith.maximumf %90, %91 : vector<8x256xf32>
    %c0_91 = arith.constant 0 : index
    %c128_92 = arith.constant 128 : index
    %93 = vector.load %arg7[%c0_91, %c128_92] : memref<8x512xf32, #tpu.memory_space<vmem>>, vector<8x256xf32>
    tpu.vector_store %arg7[%c0_91, %c128_92], %92 {strides = array<i32>} : memref<8x512xf32, #tpu.memory_space<vmem>>, vector<8x256xf32>,
    %c0_93 = arith.constant 0 : index
    %c111_94 = arith.constant 111 : index
    %94 = vector.load %arg7[%c0_93, %c111_94] : memref<8x512xf32, #tpu.memory_space<vmem>>, vector<8x256xf32>
    %95 = vector.broadcast %4 : vector<1x256xf32> to vector<8x256xf32>
    %96 = arith.mulf %94, %95 : vector<8x256xf32>
    %c0_95 = arith.constant 0 : index
    %c0_96 = arith.constant 0 : index
    %97 = vector.load %arg8[%c0_95, %c0_96] : memref<72x256xf32, #tpu.memory_space<vmem>>, vector<8x256xf32>
    tpu.vector_store %arg8[%c0_95, %c0_96], %96 {strides = array<i32>} : memref<72x256xf32, #tpu.memory_space<vmem>>, vector<8x256xf32>,
    %c0_97 = arith.constant 0 : index
    %c112_98 = arith.constant 112 : index
    %98 = vector.load %arg7[%c0_97, %c112_98] : memref<8x512xf32, #tpu.memory_space<vmem>>, vector<8x256xf32>
    %c8_99 = arith.constant 8 : index
    %c0_100 = arith.constant 0 : index
    %99 = vector.load %arg8[%c8_99, %c0_100] : memref<72x256xf32, #tpu.memory_space<vmem>>, vector<8x256xf32>
    tpu.vector_store %arg8[%c8_99, %c0_100], %98 {strides = array<i32>} : memref<72x256xf32, #tpu.memory_space<vmem>>, vector<8x256xf32>,
    %c0_101 = arith.constant 0 : index
    %c113_102 = arith.constant 113 : index
    %100 = vector.load %arg7[%c0_101, %c113_102] : memref<8x512xf32, #tpu.memory_space<vmem>>, vector<8x256xf32>
    %101 = vector.broadcast %5 : vector<1x256xf32> to vector<8x256xf32>
    %102 = arith.mulf %100, %101 : vector<8x256xf32>
    %c16_103 = arith.constant 16 : index
    %c0_104 = arith.constant 0 : index
    %103 = vector.load %arg8[%c16_103, %c0_104] : memref<72x256xf32, #tpu.memory_space<vmem>>, vector<8x256xf32>
    tpu.vector_store %arg8[%c16_103, %c0_104], %102 {strides = array<i32>} : memref<72x256xf32, #tpu.memory_space<vmem>>, vector<8x256xf32>,
    %c0_105 = arith.constant 0 : index
    %c127_106 = arith.constant 127 : index
    %104 = vector.load %arg7[%c0_105, %c127_106] : memref<8x512xf32, #tpu.memory_space<vmem>>, vector<8x256xf32>
    %105 = vector.broadcast %4 : vector<1x256xf32> to vector<8x256xf32>
    %106 = arith.mulf %104, %105 : vector<8x256xf32>
    %c24_107 = arith.constant 24 : index
    %c0_108 = arith.constant 0 : index
    %107 = vector.load %arg8[%c24_107, %c0_108] : memref<72x256xf32, #tpu.memory_space<vmem>>, vector<8x256xf32>
    tpu.vector_store %arg8[%c24_107, %c0_108], %106 {strides = array<i32>} : memref<72x256xf32, #tpu.memory_space<vmem>>, vector<8x256xf32>,
    %c0_109 = arith.constant 0 : index
    %c128_110 = arith.constant 128 : index
    %108 = vector.load %arg7[%c0_109, %c128_110] : memref<8x512xf32, #tpu.memory_space<vmem>>, vector<8x256xf32>
    %c32_111 = arith.constant 32 : index
    %c0_112 = arith.constant 0 : index
    %109 = vector.load %arg8[%c32_111, %c0_112] : memref<72x256xf32, #tpu.memory_space<vmem>>, vector<8x256xf32>
    tpu.vector_store %arg8[%c32_111, %c0_112], %108 {strides = array<i32>} : memref<72x256xf32, #tpu.memory_space<vmem>>, vector<8x256xf32>,
    %c0_113 = arith.constant 0 : index
    %c129_114 = arith.constant 129 : index
    %110 = vector.load %arg7[%c0_113, %c129_114] : memref<8x512xf32, #tpu.memory_space<vmem>>, vector<8x256xf32>
    %111 = vector.broadcast %5 : vector<1x256xf32> to vector<8x256xf32>
    %112 = arith.mulf %110, %111 : vector<8x256xf32>
    %c40_115 = arith.constant 40 : index
    %c0_116 = arith.constant 0 : index
    %113 = vector.load %arg8[%c40_115, %c0_116] : memref<72x256xf32, #tpu.memory_space<vmem>>, vector<8x256xf32>
    tpu.vector_store %arg8[%c40_115, %c0_116], %112 {strides = array<i32>} : memref<72x256xf32, #tpu.memory_space<vmem>>, vector<8x256xf32>,
    %c0_117 = arith.constant 0 : index
    %c143_118 = arith.constant 143 : index
    %114 = vector.load %arg7[%c0_117, %c143_118] : memref<8x512xf32, #tpu.memory_space<vmem>>, vector<8x256xf32>
    %115 = vector.broadcast %4 : vector<1x256xf32> to vector<8x256xf32>
    %116 = arith.mulf %114, %115 : vector<8x256xf32>
    %c48_119 = arith.constant 48 : index
    %c0_120 = arith.constant 0 : index
    %117 = vector.load %arg8[%c48_119, %c0_120] : memref<72x256xf32, #tpu.memory_space<vmem>>, vector<8x256xf32>
    tpu.vector_store %arg8[%c48_119, %c0_120], %116 {strides = array<i32>} : memref<72x256xf32, #tpu.memory_space<vmem>>, vector<8x256xf32>,
    %c0_121 = arith.constant 0 : index
    %c144_122 = arith.constant 144 : index
    %118 = vector.load %arg7[%c0_121, %c144_122] : memref<8x512xf32, #tpu.memory_space<vmem>>, vector<8x256xf32>
    %c56_123 = arith.constant 56 : index
    %c0_124 = arith.constant 0 : index
    %119 = vector.load %arg8[%c56_123, %c0_124] : memref<72x256xf32, #tpu.memory_space<vmem>>, vector<8x256xf32>
    tpu.vector_store %arg8[%c56_123, %c0_124], %118 {strides = array<i32>} : memref<72x256xf32, #tpu.memory_space<vmem>>, vector<8x256xf32>,
    %c0_125 = arith.constant 0 : index
    %c145_126 = arith.constant 145 : index
    %120 = vector.load %arg7[%c0_125, %c145_126] : memref<8x512xf32, #tpu.memory_space<vmem>>, vector<8x256xf32>
    %121 = vector.broadcast %5 : vector<1x256xf32> to vector<8x256xf32>
    %122 = arith.mulf %120, %121 : vector<8x256xf32>
    %c64_127 = arith.constant 64 : index
    %c0_128 = arith.constant 0 : index
    %123 = vector.load %arg8[%c64_127, %c0_128] : memref<72x256xf32, #tpu.memory_space<vmem>>, vector<8x256xf32>
    tpu.vector_store %arg8[%c64_127, %c0_128], %122 {strides = array<i32>} : memref<72x256xf32, #tpu.memory_space<vmem>>, vector<8x256xf32>,
    %c2 = arith.constant 2 : index
    %c0_129 = arith.constant 0 : index
    %c0_130 = arith.constant 0 : index
    %124 = vector.load %arg2[%c2, %c0_129, %c0_130] : memref<4x8x72xf32, #tpu.memory_space<vmem>>, vector<1x8x72xf32>
    %125 = vector.shape_cast %124 : vector<1x8x72xf32> to vector<8x72xf32>
    %c0_131 = arith.constant 0 : index
    %c0_132 = arith.constant 0 : index
    %126 = vector.load %arg8[%c0_131, %c0_132] : memref<72x256xf32, #tpu.memory_space<vmem>>, vector<72x256xf32>
    %cst_133 = arith.constant dense<0.000000e+00> : vector<8x256xf32>
    %127 = tpu.matmul %125, %126, %cst_133 {dimension_numbers = #tpu.dot_dimension_numbers<[1], [0], [0], [1], [0, 0, 1, 1], [], []>} : vector<8x72xf32>, vector<72x256xf32>, vector<8x256xf32> -> vector<8x256xf32>
    %c2_134 = arith.constant 2 : index
    %c0_135 = arith.constant 0 : index
    %c0_136 = arith.constant 0 : index
    %128 = vector.load %arg4[%c2_134, %c0_135, %c0_136] : memref<5x8x1xf32, #tpu.memory_space<vmem>>, vector<1x8x1xf32>
    %129 = vector.shape_cast %128 : vector<1x8x1xf32> to vector<8x1xf32>
    %130 = vector.broadcast %129 : vector<8x1xf32> to vector<8x256xf32>
    %131 = arith.addf %127, %130 : vector<8x256xf32>
    %cst_137 = arith.constant 0.000000e+00 : f32
    %132 = vector.broadcast %cst_137 : f32 to vector<8x256xf32>
    %133 = arith.maximumf %131, %132 : vector<8x256xf32>
    %c0_138 = arith.constant 0 : index
    %c128_139 = arith.constant 128 : index
    %134 = vector.load %arg7[%c0_138, %c128_139] : memref<8x512xf32, #tpu.memory_space<vmem>>, vector<8x256xf32>
    tpu.vector_store %arg7[%c0_138, %c128_139], %133 {strides = array<i32>} : memref<8x512xf32, #tpu.memory_space<vmem>>, vector<8x256xf32>,
    %c0_140 = arith.constant 0 : index
    %c111_141 = arith.constant 111 : index
    %135 = vector.load %arg7[%c0_140, %c111_141] : memref<8x512xf32, #tpu.memory_space<vmem>>, vector<8x256xf32>
    %136 = vector.broadcast %4 : vector<1x256xf32> to vector<8x256xf32>
    %137 = arith.mulf %135, %136 : vector<8x256xf32>
    %c0_142 = arith.constant 0 : index
    %c0_143 = arith.constant 0 : index
    %138 = vector.load %arg8[%c0_142, %c0_143] : memref<72x256xf32, #tpu.memory_space<vmem>>, vector<8x256xf32>
    tpu.vector_store %arg8[%c0_142, %c0_143], %137 {strides = array<i32>} : memref<72x256xf32, #tpu.memory_space<vmem>>, vector<8x256xf32>,
    %c0_144 = arith.constant 0 : index
    %c112_145 = arith.constant 112 : index
    %139 = vector.load %arg7[%c0_144, %c112_145] : memref<8x512xf32, #tpu.memory_space<vmem>>, vector<8x256xf32>
    %c8_146 = arith.constant 8 : index
    %c0_147 = arith.constant 0 : index
    %140 = vector.load %arg8[%c8_146, %c0_147] : memref<72x256xf32, #tpu.memory_space<vmem>>, vector<8x256xf32>
    tpu.vector_store %arg8[%c8_146, %c0_147], %139 {strides = array<i32>} : memref<72x256xf32, #tpu.memory_space<vmem>>, vector<8x256xf32>,
    %c0_148 = arith.constant 0 : index
    %c113_149 = arith.constant 113 : index
    %141 = vector.load %arg7[%c0_148, %c113_149] : memref<8x512xf32, #tpu.memory_space<vmem>>, vector<8x256xf32>
    %142 = vector.broadcast %5 : vector<1x256xf32> to vector<8x256xf32>
    %143 = arith.mulf %141, %142 : vector<8x256xf32>
    %c16_150 = arith.constant 16 : index
    %c0_151 = arith.constant 0 : index
    %144 = vector.load %arg8[%c16_150, %c0_151] : memref<72x256xf32, #tpu.memory_space<vmem>>, vector<8x256xf32>
    tpu.vector_store %arg8[%c16_150, %c0_151], %143 {strides = array<i32>} : memref<72x256xf32, #tpu.memory_space<vmem>>, vector<8x256xf32>,
    %c0_152 = arith.constant 0 : index
    %c127_153 = arith.constant 127 : index
    %145 = vector.load %arg7[%c0_152, %c127_153] : memref<8x512xf32, #tpu.memory_space<vmem>>, vector<8x256xf32>
    %146 = vector.broadcast %4 : vector<1x256xf32> to vector<8x256xf32>
    %147 = arith.mulf %145, %146 : vector<8x256xf32>
    %c24_154 = arith.constant 24 : index
    %c0_155 = arith.constant 0 : index
    %148 = vector.load %arg8[%c24_154, %c0_155] : memref<72x256xf32, #tpu.memory_space<vmem>>, vector<8x256xf32>
    tpu.vector_store %arg8[%c24_154, %c0_155], %147 {strides = array<i32>} : memref<72x256xf32, #tpu.memory_space<vmem>>, vector<8x256xf32>,
    %c0_156 = arith.constant 0 : index
    %c128_157 = arith.constant 128 : index
    %149 = vector.load %arg7[%c0_156, %c128_157] : memref<8x512xf32, #tpu.memory_space<vmem>>, vector<8x256xf32>
    %c32_158 = arith.constant 32 : index
    %c0_159 = arith.constant 0 : index
    %150 = vector.load %arg8[%c32_158, %c0_159] : memref<72x256xf32, #tpu.memory_space<vmem>>, vector<8x256xf32>
    tpu.vector_store %arg8[%c32_158, %c0_159], %149 {strides = array<i32>} : memref<72x256xf32, #tpu.memory_space<vmem>>, vector<8x256xf32>,
    %c0_160 = arith.constant 0 : index
    %c129_161 = arith.constant 129 : index
    %151 = vector.load %arg7[%c0_160, %c129_161] : memref<8x512xf32, #tpu.memory_space<vmem>>, vector<8x256xf32>
    %152 = vector.broadcast %5 : vector<1x256xf32> to vector<8x256xf32>
    %153 = arith.mulf %151, %152 : vector<8x256xf32>
    %c40_162 = arith.constant 40 : index
    %c0_163 = arith.constant 0 : index
    %154 = vector.load %arg8[%c40_162, %c0_163] : memref<72x256xf32, #tpu.memory_space<vmem>>, vector<8x256xf32>
    tpu.vector_store %arg8[%c40_162, %c0_163], %153 {strides = array<i32>} : memref<72x256xf32, #tpu.memory_space<vmem>>, vector<8x256xf32>,
    %c0_164 = arith.constant 0 : index
    %c143_165 = arith.constant 143 : index
    %155 = vector.load %arg7[%c0_164, %c143_165] : memref<8x512xf32, #tpu.memory_space<vmem>>, vector<8x256xf32>
    %156 = vector.broadcast %4 : vector<1x256xf32> to vector<8x256xf32>
    %157 = arith.mulf %155, %156 : vector<8x256xf32>
    %c48_166 = arith.constant 48 : index
    %c0_167 = arith.constant 0 : index
    %158 = vector.load %arg8[%c48_166, %c0_167] : memref<72x256xf32, #tpu.memory_space<vmem>>, vector<8x256xf32>
    tpu.vector_store %arg8[%c48_166, %c0_167], %157 {strides = array<i32>} : memref<72x256xf32, #tpu.memory_space<vmem>>, vector<8x256xf32>,
    %c0_168 = arith.constant 0 : index
    %c144_169 = arith.constant 144 : index
    %159 = vector.load %arg7[%c0_168, %c144_169] : memref<8x512xf32, #tpu.memory_space<vmem>>, vector<8x256xf32>
    %c56_170 = arith.constant 56 : index
    %c0_171 = arith.constant 0 : index
    %160 = vector.load %arg8[%c56_170, %c0_171] : memref<72x256xf32, #tpu.memory_space<vmem>>, vector<8x256xf32>
    tpu.vector_store %arg8[%c56_170, %c0_171], %159 {strides = array<i32>} : memref<72x256xf32, #tpu.memory_space<vmem>>, vector<8x256xf32>,
    %c0_172 = arith.constant 0 : index
    %c145_173 = arith.constant 145 : index
    %161 = vector.load %arg7[%c0_172, %c145_173] : memref<8x512xf32, #tpu.memory_space<vmem>>, vector<8x256xf32>
    %162 = vector.broadcast %5 : vector<1x256xf32> to vector<8x256xf32>
    %163 = arith.mulf %161, %162 : vector<8x256xf32>
    %c64_174 = arith.constant 64 : index
    %c0_175 = arith.constant 0 : index
    %164 = vector.load %arg8[%c64_174, %c0_175] : memref<72x256xf32, #tpu.memory_space<vmem>>, vector<8x256xf32>
    tpu.vector_store %arg8[%c64_174, %c0_175], %163 {strides = array<i32>} : memref<72x256xf32, #tpu.memory_space<vmem>>, vector<8x256xf32>,
    %c3 = arith.constant 3 : index
    %c0_176 = arith.constant 0 : index
    %c0_177 = arith.constant 0 : index
    %165 = vector.load %arg2[%c3, %c0_176, %c0_177] : memref<4x8x72xf32, #tpu.memory_space<vmem>>, vector<1x8x72xf32>
    %166 = vector.shape_cast %165 : vector<1x8x72xf32> to vector<8x72xf32>
    %c0_178 = arith.constant 0 : index
    %c0_179 = arith.constant 0 : index
    %167 = vector.load %arg8[%c0_178, %c0_179] : memref<72x256xf32, #tpu.memory_space<vmem>>, vector<72x256xf32>
    %cst_180 = arith.constant dense<0.000000e+00> : vector<8x256xf32>
    %168 = tpu.matmul %166, %167, %cst_180 {dimension_numbers = #tpu.dot_dimension_numbers<[1], [0], [0], [1], [0, 0, 1, 1], [], []>} : vector<8x72xf32>, vector<72x256xf32>, vector<8x256xf32> -> vector<8x256xf32>
    %c3_181 = arith.constant 3 : index
    %c0_182 = arith.constant 0 : index
    %c0_183 = arith.constant 0 : index
    %169 = vector.load %arg4[%c3_181, %c0_182, %c0_183] : memref<5x8x1xf32, #tpu.memory_space<vmem>>, vector<1x8x1xf32>
    %170 = vector.shape_cast %169 : vector<1x8x1xf32> to vector<8x1xf32>
    %171 = vector.broadcast %170 : vector<8x1xf32> to vector<8x256xf32>
    %172 = arith.addf %168, %171 : vector<8x256xf32>
    %173 = arith.addf %172, %92 : vector<8x256xf32>
    %cst_184 = arith.constant 0.000000e+00 : f32
    %174 = vector.broadcast %cst_184 : f32 to vector<8x256xf32>
    %175 = arith.maximumf %173, %174 : vector<8x256xf32>
    %c0_185 = arith.constant 0 : index
    %c0_186 = arith.constant 0 : index
    %176 = vector.load %arg8[%c0_185, %c0_186] : memref<72x256xf32, #tpu.memory_space<vmem>>, vector<8x256xf32>
    tpu.vector_store %arg8[%c0_185, %c0_186], %175 {strides = array<i32>} : memref<72x256xf32, #tpu.memory_space<vmem>>, vector<8x256xf32>,
    %c8_187 = arith.constant 8 : index
    %c0_188 = arith.constant 0 : index
    %177 = vector.load %arg8[%c8_187, %c0_188] : memref<72x256xf32, #tpu.memory_space<vmem>>, vector<8x256xf32>
    tpu.vector_store %arg8[%c8_187, %c0_188], %92 {strides = array<i32>} : memref<72x256xf32, #tpu.memory_space<vmem>>, vector<8x256xf32>,
    %c0_189 = arith.constant 0 : index
    %c0_190 = arith.constant 0 : index
    %178 = vector.load %arg3[%c0_189, %c0_190] : memref<8x16xf32, #tpu.memory_space<vmem>>, vector<8x16xf32>
    %c0_191 = arith.constant 0 : index
    %c0_192 = arith.constant 0 : index
    %179 = vector.load %arg8[%c0_191, %c0_192] : memref<72x256xf32, #tpu.memory_space<vmem>>, vector<16x256xf32>
    %cst_193 = arith.constant dense<0.000000e+00> : vector<8x256xf32>
    %180 = tpu.matmul %178, %179, %cst_193 {dimension_numbers = #tpu.dot_dimension_numbers<[1], [0], [0], [1], [0, 0, 1, 1], [], []>} : vector<8x16xf32>, vector<16x256xf32>, vector<8x256xf32> -> vector<8x256xf32>
    %c4 = arith.constant 4 : index
    %c0_194 = arith.constant 0 : index
    %c0_195 = arith.constant 0 : index
    %181 = vector.load %arg4[%c4, %c0_194, %c0_195] : memref<5x8x1xf32, #tpu.memory_space<vmem>>, vector<1x8x1xf32>
    %182 = vector.shape_cast %181 : vector<1x8x1xf32> to vector<8x1xf32>
    %183 = vector.broadcast %182 : vector<8x1xf32> to vector<8x256xf32>
    %184 = arith.addf %180, %183 : vector<8x256xf32>
    %cst_196 = arith.constant 0.000000e+00 : f32
    %185 = vector.broadcast %cst_196 : f32 to vector<8x256xf32>
    %186 = arith.maximumf %184, %185 : vector<8x256xf32>
    %c0_197 = arith.constant 0 : index
    %c0_198 = arith.constant 0 : index
    %c0_199 = arith.constant 0 : index
    %187 = vector.load %arg6[%c0_197, %c0_198, %c0_199] : memref<1x8x256xf32, #tpu.memory_space<vmem>>, vector<1x8x256xf32>
    %188 = vector.shape_cast %187 : vector<1x8x256xf32> to vector<8x256xf32>
    %189 = vector.shape_cast %186 : vector<8x256xf32> to vector<1x8x256xf32>
    tpu.vector_store %arg6[%c0_197, %c0_198, %c0_199], %189 {strides = array<i32>} : memref<1x8x256xf32, #tpu.memory_space<vmem>>, vector<1x8x256xf32>,
    return
  }
  func.func @transform_0(%arg0: i32) -> (i32, i32, i32) {
    %c0_i32 = arith.constant 0 : i32
    %c0_i32_0 = arith.constant 0 : i32
    %c0_i32_1 = arith.constant 0 : i32
    return %arg0, %c0_i32, %c0_i32_0 : i32, i32, i32
  }
  func.func @transform_1(%arg0: i32) -> (i32, i32, i32) {
    %c0_i32 = arith.constant 0 : i32
    %c0_i32_0 = arith.constant 0 : i32
    %c0_i32_1 = arith.constant 0 : i32
    %c0_i32_2 = arith.constant 0 : i32
    return %c0_i32, %c0_i32_0, %c0_i32_1 : i32, i32, i32
  }
  func.func @transform_2(%arg0: i32) -> (i32, i32) {
    %c0_i32 = arith.constant 0 : i32
    %c0_i32_0 = arith.constant 0 : i32
    %c0_i32_1 = arith.constant 0 : i32
    return %c0_i32, %c0_i32_0 : i32, i32
  }
  func.func @transform_3(%arg0: i32) -> (i32, i32, i32) {
    %c0_i32 = arith.constant 0 : i32
    %c0_i32_0 = arith.constant 0 : i32
    %c0_i32_1 = arith.constant 0 : i32
    %c0_i32_2 = arith.constant 0 : i32
    return %c0_i32, %c0_i32_0, %c0_i32_1 : i32, i32, i32
  }
  func.func @transform_4(%arg0: i32) -> (i32, i32) {
    %c0_i32 = arith.constant 0 : i32
    %c0_i32_0 = arith.constant 0 : i32
    %c0_i32_1 = arith.constant 0 : i32
    return %c0_i32, %c0_i32_0 : i32, i32
  }
  func.func @transform_5(%arg0: i32) -> (i32, i32, i32) {
    %c0_i32 = arith.constant 0 : i32
    %c0_i32_0 = arith.constant 0 : i32
    %c0_i32_1 = arith.constant 0 : i32
    return %arg0, %c0_i32, %c0_i32_0 : i32, i32, i32
  }
}

</mosaic_0001>

<bundles_post_ra>
// kernel: tpu_custom_call.1
= control target key start
LH: loop header
LB: loop body
LE: loop exit
PB: predicated region body
PF: predicated region fallthrough
CT: control target
= control target key end

     0   :  { %10 = vsyncpa [#allocation5], 0  ;;  %s2561_s0 = inlined_call_operand.vmem [shape: f32[2,8,256], index: 0, kind: input, shape index: {}]   ;;  %s2562_s1 = inlined_call_operand.hbm [shape: f32[4,8,72], index: 1, kind: input, shape index: {}]   ;;  %s2563_s2 = inlined_call_operand.vmem [shape: f32[8,16], index: 2, kind: input, shape index: {}]   ;;  %s2564_s3 = inlined_call_operand.vmem [shape: f32[5,8,1], index: 3, kind: input, shape index: {}]   ;;  %s2565_s4 = inlined_call_operand.vmem [shape: f32[2,256], index: 4, kind: input, shape index: {}]   ;;  %s2566_s5 = inlined_call_operand.hbm [shape: f32[2,8,256], index: 5, kind: output, shape index: {}]  }
   0x1   :  { %11 = vsyncpa [#allocation6], 0 }
   0x2   :  { %13 = vsyncpa [#allocation6 + $0x1], 0  ;;  %s2026_s18 = smov 0   ;;  %s2028_s19 = smov 0  }
   0x3   :  { %s2030_s20 = smov 0   ;;  %s2032_s21 = smov 0  }
   0x4 LB: > { %s2047_s22 = sadd.s32 4294967295, %s1980_s21   ;;  %s1588_s23 = sadd.s32 4294967294, %s1980_s21   ;;  %s1980_s21 = sphi %s2032_s21, %s2582_s21   ;;  %s1976_s20 = sphi %s2030_s20, %s2581_s20   ;;  %s1972_s19 = sphi %s2028_s19, %s2580_s19   ;;  %s1968_s18 = sphi %s2026_s18, %s2579_s18  }
   0x5   : > { %s2051_s24 = sadd.s32 1, %s1980_s21   ;;  %s136_s25 = sadd.s32 1, %s1976_s20 }
   0x6   : > { %s133_s26 = ssub.s32 %s1980_s21, %s2051_s24  ;;  %p146_p0 = scmp.ne.s32.totalorder %s1976_s20, %s1972_s19 }
   0x7   : > { %p134_p1 = scmp.eq.s32.totalorder %s133_s26, 0  ;;  %p147_p2 = scmp.eq.s32.totalorder %s2047_s22, 1 }
   0x8   : > { %p152_p3 = scmp.ne.s32.totalorder %s1972_s19, %s1968_s18  ;;  %p153_p4 = scmp.eq.s32.totalorder %s1588_s23, 1 }
   0x9   : > { %s2062_s27 = scalar_select %p134_p1, %s1976_s20, %s136_s25  }
   0xa   : > { %p2064_p5 = por %p147_p2, %p146_p0  ;;  %p2068_p6 = por %p153_p4, %p152_p3 }
   0xb   : > { %p1589_p7 = scmp.ge.s32.totalorder %s1980_s21, 1  ;;  %p160_p8 = scmp.lt.s32.totalorder %s1980_s21, 3 }
   0xc   : > { %s2570_s28 = scalar_select %p2064_p5, 1, 0 }
   0xd   : > { %s2571_s29 = scalar_select %p2068_p6, 1, 0 }
   0xe   : > { %p2567_p9 = scmp.eq.s32.totalorder %s2047_s22, 0  ;;  %p2075_p10 = pnand %p1589_p7, %p160_p8 }
   0xf   : > { %s1982_s6 = smov [#allocation4]   ;;  %s1886_s11 = scalar_lea.hbm %s2562_s1, 512 }
  0x10   : > { %s2572_s30 = scalar_select %p2075_p10, 1, 0 }
  0x11   : > { %s172_s7 = sshll.u32 %s1982_s6, 4  ;;  %p1688_p11 = pneg %p2075_p10  ;;  %s173_s7 = int_to_ptr.vmem [resolvable:$true] %s172_s7 }
  0x12   : > { %p1887_p13 = scmp.ne.s32.totalorder %s2562_s1, %s1886_s11  ;;  %p1893_p3 = scmp.lt.u32.totalorder %s1886_s11, %s2562_s1 }
  0x13   : > { %p2083_p12 = pnand %p2567_p9, %p1688_p11 }
  0x15   : > { %p1888_p0 = pneg %p2083_p12 }
  0x17   : > { %p1889_p1 = pnand %p1888_p0, %p1887_p13 }
  0x19   : > { %p1890_p2 = pneg %p1889_p1 }
  0x1b   : > { %p1895_p4 = pnand %p1893_p3, %p1890_p2 }
  0x1d   : > { %1898 = shalt.err (!%p1895_p4)
}
  0x1e   : > { %s1899_s16 = scalar_lea.vmem %s173_s7, 512  ;;  %p1907_p9 = scmp.lt.s32.totalorder %s173_s7, %s173_s7 }
  0x1f   : > { %p1900_p7 = scmp.ne.s32.totalorder %s173_s7, %s1899_s16  ;;  %p1908_p6 = scmp.lt.s32.totalorder %s1899_s16, %s1899_s16 }
  0x21   : > { %p1902_p8 = pnand %p1900_p7, %p1888_p0  ;;  %p1909_p5 = por %p1908_p6, %p1907_p9 }
  0x23   : > { %p1903_p11 = pneg %p1902_p8 }
  0x25   : > { %p1910_p10 = pnand %p1909_p5, %p1903_p11 }
  0x27   : > { %1913 = shalt.err (!%p1910_p10)
}
  0x28   : > { %s1983_s17 = smov 128   ;;  %s1984_s23 = smov 8  }
  0x29   : > { %1691 = dma.hbm_to_vmem [thread:$0]  (!%p2083_p12), %s2562_s1, 512, %s173_s7, [#allocation5], %s1983_s17, %s1983_s17, %s1984_s23  }
  0x2a   : > { %p2574_p13 = scmp.ne.s32.totalorder %s2572_s30, 0 }
  0x2b   : > { %p2575_p1 = scmp.eq.s32.totalorder (!%p2574_p13), %s2047_s22, 0 }
  0x2c   : > { %205 = sbr.rel (%p2574_p13) target bundleno = 1874 (0x752), region = 40 }
  0x33   : > { %1959 = dma.done.wait (%p2575_p1), [#allocation5], 512   ;;  %p2576_p0 = pmov %p2575_p1 }
  0x34   : > { %v251_v0 = vlaneseq  ;;  %v1985_v2 = vmov 0.0   ;;  %v1597_v5 = vld [vmem:[%s2565_s4 + $0x1] ss:$2 sm:$0x3]  ;;  %s1986_s9 = smov 113   ;;  %s1987_s10 = smov 111  }
  0x35   : > { %1961 = vsyncadd (%p2576_p0), [#allocation5], 4294966784  ;;  %580 = vmatprep.mubr.f32.mxu0 %v1985_v2  ;;  %851 = vmatprep.mubr.f32.mxu1 %v1985_v2  ;;  %v240_v6 = vld [vmem:[%s2565_s4] ss:$2 sm:$0x3]  ;;  %p233_p5 = scmp.lt.s32.totalorder %s2047_s22, 1 }
  0x36   : > { %v252_v1 = vshrl.u32 %v251_v0, 7  ;;  %s1988_s12 = smov 127   ;;  %s1989_s14 = smov 1   ;;  %v1991_v13 = vmov 0   ;;  %vm263_vm0 = vcmask 908288   ;;  %vm322_vm1 = vcmask 924672  }
  0x37   : > { %s234_s11 = scalar_select %p233_p5, %s2047_s22, 1  ;;  %1779 = vset.pattern.permute.xlu1 %v1991_v13  ;;  %1885 = vset.pattern.permute.xlu0 %v1991_v13  ;;  %vm353_vm2 = vcmask 1039360   ;;  %vm370_vm3 = vcmask 7168   ;;  %vm339_vm4 = vcmask 121856   ;;  %vm280_vm5 = vcmask 138240   ;;  %v506_v56 = vld [vmem:[%s2564_s3] sm:$0xff] }
  0x38   : > { %v253_v3 = vsub.s32 0, %v252_v1  ;;  %v257_v4 = vsub.s32 1, %v252_v1  ;;  %s1990_s23 = smov 15   ;;  %s1992_s25 = smov 17   ;;  %vm299_vm6 = vcmask 130048   ;;  %vm451_vm7 = vcmask 916480  }
  0x39   : > { %s1612_s13 = sshll.u32 %s234_s11, 4  ;;  %s1993_s26 = smov 16   ;;  %vm512_vm8 = vcmask 588800  }
  0x3a   : > { %v313_v7 = vrot.slane %v1597_v5, %v253_v3  ;;  %v254_v8 = vrot.slane %v240_v6, %v253_v3  ;;  %v317_v9 = vrot.slane %v1597_v5, %v257_v4  ;;  %v258_v10 = vrot.slane %v240_v6, %v257_v4  ;;  %s237_s17 = scalar_lea.vmem %s2561_s0, %s1612_s13  ;;  %s1994_s6 = smov 112  }
  0x3b   : > { %v2132_v11 = vld [vmem:[%s237_s17] sm:$0xff]  ;;  %v2134_v12 = vld [vmem:[%s237_s17 + $0x8] sm:$0xff]  ;;  %p2577_p9 = scmp.ne.s32.totalorder %s2570_s28, 0 }
  0x3c   : > { %318 = vrot.lane.b32.xlu1 %v313_v7, %s1986_s9  ;;  %259 = vrot.lane.b32.xlu0 %v254_v8, %s1987_s10  ;;  %v1744_v14 = vpack.i.bf16 %v2134_v12, %v2132_v11  ;;  %v1764_v46 = vpack.i.bf16 %v1985_v2, %v2134_v12 }
  0x40   : > { %320 = vrot.lane.b32.xlu1 %v317_v9, %s1986_s9  ;;  %261 = vrot.lane.b32.xlu0 %v258_v10, %s1987_s10 }
  0x44   : > { %351 = vrot.lane.b32.xlu1 %v258_v10, %s1988_s12  ;;  %349 = vrot.lane.b32.xlu0 %v254_v8, %s1988_s12 }
  0x48   : > { %386 = vrot.lane.b32.xlu1 %v317_v9, %s1989_s14  ;;  %384 = vrot.lane.b32.xlu0 %v313_v7, %s1989_s14 }
  0x4c   : > { %415 = vrot.lane.b32.xlu1 %v258_v10, %s1990_s23  ;;  %413 = vrot.lane.b32.xlu0 %v254_v8, %s1990_s23 }
  0x50   : > { %463 = vrot.lane.b32.xlu1 %v317_v9, %s1992_s25  ;;  %461 = vrot.lane.b32.xlu0 %v313_v7, %s1992_s25 }
  0x54   : > { %1745 = vrot.lane.b32.xlu1 %v1744_v14, %s1993_s26 }
  0x58   : > { %293 = vrot.lane.b32.xlu1 %v1985_v2, %s1993_s26 }
  0xae   : > { %v319_v15 = vpop.permute.xlu1 %318  ;;  %v260_v16 = vpop.permute.xlu0 %259 }
  0xaf   : > { %v2143_v17 = vmul.f32 0.0, %v260_v16  ;;  %v2145_v18 = vmul.f32 0.0, %v319_v15 }
  0xb1   : > { %274 = vrot.lane.b32.xlu0 %v2143_v17, %s1992_s25 }
  0xb2   : > { %v2149_v19 = vpop.permute.xlu1 %320  ;;  %v2151_v20 = vpop.permute.xlu0 %261 }
  0xb3   : > { %v2155_v21 = vsel %vm263_vm0, %v260_v16, %v2151_v20  ;;  %v270_v22 = vmul.f32 %v2151_v20, %v2134_v12  ;;  %v2161_v23 = vsel %vm322_vm1, %v319_v15, %v2149_v19  ;;  %v329_v28 = vmul.f32 %v2149_v19, %v2134_v12 }
  0xb4   : > { %v269_v24 = vmul.f32 %v2155_v21, %v2132_v11  ;;  %v328_v31 = vmul.f32 %v2161_v23, %v2132_v11 }
  0xb5   : > { %333 = vrot.lane.b32.xlu0 %v2145_v18, %s1990_s23 }
  0xb6   : > { %v2167_v25 = vpop.permute.xlu1 %351  ;;  %v350_v26 = vpop.permute.xlu0 %349  ;;  %v1749_v27 = vpack.i.bf16 %v270_v22, %v269_v24  ;;  %v1754_v37 = vpack.i.bf16 %v329_v28, %v328_v31 }
  0xb7   : > { %v2173_v29 = vsel %vm353_vm2, %v350_v26, %v2167_v25  ;;  %v2175_v30 = vmul.f32 0.0, %v350_v26  ;;  %v360_v32 = vmul.f32 %v2167_v25, %v2134_v12 }
  0xb8   : > { %v359_v33 = vmul.f32 %v2173_v29, %v2132_v11 }
  0xb9   : > { %1750 = vrot.lane.b32.xlu0 %v1749_v27, %s1992_s25  ;;  %364 = vrot.lane.b32.xlu1 %v2175_v30, %s1989_s14 }
  0xba   : > { %v387_v34 = vpop.permute.xlu1 %386  ;;  %v2186_v35 = vpop.permute.xlu0 %384  ;;  %v1759_v36 = vpack.i.bf16 %v360_v32, %v359_v33 }
  0xbb   : > { %v2190_v38 = vsel %vm370_vm3, %v2186_v35, %v387_v34  ;;  %v2196_v41 = vmul.f32 0.0, %v387_v34  ;;  %v392_v42 = vmul.f32 %v2186_v35, %v2132_v11 }
  0xbc   : > { %v393_v44 = vmul.f32 %v2190_v38, %v2134_v12 }
  0xbd   : > { %1755 = vrot.lane.b32.xlu0 %v1754_v37, %s1990_s23  ;;  %1760 = vrot.lane.b32.xlu1 %v1759_v36, %s1989_s14 }
  0xbe   : > { %v416_v39 = vpop.permute.xlu1 %415  ;;  %v2194_v40 = vpop.permute.xlu0 %413  ;;  %v1769_v48 = vpack.i.bf16 %v2196_v41, %v393_v44 }
  0xbf   : > { %v421_v43 = vmul.f32 %v2194_v40, %v2132_v11  ;;  %v2206_v45 = vsel %vm339_vm4, %v2194_v40, %v416_v39  ;;  %v2212_v47 = vmul.f32 0.0, %v416_v39 }
  0xc0   : > { %v422_v50 = vmul.f32 %v2206_v45, %v2134_v12 }
  0xc1   : > { %398 = vrot.lane.b32.xlu1 %v392_v42, %s1988_s12  ;;  %427 = vrot.lane.b32.xlu0 %v421_v43, %s1986_s9 }
  0xc2   : > { %v464_v49 = vpop.permute.xlu1 %463  ;;  %v2217_v51 = vpop.permute.xlu0 %461  ;;  %v1774_v53 = vpack.i.bf16 %v2212_v47, %v422_v50 }
  0xc3   : > { %v2223_v52 = vsel %vm280_vm5, %v2217_v51, %v464_v49  ;;  %v2226_v54 = vmul.f32 0.0, %v464_v49  ;;  %v469_v57 = vmul.f32 %v2217_v51, %v2132_v11 }
  0xc4   : > { %v470_v55 = vmul.f32 %v2223_v52, %v2134_v12 }
  0xc5   : > { %1765 = vrot.lane.b32.xlu1 %v1764_v46, %s1994_s6  ;;  %1770 = vrot.lane.b32.xlu0 %v1769_v48, %s1988_s12 }
  0xc6   : > { %v1746_v58 = vpop.permute.xlu1 %1745 }
  0xc7   : > { %v1748_v62 = vunpack.i.h.bf16 %v1746_v58  ;;  %v1747_v63 = vunpack.i.l.bf16 %v1746_v58 }
  0xc9   : > { %445 = vrot.lane.b32.xlu1 %v2132_v11, %s1994_s6  ;;  %1775 = vrot.lane.b32.xlu0 %v1774_v53, %s1986_s9  ;;  %v301_v7 = vsel %vm299_vm6, %v1747_v63, %v1748_v62 }
  0xca   : > { %v294_v60 = vpop.permute.xlu1 %293 }
  0xcb   : > { %v300_v5 = vsel %vm299_vm6, %v294_v60, %v1747_v63 }
  0xcd   : > { %479 = vrot.lane.b32.xlu1 %v2226_v54, %s1987_s10  ;;  %477 = vrot.lane.b32.xlu0 %v470_v55, %s1987_s10 }
  0xd1   : > { %509 = vperm.xlu1 %1779, %v506_v56   ;;  %475 = vrot.lane.b32.xlu0 %v469_v57, %s1987_s10 }
  0xd5   : > { %618 = vrot.lane.b32.xlu1 %v1985_v2, %s1993_s26  ;;  %600 = vrot.lane.b32.xlu0 %v2143_v17, %s1992_s25 }
  0xd9   : > { %660 = vrot.lane.b32.xlu1 %v2175_v30, %s1989_s14  ;;  %639 = vrot.lane.b32.xlu0 %v2145_v18, %s1990_s23 }
 0x123   : > { %v275_v59 = vpop.permute.xlu0 %274 }
 0x127   : > { %v334_v61 = vpop.permute.xlu0 %333 }
 0x12b   : > { %v365_v0 = vpop.permute.xlu1 %364  ;;  %v1751_v1 = vpop.permute.xlu0 %1750 }
 0x12c   : > { %v1753_v3 = vunpack.i.h.bf16 %v1751_v1  ;;  %v1752_v4 = vunpack.i.l.bf16 %v1751_v1 }
 0x12e   : > { %v282_v6 = vsel %vm280_vm5, %v1752_v4, %v1753_v3  ;;  %v281_v8 = vsel %vm280_vm5, %v275_v59, %v1752_v4 }
 0x12f   : > { %v1761_v9 = vpop.permute.xlu1 %1760  ;;  %v1756_v10 = vpop.permute.xlu0 %1755  ;;  %v1614_v13 = vpack.c.bf16 %v301_v7, %v282_v6  ;;  %v1616_v14 = vpack.c.bf16 %v300_v5, %v281_v8  ;;  %v487_v7 = vld [vmem:[#allocation4] sm:$0xff] }
 0x130   : > { %v1763_v15 = vunpack.i.h.bf16 %v1761_v9  ;;  %v1762_v16 = vunpack.i.l.bf16 %v1761_v9  ;;  %v1758_v22 = vunpack.i.h.bf16 %v1756_v10  ;;  %v1757_v24 = vunpack.i.l.bf16 %v1756_v10 }
 0x131   : > { %1615 = vmatprep.subr.bf16.mxu0 %v1614_v13 }
 0x132   : > { %1617 = vmatpush1.bf16.msra.mxu0 %v1616_v14  ;;  %v341_v26 = vsel %vm339_vm4, %v1757_v24, %v1758_v22  ;;  %v372_v27 = vsel %vm370_vm3, %v1762_v16, %v1763_v15  ;;  %v340_v28 = vsel %vm339_vm4, %v334_v61, %v1757_v24  ;;  %v371_v31 = vsel %vm370_vm3, %v365_v0, %v1762_v16 }
 0x133   : > { %v399_v32 = vpop.permute.xlu1 %398  ;;  %v428_v33 = vpop.permute.xlu0 %427  ;;  %v1618_v34 = vpack.c.bf16 %v372_v27, %v341_v26  ;;  %v1620_v36 = vpack.c.bf16 %v371_v31, %v340_v28 }
 0x135   : > { %1619 = vmatprep.subr.bf16.mxu0 %v1618_v34 }
 0x136   : > { %1621 = vmatpush1.bf16.msra.mxu0 %v1620_v36 }
 0x137   : > { %v1766_v37 = vpop.permute.xlu1 %1765  ;;  %v1771_v39 = vpop.permute.xlu0 %1770 }
 0x138   : > { %v1768_v42 = vunpack.i.h.bf16 %v1766_v37  ;;  %v1767_v43 = vunpack.i.l.bf16 %v1766_v37  ;;  %v1773_v44 = vunpack.i.h.bf16 %v1771_v39  ;;  %v1772_v46 = vunpack.i.l.bf16 %v1771_v39 }
 0x13a   : > { %v405_v48 = vsel %vm353_vm2, %v1772_v46, %v1773_v44  ;;  %v404_v49 = vsel %vm353_vm2, %v399_v32, %v1772_v46  ;;  %v453_v60 = vsel %vm451_vm7, %v1767_v43, %v1768_v42 }
 0x13b   : > { %v446_v50 = vpop.permute.xlu1 %445  ;;  %v1776_v53 = vpop.permute.xlu0 %1775  ;;  %v1622_v55 = vpack.c.bf16 %v405_v48, %v2134_v12  ;;  %v1624_v56 = vpack.c.bf16 %v404_v49, %v2132_v11 }
 0x13c   : > { %v452_v57 = vsel %vm451_vm7, %v446_v50, %v1767_v43  ;;  %v1778_v58 = vunpack.i.h.bf16 %v1776_v53  ;;  %v1777_v59 = vunpack.i.l.bf16 %v1776_v53  ;;  %v1599_v50 = vld [vmem:[%s2564_s3 + $0x8] sm:$0xff] }
 0x13d   : > { %1623 = vmatprep.subr.bf16.mxu0 %v1622_v55 }
 0x13e   : > { %1625 = vmatpush1.bf16.msra.mxu0 %v1624_v56  ;;  %v434_v61 = vsel %vm322_vm1, %v1777_v59, %v1778_v58  ;;  %v433_v62 = vsel %vm322_vm1, %v428_v33, %v1777_v59 }
 0x13f   : > { %v480_v63 = vpop.permute.xlu1 %479  ;;  %v478_v0 = vpop.permute.xlu0 %477  ;;  %v1626_v1 = vpack.c.bf16 %v453_v60, %v434_v61  ;;  %v1628_v3 = vpack.c.bf16 %v452_v57, %v433_v62 }
 0x140   : > { %v482_v4 = vsel %vm263_vm0, %v478_v0, %v480_v63 }
 0x141   : > { %1627 = vmatprep.subr.bf16.mxu0 %v1626_v1 }
 0x142   : > { %1629 = vmatpush1.bf16.msra.mxu0 %v1628_v3 }
 0x143   : > { %v476_v5 = vpop.permute.xlu0 %475  ;;  %532 = vmatprep.subr.mxu0 %v482_v4 }
 0x144   : > { %v481_v6 = vsel %vm263_vm0, %v476_v5, %v478_v0 }
 0x146   : > { %533 = vmatpush1.msra.mxu0 %v481_v6 }
 0x147   : > { %1598 = vmatmul.mubr.msk.f32.vlgmr.msra.gmra.mrb[0].mxu0 %vm512_vm8, %v487_v7  ;;  %v601_v56 = vpop.permute.xlu0 %600 }
 0x148   : > { %1126 = vmatprep.mubr.f32.mxu0 %v1985_v2 }
 0x14b   : > { %v640_v58 = vpop.permute.xlu0 %639 }
 0x150   : > { %v510_v8 = vpop.permute.xlu1 %509 }
 0x154   : > { %v619_v55 = vpop.permute.xlu1 %618 }
 0x158   : > { %v661_v57 = vpop.permute.xlu1 %660 }
 0x21a   : > { %v582_v9 = vpop.f32.mrb[0].mxu0 }
 0x21b   : > { %v583_v10 = vadd.f32 %v582_v9, %v510_v8  ;;  %v584_v13 = vpop.f32.mrb[1].mxu0 }
 0x21c   : > { %v585_v14 = vadd.f32 %v584_v13, %v510_v8 }
 0x21d   : > { %v2270_v15 = vmax.f32 %v583_v10, 0.0 }
 0x21e   : > { %v2272_v16 = vmax.f32 %v585_v14, 0.0 }
 0x21f   : > { %v595_v22 = vmul.f32 %v2270_v15, %v2155_v21  ;;  %v655_v27 = vmul.f32 %v2270_v15, %v2173_v29  ;;  %v634_v32 = vmul.f32 %v2270_v15, %v2161_v23  ;;  %v679_v37 = vmul.f32 %v2270_v15, %v2186_v35 }
 0x220   : > { %v1780_v24 = vpack.i.bf16 %v2272_v16, %v2270_v15  ;;  %v596_v26 = vmul.f32 %v2272_v16, %v2151_v20  ;;  %v656_v28 = vmul.f32 %v2272_v16, %v2167_v25  ;;  %v635_v33 = vmul.f32 %v2272_v16, %v2149_v19 }
 0x221   : > { %v700_v39 = vmul.f32 %v2270_v15, %v2194_v40  ;;  %v680_v42 = vmul.f32 %v2272_v16, %v2190_v38  ;;  %v1800_v43 = vpack.i.bf16 %v1985_v2, %v2272_v16  ;;  %v701_v46 = vmul.f32 %v2272_v16, %v2206_v45 }
 0x222   : > { %1781 = vrot.lane.b32.xlu1 %v1780_v24, %s1993_s26  ;;  %v1785_v31 = vpack.i.bf16 %v596_v26, %v595_v22  ;;  %v1795_v34 = vpack.i.bf16 %v656_v28, %v655_v27  ;;  %v1790_v36 = vpack.i.bf16 %v635_v33, %v634_v32  ;;  %v740_v49 = vmul.f32 %v2272_v16, %v2223_v52 }
 0x223   : > { %v1805_v44 = vpack.i.bf16 %v2196_v41, %v680_v42  ;;  %v1810_v48 = vpack.i.bf16 %v2212_v47, %v701_v46  ;;  %v739_v53 = vmul.f32 %v2270_v15, %v2217_v51 }
 0x224   : > { %1786 = vrot.lane.b32.xlu0 %v1785_v31, %s1992_s25 }
 0x226   : > { %1796 = vrot.lane.b32.xlu1 %v1795_v34, %s1989_s14 }
 0x228   : > { %1791 = vrot.lane.b32.xlu0 %v1790_v36, %s1990_s23 }
 0x22a   : > { %685 = vrot.lane.b32.xlu1 %v679_v37, %s1988_s12 }
 0x22c   : > { %706 = vrot.lane.b32.xlu0 %v700_v39, %s1986_s9 }
 0x22e   : > { %1801 = vrot.lane.b32.xlu1 %v1800_v43, %s1994_s6 }
 0x230   : > { %1806 = vrot.lane.b32.xlu0 %v1805_v44, %s1988_s12 }
 0x232   : > { %724 = vrot.lane.b32.xlu1 %v2270_v15, %s1994_s6 }
 0x234   : > { %1811 = vrot.lane.b32.xlu0 %v1810_v48, %s1986_s9 }
 0x236   : > { %749 = vrot.lane.b32.xlu1 %v2226_v54, %s1987_s10 }
 0x238   : > { %747 = vrot.lane.b32.xlu0 %v740_v49, %s1987_s10 }
 0x23a   : > { %781 = vperm.xlu1 %1779, %v1599_v50  }
 0x23c   : > { %745 = vrot.lane.b32.xlu0 %v739_v53, %s1987_s10 }
 0x23e   : > { %893 = vrot.lane.b32.xlu1 %v1985_v2, %s1993_s26 }
 0x240   : > { %875 = vrot.lane.b32.xlu0 %v2143_v17, %s1992_s25 }
 0x242   : > { %935 = vrot.lane.b32.xlu1 %v2175_v30, %s1989_s14 }
 0x244   : > { %914 = vrot.lane.b32.xlu0 %v2145_v18, %s1990_s23 }
 0x294   : > { %v1782_v59 = vpop.permute.xlu1 %1781 }
 0x295   : > { %v1784_v60 = vunpack.i.h.bf16 %v1782_v59  ;;  %v1783_v61 = vunpack.i.l.bf16 %v1782_v59 }
 0x296   : > { %v1787_v62 = vpop.permute.xlu0 %1786 }
 0x297   : > { %v1789_v63 = vunpack.i.h.bf16 %v1787_v62  ;;  %v1788_v0 = vunpack.i.l.bf16 %v1787_v62  ;;  %v625_v3 = vsel %vm299_vm6, %v1783_v61, %v1784_v60  ;;  %v624_v4 = vsel %vm299_vm6, %v619_v55, %v1783_v61 }
 0x298   : > { %v1797_v1 = vpop.permute.xlu1 %1796 }
 0x299   : > { %v1799_v5 = vunpack.i.h.bf16 %v1797_v1  ;;  %v1798_v6 = vunpack.i.l.bf16 %v1797_v1  ;;  %v607_v7 = vsel %vm280_vm5, %v1788_v0, %v1789_v63  ;;  %v606_v8 = vsel %vm280_vm5, %v601_v56, %v1788_v0 }
 0x29a   : > { %v1792_v9 = vpop.permute.xlu0 %1791  ;;  %v1630_v10 = vpack.c.bf16 %v625_v3, %v607_v7  ;;  %v1632_v13 = vpack.c.bf16 %v624_v4, %v606_v8  ;;  %v758_v4 = vld [vmem:[#allocation4 + $0x8] sm:$0xff] }
 0x29b   : > { %v1794_v14 = vunpack.i.h.bf16 %v1792_v9  ;;  %v1793_v22 = vunpack.i.l.bf16 %v1792_v9  ;;  %v667_v27 = vsel %vm370_vm3, %v1798_v6, %v1799_v5  ;;  %v666_v31 = vsel %vm370_vm3, %v661_v57, %v1798_v6 }
 0x29c   : > { %v686_v24 = vpop.permute.xlu1 %685  ;;  %1631 = vmatprep.subr.bf16.mxu1 %v1630_v10 }
 0x29d   : > { %1633 = vmatpush1.bf16.msra.mxu1 %v1632_v13  ;;  %v646_v26 = vsel %vm339_vm4, %v1793_v22, %v1794_v14  ;;  %v645_v28 = vsel %vm339_vm4, %v640_v58, %v1793_v22 }
 0x29e   : > { %v707_v32 = vpop.permute.xlu0 %706  ;;  %v1634_v33 = vpack.c.bf16 %v667_v27, %v646_v26  ;;  %v1636_v34 = vpack.c.bf16 %v666_v31, %v645_v28 }
 0x2a0   : > { %v1802_v36 = vpop.permute.xlu1 %1801  ;;  %1635 = vmatprep.subr.bf16.mxu1 %v1634_v33 }
 0x2a1   : > { %1637 = vmatpush1.bf16.msra.mxu1 %v1636_v34  ;;  %v1804_v43 = vunpack.i.h.bf16 %v1802_v36  ;;  %v1803_v44 = vunpack.i.l.bf16 %v1802_v36 }
 0x2a2   : > { %v1807_v37 = vpop.permute.xlu0 %1806 }
 0x2a3   : > { %v1809_v39 = vunpack.i.h.bf16 %v1807_v37  ;;  %v1808_v42 = vunpack.i.l.bf16 %v1807_v37  ;;  %v731_v60 = vsel %vm451_vm7, %v1803_v44, %v1804_v43 }
 0x2a4   : > { %v725_v49 = vpop.permute.xlu1 %724 }
 0x2a5   : > { %v692_v46 = vsel %vm353_vm2, %v1808_v42, %v1809_v39  ;;  %v691_v48 = vsel %vm353_vm2, %v686_v24, %v1808_v42  ;;  %v730_v58 = vsel %vm451_vm7, %v725_v49, %v1803_v44  ;;  %v1601_v49 = vld [vmem:[%s2564_s3 + $0x10] sm:$0xff] }
 0x2a6   : > { %v1812_v50 = vpop.permute.xlu0 %1811  ;;  %v1638_v53 = vpack.c.bf16 %v692_v46, %v2272_v16  ;;  %v1640_v55 = vpack.c.bf16 %v691_v48, %v2270_v15 }
 0x2a7   : > { %v1814_v56 = vunpack.i.h.bf16 %v1812_v50  ;;  %v1813_v57 = vunpack.i.l.bf16 %v1812_v50 }
 0x2a8   : > { %1639 = vmatprep.subr.bf16.mxu1 %v1638_v53  ;;  %v750_v1 = vpop.permute.xlu1 %749 }
 0x2a9   : > { %1641 = vmatpush1.bf16.msra.mxu1 %v1640_v55  ;;  %v713_v59 = vsel %vm322_vm1, %v1813_v57, %v1814_v56  ;;  %v712_v61 = vsel %vm322_vm1, %v707_v32, %v1813_v57 }
 0x2aa   : > { %v748_v62 = vpop.permute.xlu0 %747  ;;  %v1642_v63 = vpack.c.bf16 %v731_v60, %v713_v59  ;;  %v1644_v0 = vpack.c.bf16 %v730_v58, %v712_v61 }
 0x2ab   : > { %v752_v15 = vsel %vm263_vm0, %v748_v62, %v750_v1 }
 0x2ac   : > { %1643 = vmatprep.subr.bf16.mxu1 %v1642_v63 }
 0x2ad   : > { %1645 = vmatpush1.bf16.msra.mxu1 %v1644_v0 }
 0x2ae   : > { %v746_v16 = vpop.permute.xlu0 %745  ;;  %803 = vmatprep.subr.mxu1 %v752_v15 }
 0x2af   : > { %v751_v3 = vsel %vm263_vm0, %v746_v16, %v748_v62 }
 0x2b1   : > { %804 = vmatpush1.msra.mxu1 %v751_v3 }
 0x2b2   : > { %1600 = vmatmul.mubr.msk.f32.vlgmr.msra.gmra.mrb[0].mxu1 %vm512_vm8, %v758_v4  ;;  %v876_v55 = vpop.permute.xlu0 %875 }
 0x2b3   : > { %1397 = vmatprep.mubr.f32.mxu1 %v1985_v2 }
 0x2b6   : > { %v915_v57 = vpop.permute.xlu0 %914 }
 0x2b9   : > { %v782_v5 = vpop.permute.xlu1 %781 }
 0x2bd   : > { %v894_v53 = vpop.permute.xlu1 %893 }
 0x2c1   : > { %v936_v56 = vpop.permute.xlu1 %935 }
 0x385   : > { %v853_v6 = vpop.f32.mrb[0].mxu1 }
 0x386   : > { %v854_v7 = vadd.f32 %v853_v6, %v782_v5  ;;  %v855_v8 = vpop.f32.mrb[1].mxu1 }
 0x387   : > { %v856_v9 = vadd.f32 %v855_v8, %v782_v5 }
 0x388   : > { %v860_v10 = vadd.f32 %v854_v7, %v2132_v11 }
 0x389   : > { %v861_v13 = vadd.f32 %v856_v9, %v2134_v12 }
 0x38a   : > { %v2352_v14 = vmax.f32 %v860_v10, 0.0 }
 0x38b   : > { %v2354_v22 = vmax.f32 %v861_v13, 0.0 }
 0x38c   : > { %v870_v24 = vmul.f32 %v2352_v14, %v2155_v21  ;;  %v930_v28 = vmul.f32 %v2352_v14, %v2173_v29  ;;  %v909_v31 = vmul.f32 %v2352_v14, %v2161_v23  ;;  %v954_v36 = vmul.f32 %v2352_v14, %v2186_v35 }
 0x38d   : > { %v1815_v26 = vpack.i.bf16 %v2354_v22, %v2352_v14  ;;  %v871_v27 = vmul.f32 %v2354_v22, %v2151_v20  ;;  %v931_v11 = vmul.f32 %v2354_v22, %v2167_v25  ;;  %v910_v32 = vmul.f32 %v2354_v22, %v2149_v19 }
 0x38e   : > { %v975_v37 = vmul.f32 %v2352_v14, %v2194_v40  ;;  %v955_v39 = vmul.f32 %v2354_v22, %v2190_v38  ;;  %v1835_v42 = vpack.i.bf16 %v1985_v2, %v2354_v22  ;;  %v976_v44 = vmul.f32 %v2354_v22, %v2206_v45 }
 0x38f   : > { %1816 = vrot.lane.b32.xlu1 %v1815_v26, %s1993_s26  ;;  %v1820_v12 = vpack.i.bf16 %v871_v27, %v870_v24  ;;  %v1830_v33 = vpack.i.bf16 %v931_v11, %v930_v28  ;;  %v1825_v34 = vpack.i.bf16 %v910_v32, %v909_v31  ;;  %v1015_v48 = vmul.f32 %v2354_v22, %v2223_v52 }
 0x390   : > { %v1840_v43 = vpack.i.bf16 %v2196_v41, %v955_v39  ;;  %v1845_v46 = vpack.i.bf16 %v2212_v47, %v976_v44  ;;  %v1014_v50 = vmul.f32 %v2352_v14, %v2217_v51 }
 0x391   : > { %1821 = vrot.lane.b32.xlu0 %v1820_v12, %s1992_s25 }
 0x393   : > { %1831 = vrot.lane.b32.xlu1 %v1830_v33, %s1989_s14 }
 0x395   : > { %1826 = vrot.lane.b32.xlu0 %v1825_v34, %s1990_s23 }
 0x397   : > { %960 = vrot.lane.b32.xlu1 %v954_v36, %s1988_s12 }
 0x399   : > { %981 = vrot.lane.b32.xlu0 %v975_v37, %s1986_s9 }
 0x39b   : > { %1836 = vrot.lane.b32.xlu1 %v1835_v42, %s1994_s6 }
 0x39d   : > { %1841 = vrot.lane.b32.xlu0 %v1840_v43, %s1988_s12 }
 0x39f   : > { %999 = vrot.lane.b32.xlu1 %v2352_v14, %s1994_s6 }
 0x3a1   : > { %1846 = vrot.lane.b32.xlu0 %v1845_v46, %s1986_s9 }
 0x3a3   : > { %1024 = vrot.lane.b32.xlu1 %v2226_v54, %s1987_s10 }
 0x3a5   : > { %1022 = vrot.lane.b32.xlu0 %v1015_v48, %s1987_s10 }
 0x3a7   : > { %1056 = vperm.xlu1 %1779, %v1601_v49  }
 0x3a9   : > { %1020 = vrot.lane.b32.xlu0 %v1014_v50, %s1987_s10 }
 0x3ab   : > { %1164 = vrot.lane.b32.xlu1 %v1985_v2, %s1993_s26 }
 0x3ad   : > { %1146 = vrot.lane.b32.xlu0 %v2143_v17, %s1992_s25 }
 0x3af   : > { %1206 = vrot.lane.b32.xlu1 %v2175_v30, %s1989_s14 }
 0x3b1   : > { %1185 = vrot.lane.b32.xlu0 %v2145_v18, %s1990_s23 }
 0x401   : > { %v1817_v58 = vpop.permute.xlu1 %1816 }
 0x402   : > { %v1819_v59 = vunpack.i.h.bf16 %v1817_v58  ;;  %v1818_v60 = vunpack.i.l.bf16 %v1817_v58 }
 0x403   : > { %v1822_v61 = vpop.permute.xlu0 %1821 }
 0x404   : > { %v1824_v62 = vunpack.i.h.bf16 %v1822_v61  ;;  %v1823_v63 = vunpack.i.l.bf16 %v1822_v61  ;;  %v899_v0 = vsel %vm299_vm6, %v894_v53, %v1818_v60  ;;  %v900_v17 = vsel %vm299_vm6, %v1818_v60, %v1819_v59 }
 0x405   : > { %v1832_v1 = vpop.permute.xlu1 %1831 }
 0x406   : > { %v881_v30 = vsel %vm280_vm5, %v876_v55, %v1823_v63  ;;  %v1834_v15 = vunpack.i.h.bf16 %v1832_v1  ;;  %v1833_v16 = vunpack.i.l.bf16 %v1832_v1  ;;  %v882_v18 = vsel %vm280_vm5, %v1823_v63, %v1824_v62  ;;  %v1033_v63 = vld [vmem:[#allocation4 + $0x10] sm:$0xff] }
 0x407   : > { %v1648_v3 = vpack.c.bf16 %v899_v0, %v881_v30  ;;  %v1827_v4 = vpop.permute.xlu0 %1826  ;;  %v1646_v5 = vpack.c.bf16 %v900_v17, %v882_v18 }
 0x408   : > { %v1829_v6 = vunpack.i.h.bf16 %v1827_v4  ;;  %v1828_v7 = vunpack.i.l.bf16 %v1827_v4  ;;  %v941_v9 = vsel %vm370_vm3, %v936_v56, %v1833_v16  ;;  %v942_v24 = vsel %vm370_vm3, %v1833_v16, %v1834_v15 }
 0x409   : > { %v961_v8 = vpop.permute.xlu1 %960  ;;  %1647 = vmatprep.subr.bf16.mxu0 %v1646_v5 }
 0x40a   : > { %v920_v10 = vsel %vm339_vm4, %v915_v57, %v1828_v7  ;;  %1649 = vmatpush1.bf16.msra.mxu0 %v1648_v3  ;;  %v921_v13 = vsel %vm339_vm4, %v1828_v7, %v1829_v6 }
 0x40b   : > { %v1652_v26 = vpack.c.bf16 %v941_v9, %v920_v10  ;;  %v982_v27 = vpop.permute.xlu0 %981  ;;  %v1650_v28 = vpack.c.bf16 %v942_v24, %v921_v13 }
 0x40d   : > { %v1837_v11 = vpop.permute.xlu1 %1836  ;;  %1651 = vmatprep.subr.bf16.mxu0 %v1650_v28 }
 0x40e   : > { %1653 = vmatpush1.bf16.msra.mxu0 %v1652_v26  ;;  %v1839_v33 = vunpack.i.h.bf16 %v1837_v11  ;;  %v1838_v34 = vunpack.i.l.bf16 %v1837_v11 }
 0x40f   : > { %v1842_v12 = vpop.permute.xlu0 %1841 }
 0x410   : > { %v1844_v31 = vunpack.i.h.bf16 %v1842_v12  ;;  %v1843_v32 = vunpack.i.l.bf16 %v1842_v12  ;;  %v1006_v55 = vsel %vm451_vm7, %v1838_v34, %v1839_v33 }
 0x411   : > { %v1000_v42 = vpop.permute.xlu1 %999 }
 0x412   : > { %v966_v36 = vsel %vm353_vm2, %v961_v8, %v1843_v32  ;;  %v967_v37 = vsel %vm353_vm2, %v1843_v32, %v1844_v31  ;;  %v1005_v49 = vsel %vm451_vm7, %v1000_v42, %v1838_v34 }
 0x413   : > { %v1656_v39 = vpack.c.bf16 %v966_v36, %v2352_v14  ;;  %v1847_v43 = vpop.permute.xlu0 %1846  ;;  %v1654_v44 = vpack.c.bf16 %v967_v37, %v2354_v22 }
 0x414   : > { %v1849_v46 = vunpack.i.h.bf16 %v1847_v43  ;;  %v1848_v48 = vunpack.i.l.bf16 %v1847_v43 }
 0x415   : > { %1655 = vmatprep.subr.bf16.mxu0 %v1654_v44  ;;  %v1025_v59 = vpop.permute.xlu1 %1024 }
 0x416   : > { %v987_v50 = vsel %vm322_vm1, %v982_v27, %v1848_v48  ;;  %1657 = vmatpush1.bf16.msra.mxu0 %v1656_v39  ;;  %v988_v53 = vsel %vm322_vm1, %v1848_v48, %v1849_v46 }
 0x417   : > { %v1660_v56 = vpack.c.bf16 %v1005_v49, %v987_v50  ;;  %v1023_v57 = vpop.permute.xlu0 %1022  ;;  %v1658_v58 = vpack.c.bf16 %v1006_v55, %v988_v53 }
 0x418   : > { %v1027_v60 = vsel %vm263_vm0, %v1023_v57, %v1025_v59 }
 0x419   : > { %1659 = vmatprep.subr.bf16.mxu0 %v1658_v58 }
 0x41a   : > { %1661 = vmatpush1.bf16.msra.mxu0 %v1660_v56 }
 0x41b   : > { %v1021_v61 = vpop.permute.xlu0 %1020  ;;  %1078 = vmatprep.subr.mxu0 %v1027_v60 }
 0x41c   : > { %v1026_v62 = vsel %vm263_vm0, %v1021_v61, %v1023_v57 }
 0x41e   : > { %1079 = vmatpush1.msra.mxu0 %v1026_v62 }
 0x41f   : > { %1602 = vmatmul.mubr.msk.f32.vlgmr.msra.gmra.mrb[2].mxu0 %vm512_vm8, %v1033_v63 }
 0x420   : > { %1491 = vmatprep.mubr.f32.mxu0 %v1985_v2 }
 0x426   : > { %v1057_v0 = vpop.permute.xlu1 %1056 }
 0x4f2   : > { %v1128_v1 = vpop.f32.mrb[2].mxu0 }
 0x4f3   : > { %v1129_v17 = vadd.f32 %v1128_v1, %v1057_v0  ;;  %v1130_v30 = vpop.f32.mrb[3].mxu0 }
 0x4f4   : > { %v1131_v15 = vadd.f32 %v1130_v30, %v1057_v0 }
 0x4f5   : > { %v2432_v16 = vmax.f32 %v1129_v17, 0.0 }
 0x4f6   : > { %v2434_v18 = vmax.f32 %v1131_v15, 0.0 }
 0x4f7   : > { %v1141_v3 = vmul.f32 %v2432_v16, %v2155_v21  ;;  %v1201_v6 = vmul.f32 %v2432_v16, %v2173_v29  ;;  %v1180_v9 = vmul.f32 %v2432_v16, %v2161_v23  ;;  %v1246_v29 = vmul.f32 %v2432_v16, %v2194_v40 }
 0x4f8   : > { %v1850_v4 = vpack.i.bf16 %v2434_v18, %v2432_v16  ;;  %v1142_v5 = vmul.f32 %v2434_v18, %v2151_v20  ;;  %v1202_v7 = vmul.f32 %v2434_v18, %v2167_v25  ;;  %v1181_v21 = vmul.f32 %v2434_v18, %v2149_v19 }
 0x4f9   : > { %v1225_v25 = vmul.f32 %v2432_v16, %v2186_v35  ;;  %v1226_v23 = vmul.f32 %v2434_v18, %v2190_v38  ;;  %v1870_v19 = vpack.i.bf16 %v1985_v2, %v2434_v18  ;;  %v1247_v35 = vmul.f32 %v2434_v18, %v2206_v45  ;;  %v1603_v38 = vld [vmem:[%s2564_s3 + $0x18] sm:$0xff]  ;;  %v1165_v45 = vpop.permute.xlu1 %1164 }
 0x4fa   : > { %1851 = vrot.lane.b32.xlu1 %v1850_v4, %s1993_s26  ;;  %v1855_v8 = vpack.i.bf16 %v1142_v5, %v1141_v3  ;;  %v1865_v10 = vpack.i.bf16 %v1202_v7, %v1201_v6  ;;  %v1860_v20 = vpack.i.bf16 %v1181_v21, %v1180_v9  ;;  %v1286_v2 = vmul.f32 %v2434_v18, %v2223_v52  ;;  %s1613_s26 = sshll.u32 %s2047_s22, 8  ;;  %s1995_s22 = smov [#allocation7]  }
 0x4fb   : > { %v1875_v13 = vpack.i.bf16 %v2196_v41, %v1226_v23  ;;  %v1880_v40 = vpack.i.bf16 %v2212_v47, %v1247_v35  ;;  %v1285_v41 = vmul.f32 %v2432_v16, %v2217_v51  ;;  %v1147_v47 = vpop.permute.xlu0 %1146  ;;  %s2519_s11 = scalar_lea.hbm %s2566_s5, %s1613_s26 }
 0x4fc   : > { %1856 = vrot.lane.b32.xlu0 %v1855_v8, %s1992_s25 }
 0x4fd   : > { %v1207_v24 = vpop.permute.xlu1 %1206 }
 0x4fe   : > { %1866 = vrot.lane.b32.xlu1 %v1865_v10, %s1989_s14  ;;  %s1918_s14 = sshll.u32 %s1995_s22, 4  ;;  %s1919_s14 = int_to_ptr.vmem [resolvable:$false] %s1918_s14 }
 0x4ff   : > { %v1186_v26 = vpop.permute.xlu0 %1185  ;;  %s1920_s16 = scalar_lea.vmem %s1919_s14, 512 }
 0x500   : > { %1861 = vrot.lane.b32.xlu0 %v1860_v20, %s1990_s23  ;;  %s230_s23 = sand.u32 1, %s1972_s19  }
 0x501   : > { %s1594_s25 = sshll.u32 %s230_s23, 4  ;;  %s1503_s13 = scalar_lea.sflag [#allocation6], %s230_s23 }
 0x502   : > { %1231 = vrot.lane.b32.xlu1 %v1225_v25, %s1988_s12 }
 0x504   : > { %1252 = vrot.lane.b32.xlu0 %v1246_v29, %s1986_s9 }
 0x506   : > { %1871 = vrot.lane.b32.xlu1 %v1870_v19, %s1994_s6  ;;  %v1304_v19 = vld [vmem:[#allocation4 + $0x18] sm:$0xff] }
 0x508   : > { %1876 = vrot.lane.b32.xlu0 %v1875_v13, %s1988_s12  ;;  %v1605_v13 = vld [vmem:[%s2564_s3 + $0x20] sm:$0xff] }
 0x50a   : > { %1270 = vrot.lane.b32.xlu1 %v2432_v16, %s1994_s6  ;;  %s232_s6 = scalar_lea.vmem [#allocation7], %s1594_s25 }
 0x50b   : > { %s1517_s30 = sshll.u32 %s232_s6, 4  ;;  %s2521_s30 = int_to_ptr.vmem [resolvable:$true] %s1517_s30 }
 0x50c   : > { %1881 = vrot.lane.b32.xlu0 %v1880_v40, %s1986_s9  ;;  %s1914_s15 = scalar_lea.vmem %s2521_s30, 256  ;;  %p1921_p2 = scmp.lt.s32.totalorder %s2521_s30, %s1919_s14 }
 0x50d   : > { %p1915_p6 = scmp.ne.s32.totalorder %s2521_s30, %s1914_s15  ;;  %p1922_p3 = scmp.lt.s32.totalorder %s1920_s16, %s1914_s15 }
 0x50e   : > { %1295 = vrot.lane.b32.xlu1 %v2226_v54, %s1987_s10 }
 0x50f   : > { %p1916_p10 = pnand %p1915_p6, %p2577_p9  ;;  %p1923_p4 = por %p1922_p3, %p1921_p2 }
 0x510   : > { %1293 = vrot.lane.b32.xlu0 %v1286_v2, %s1987_s10 }
 0x511   : > { %p1917_p12 = pneg %p1916_p10 }
 0x512   : > { %1327 = vperm.xlu1 %1779, %v1603_v38  }
 0x513   : > { %p1924_p7 = pnand %p1923_p4, %p1917_p12 }
 0x514   : > { %1291 = vrot.lane.b32.xlu0 %v1285_v41, %s1987_s10 }
 0x518   : > { %1421 = vperm.xlu0 %1885, %v1605_v13  }
 0x56c   : > { %v1852_v54 = vpop.permute.xlu1 %1851 }
 0x56d   : > { %v1854_v27 = vunpack.i.h.bf16 %v1852_v54  ;;  %v1853_v28 = vunpack.i.l.bf16 %v1852_v54 }
 0x56e   : > { %v1857_v52 = vpop.permute.xlu0 %1856 }
 0x56f   : > { %v1859_v11 = vunpack.i.h.bf16 %v1857_v52  ;;  %v1858_v12 = vunpack.i.l.bf16 %v1857_v52  ;;  %v1170_v31 = vsel %vm299_vm6, %v1165_v45, %v1853_v28  ;;  %v1171_v33 = vsel %vm299_vm6, %v1853_v28, %v1854_v27  ;;  %v1412_v28 = vld [vmem:[%s2563_s2] sm:$0xff] }
 0x570   : > { %v1867_v32 = vpop.permute.xlu1 %1866 }
 0x571   : > { %v1152_v34 = vsel %vm280_vm5, %v1147_v47, %v1858_v12  ;;  %v1869_v51 = vunpack.i.h.bf16 %v1867_v32  ;;  %v1868_v36 = vunpack.i.l.bf16 %v1867_v32  ;;  %v1153_v37 = vsel %vm280_vm5, %v1858_v12, %v1859_v11 }
 0x572   : > { %v1664_v39 = vpack.c.bf16 %v1170_v31, %v1152_v34  ;;  %v1862_v42 = vpop.permute.xlu0 %1861  ;;  %v1662_v43 = vpack.c.bf16 %v1171_v33, %v1153_v37 }
 0x573   : > { %v1864_v44 = vunpack.i.h.bf16 %v1862_v42  ;;  %v1863_v46 = vunpack.i.l.bf16 %v1862_v42  ;;  %v1212_v49 = vsel %vm370_vm3, %v1207_v24, %v1868_v36  ;;  %v1213_v55 = vsel %vm370_vm3, %v1868_v36, %v1869_v51 }
 0x574   : > { %v1232_v48 = vpop.permute.xlu1 %1231  ;;  %1663 = vmatprep.subr.bf16.mxu1 %v1662_v43 }
 0x575   : > { %v1191_v50 = vsel %vm339_vm4, %v1186_v26, %v1863_v46  ;;  %1665 = vmatpush1.bf16.msra.mxu1 %v1664_v39  ;;  %v1192_v53 = vsel %vm339_vm4, %v1863_v46, %v1864_v44 }
 0x576   : > { %v1668_v56 = vpack.c.bf16 %v1212_v49, %v1191_v50  ;;  %v1253_v57 = vpop.permute.xlu0 %1252  ;;  %v1666_v58 = vpack.c.bf16 %v1213_v55, %v1192_v53 }
 0x578   : > { %v1872_v59 = vpop.permute.xlu1 %1871  ;;  %1667 = vmatprep.subr.bf16.mxu1 %v1666_v58 }
 0x579   : > { %1669 = vmatpush1.bf16.msra.mxu1 %v1668_v56  ;;  %v1874_v63 = vunpack.i.h.bf16 %v1872_v59  ;;  %v1873_v0 = vunpack.i.l.bf16 %v1872_v59 }
 0x57a   : > { %v1877_v60 = vpop.permute.xlu0 %1876 }
 0x57b   : > { %v1879_v61 = vunpack.i.h.bf16 %v1877_v60  ;;  %v1878_v62 = vunpack.i.l.bf16 %v1877_v60  ;;  %v1277_v21 = vsel %vm451_vm7, %v1873_v0, %v1874_v63 }
 0x57c   : > { %v1271_v15 = vpop.permute.xlu1 %1270 }
 0x57d   : > { %v1237_v1 = vsel %vm353_vm2, %v1232_v48, %v1878_v62  ;;  %v1238_v17 = vsel %vm353_vm2, %v1878_v62, %v1879_v61  ;;  %v1276_v7 = vsel %vm451_vm7, %v1271_v15, %v1873_v0 }
 0x57e   : > { %v1672_v30 = vpack.c.bf16 %v1237_v1, %v2432_v16  ;;  %v1882_v3 = vpop.permute.xlu0 %1881  ;;  %v1670_v4 = vpack.c.bf16 %v1238_v17, %v2434_v18 }
 0x57f   : > { %v1884_v5 = vunpack.i.h.bf16 %v1882_v3  ;;  %v1883_v6 = vunpack.i.l.bf16 %v1882_v3 }
 0x580   : > { %1671 = vmatprep.subr.bf16.mxu1 %v1670_v4  ;;  %v1296_v16 = vpop.permute.xlu1 %1295 }
 0x581   : > { %v1258_v8 = vsel %vm322_vm1, %v1253_v57, %v1883_v6  ;;  %1673 = vmatpush1.bf16.msra.mxu1 %v1672_v30  ;;  %v1259_v9 = vsel %vm322_vm1, %v1883_v6, %v1884_v5 }
 0x582   : > { %v1676_v10 = vpack.c.bf16 %v1276_v7, %v1258_v8  ;;  %v1294_v20 = vpop.permute.xlu0 %1293  ;;  %v1674_v25 = vpack.c.bf16 %v1277_v21, %v1259_v9 }
 0x583   : > { %v1298_v18 = vsel %vm263_vm0, %v1294_v20, %v1296_v16 }
 0x584   : > { %1675 = vmatprep.subr.bf16.mxu1 %v1674_v25 }
 0x585   : > { %1677 = vmatpush1.bf16.msra.mxu1 %v1676_v10 }
 0x586   : > { %v1292_v29 = vpop.permute.xlu0 %1291  ;;  %1349 = vmatprep.subr.mxu1 %v1298_v18 }
 0x587   : > { %v1297_v23 = vsel %vm263_vm0, %v1292_v29, %v1294_v20 }
 0x589   : > { %1350 = vmatpush1.msra.mxu1 %v1297_v23 }
 0x58a   : > { %1604 = vmatmul.mubr.msk.f32.vlgmr.msra.gmra.mrb[2].mxu1 %vm512_vm8, %v1304_v19 }
 0x591   : > { %v1328_v35 = vpop.permute.xlu1 %1327 }
 0x597   : > { %v1422_v52 = vpop.permute.xlu0 %1421 }
 0x65d   : > { %v1399_v40 = vpop.f32.mrb[2].mxu1 }
 0x65e   : > { %v1400_v2 = vadd.f32 %v1399_v40, %v1328_v35  ;;  %v1401_v38 = vpop.f32.mrb[3].mxu1 }
 0x65f   : > { %v1402_v41 = vadd.f32 %v1401_v38, %v1328_v35 }
 0x660   : > { %v1404_v45 = vadd.f32 %v1400_v2, %v2352_v14 }
 0x661   : > { %v1405_v47 = vadd.f32 %v1402_v41, %v2354_v22 }
 0x662   : > { %v1406_v24 = vmax.f32 %v1404_v45, 0.0 }
 0x663   : > { %v1407_v26 = vmax.f32 %v1405_v47, 0.0 }
 0x664   : > { %v1680_v27 = vpack.c.bf16 %v2352_v14, %v1406_v24 }
 0x665   : > { %v1678_v54 = vpack.c.bf16 %v2354_v22, %v1407_v26 }
 0x667   : > { %1679 = vmatprep.subr.bf16.mxu0 %v1678_v54 }
 0x668   : > { %1681 = vmatpush1.bf16.msra.mxu0 %v1680_v27 }
 0x66b   : > { %1606 = vmatmul.mubr.msk.f32.vlgmr.msra.gmra.mrb[4].mxu0 %vm299_vm6, %v1412_v28 }
 0x73e   : > { %v1493_v11 = vpop.f32.mrb[4].mxu0 }
 0x73f   : > { %v1494_v12 = vadd.f32 %v1493_v11, %v1422_v52  ;;  %v1495_v31 = vpop.f32.mrb[5].mxu0 }
 0x740   : > { %v1496_v22 = vadd.f32 %v1495_v31, %v1422_v52 }
 0x741   : > { %v1498_v14 = vmax.f32 %v1494_v12, 0.0 }
 0x742   : > { %v1499_v32 = vmax.f32 %v1496_v22, 0.0 }
 0x743   : > { %1500 = vst [vmem:[%s232_s6] sm:$0xff] %v1498_v14 }
 0x744   : > { %1501 = vst [vmem:[%s232_s6 + $0x8] sm:$0xff] %v1499_v32 }
 0x745   : > { %1927 = shalt.err (!%p1924_p7)
}
 0x746   : > { %s1928_s9 = scalar_lea.hbm %s2519_s11, 256  ;;  %s1932_s17 = scalar_lea.hbm %s2566_s5, 512 }
 0x747   : > { %p1929_p8 = scmp.ne.s32.totalorder %s2519_s11, %s1928_s9  ;;  %p1933_p1 = scmp.lt.u32.totalorder %s2519_s11, %s2566_s5 }
 0x748   : > { %p1934_p0 = scmp.lt.u32.totalorder %s1932_s17, %s1928_s9  ;;  %p1936_p6 = scmp.lt.u32.totalorder %s1928_s9, %s2519_s11 }
 0x749   : > { %p1930_p11 = pnand %p1929_p8, %p2577_p9 }
 0x74a   : > { %p1935_p5 = por %p1934_p0, %p1933_p1 }
 0x74b   : > { %p1931_p13 = pneg %p1930_p11 }
 0x74c   : > { %p1937_p10 = por %p1936_p6, %p1935_p5 }
 0x74e   : > { %p1938_p12 = pnand %p1937_p10, %p1931_p13 }
 0x750   : > { %1941 = shalt.err (!%p1938_p12)
}
 0x751   : > { %1686 = dma.vmem_to_hbm [thread:$0]  (%p2577_p9), %s2521_s30, 256, %s2519_s11, %s1503_s13  }
 0x752 PF: > { %p1698_p2 = scmp.ge.s32.totalorder %s1980_s21, 2  ;;  %s1529_s26 = sand.u32 1, %s1968_s18  }
 0x753   : > { %p2578_p3 = scmp.ne.s32.totalorder %s2571_s29, 0  ;;  %s1530_s6 = scalar_lea.sflag [#allocation6], %s1529_s26 }
 0x755   : > { %p1693_p4 = pnand %p1698_p2, %p2578_p3 }
 0x757   : > { %1963 = dma.done.wait (!%p1693_p4), %s1530_s6, 256  }
 0x758   : > { %1965 = vsyncadd (!%p1693_p4), %s1530_s6, 4294967040  ;;  %p16_p7 = scmp.ge.s32.totalorder %s2051_s24, 4   ;;  %s2579_s18 = smov %s1972_s19 }
 0x759   : > { %s2580_s19 = smov %s1976_s20  ;;  %s2581_s20 = smov %s2062_s27 }
 0x75a   : > { %s2582_s21 = smov %s2051_s24  ;;  %18 = sbr.rel (!%p16_p7) target bundleno = 4 (0x4), region = 88 }
 0x761   :  { %1535 = vsyncpa [#allocation5], 1 }
 0x762   :  { %1537 = vsyncpa [#allocation5 + $0x1], 1 }
 0x763   :  { %1538 = vsyncpa [#allocation6], 1 }
 0x764   :  { %1540 = vsyncpa [#allocation6 + $0x1], 1 }

// kernel: tpu_custom_call.1
= control target key start
LH: loop header
LB: loop body
LE: loop exit
PB: predicated region body
PF: predicated region fallthrough
CT: control target
= control target key end

     0   :  { %10 = vsyncpa [#allocation5], 0  ;;  %s2561_s0 = inlined_call_operand.vmem [shape: f32[2,8,256], index: 0, kind: input, shape index: {}]   ;;  %s2562_s1 = inlined_call_operand.hbm [shape: f32[4,8,72], index: 1, kind: input, shape index: {}]   ;;  %s2563_s2 = inlined_call_operand.vmem [shape: f32[8,16], index: 2, kind: input, shape index: {}]   ;;  %s2564_s3 = inlined_call_operand.vmem [shape: f32[5,8,1], index: 3, kind: input, shape index: {}]   ;;  %s2565_s4 = inlined_call_operand.vmem [shape: f32[2,256], index: 4, kind: input, shape index: {}]   ;;  %s2566_s5 = inlined_call_operand.hbm [shape: f32[2,8,256], index: 5, kind: output, shape index: {}]  }
   0x1   :  { %11 = vsyncpa [#allocation6], 0 }
   0x2   :  { %13 = vsyncpa [#allocation6 + $0x1], 0  ;;  %s2026_s18 = smov 0   ;;  %s2028_s19 = smov 0  }
   0x3   :  { %s2030_s20 = smov 0   ;;  %s2032_s21 = smov 0  }
   0x4 LB: > { %s2047_s22 = sadd.s32 4294967295, %s1980_s21   ;;  %s1588_s23 = sadd.s32 4294967294, %s1980_s21   ;;  %s1980_s21 = sphi %s2032_s21, %s2582_s21   ;;  %s1976_s20 = sphi %s2030_s20, %s2581_s20   ;;  %s1972_s19 = sphi %s2028_s19, %s2580_s19   ;;  %s1968_s18 = sphi %s2026_s18, %s2579_s18  }
   0x5   : > { %s2051_s24 = sadd.s32 1, %s1980_s21   ;;  %s136_s25 = sadd.s32 1, %s1976_s20 }
   0x6   : > { %s133_s26 = ssub.s32 %s1980_s21, %s2051_s24  ;;  %p146_p0 = scmp.ne.s32.totalorder %s1976_s20, %s1972_s19 }
   0x7   : > { %p134_p1 = scmp.eq.s32.totalorder %s133_s26, 0  ;;  %p147_p2 = scmp.eq.s32.totalorder %s2047_s22, 1 }
   0x8   : > { %p152_p3 = scmp.ne.s32.totalorder %s1972_s19, %s1968_s18  ;;  %p153_p4 = scmp.eq.s32.totalorder %s1588_s23, 1 }
   0x9   : > { %s2062_s27 = scalar_select %p134_p1, %s1976_s20, %s136_s25  }
   0xa   : > { %p2064_p5 = por %p147_p2, %p146_p0  ;;  %p2068_p6 = por %p153_p4, %p152_p3 }
   0xb   : > { %p1589_p7 = scmp.ge.s32.totalorder %s1980_s21, 1  ;;  %p160_p8 = scmp.lt.s32.totalorder %s1980_s21, 3 }
   0xc   : > { %s2570_s28 = scalar_select %p2064_p5, 1, 0 }
   0xd   : > { %s2571_s29 = scalar_select %p2068_p6, 1, 0 }
   0xe   : > { %p2567_p9 = scmp.eq.s32.totalorder %s2047_s22, 0  ;;  %p2075_p10 = pnand %p1589_p7, %p160_p8 }
   0xf   : > { %s1982_s6 = smov [#allocation4]   ;;  %s1886_s11 = scalar_lea.hbm %s2562_s1, 512 }
  0x10   : > { %s2572_s30 = scalar_select %p2075_p10, 1, 0 }
  0x11   : > { %s172_s7 = sshll.u32 %s1982_s6, 4  ;;  %p1688_p11 = pneg %p2075_p10  ;;  %s173_s7 = int_to_ptr.vmem [resolvable:$true] %s172_s7 }
  0x12   : > { %p1887_p13 = scmp.ne.s32.totalorder %s2562_s1, %s1886_s11  ;;  %p1893_p3 = scmp.lt.u32.totalorder %s1886_s11, %s2562_s1 }
  0x13   : > { %p2083_p12 = pnand %p2567_p9, %p1688_p11 }
  0x15   : > { %p1888_p0 = pneg %p2083_p12 }
  0x17   : > { %p1889_p1 = pnand %p1888_p0, %p1887_p13 }
  0x19   : > { %p1890_p2 = pneg %p1889_p1 }
  0x1b   : > { %p1895_p4 = pnand %p1893_p3, %p1890_p2 }
  0x1d   : > { %1898 = shalt.err (!%p1895_p4)
}
  0x1e   : > { %s1899_s16 = scalar_lea.vmem %s173_s7, 512  ;;  %p1907_p9 = scmp.lt.s32.totalorder %s173_s7, %s173_s7 }
  0x1f   : > { %p1900_p7 = scmp.ne.s32.totalorder %s173_s7, %s1899_s16  ;;  %p1908_p6 = scmp.lt.s32.totalorder %s1899_s16, %s1899_s16 }
  0x21   : > { %p1902_p8 = pnand %p1900_p7, %p1888_p0  ;;  %p1909_p5 = por %p1908_p6, %p1907_p9 }
  0x23   : > { %p1903_p11 = pneg %p1902_p8 }
  0x25   : > { %p1910_p10 = pnand %p1909_p5, %p1903_p11 }
  0x27   : > { %1913 = shalt.err (!%p1910_p10)
}
  0x28   : > { %s1983_s17 = smov 128   ;;  %s1984_s23 = smov 8  }
  0x29   : > { %1691 = dma.hbm_to_vmem [thread:$0]  (!%p2083_p12), %s2562_s1, 512, %s173_s7, [#allocation5], %s1983_s17, %s1983_s17, %s1984_s23  }
  0x2a   : > { %p2574_p13 = scmp.ne.s32.totalorder %s2572_s30, 0 }
  0x2b   : > { %p2575_p1 = scmp.eq.s32.totalorder (!%p2574_p13), %s2047_s22, 0 }
  0x2c   : > { %205 = sbr.rel (%p2574_p13) target bundleno = 1874 (0x752), region = 40 }
  0x33   : > { %1959 = dma.done.wait (%p2575_p1), [#allocation5], 512   ;;  %p2576_p0 = pmov %p2575_p1 }
  0x34   : > { %v251_v0 = vlaneseq  ;;  %v1985_v2 = vmov 0.0   ;;  %v1597_v5 = vld [vmem:[%s2565_s4 + $0x1] ss:$2 sm:$0x3]  ;;  %s1986_s9 = smov 113   ;;  %s1987_s10 = smov 111  }
  0x35   : > { %1961 = vsyncadd (%p2576_p0), [#allocation5], 4294966784  ;;  %580 = vmatprep.mubr.f32.mxu0 %v1985_v2  ;;  %851 = vmatprep.mubr.f32.mxu1 %v1985_v2  ;;  %v240_v6 = vld [vmem:[%s2565_s4] ss:$2 sm:$0x3]  ;;  %p233_p5 = scmp.lt.s32.totalorder %s2047_s22, 1 }
  0x36   : > { %v252_v1 = vshrl.u32 %v251_v0, 7  ;;  %s1988_s12 = smov 127   ;;  %s1989_s14 = smov 1   ;;  %v1991_v13 = vmov 0   ;;  %vm263_vm0 = vcmask 908288   ;;  %vm322_vm1 = vcmask 924672  }
  0x37   : > { %s234_s11 = scalar_select %p233_p5, %s2047_s22, 1  ;;  %1779 = vset.pattern.permute.xlu1 %v1991_v13  ;;  %1885 = vset.pattern.permute.xlu0 %v1991_v13  ;;  %vm353_vm2 = vcmask 1039360   ;;  %vm370_vm3 = vcmask 7168   ;;  %vm339_vm4 = vcmask 121856   ;;  %vm280_vm5 = vcmask 138240   ;;  %v506_v56 = vld [vmem:[%s2564_s3] sm:$0xff] }
  0x38   : > { %v253_v3 = vsub.s32 0, %v252_v1  ;;  %v257_v4 = vsub.s32 1, %v252_v1  ;;  %s1990_s23 = smov 15   ;;  %s1992_s25 = smov 17   ;;  %vm299_vm6 = vcmask 130048   ;;  %vm451_vm7 = vcmask 916480  }
  0x39   : > { %s1612_s13 = sshll.u32 %s234_s11, 4  ;;  %s1993_s26 = smov 16   ;;  %vm512_vm8 = vcmask 588800  }
  0x3a   : > { %v313_v7 = vrot.slane %v1597_v5, %v253_v3  ;;  %v254_v8 = vrot.slane %v240_v6, %v253_v3  ;;  %v317_v9 = vrot.slane %v1597_v5, %v257_v4  ;;  %v258_v10 = vrot.slane %v240_v6, %v257_v4  ;;  %s237_s17 = scalar_lea.vmem %s2561_s0, %s1612_s13  ;;  %s1994_s6 = smov 112  }
  0x3b   : > { %v2132_v11 = vld [vmem:[%s237_s17] sm:$0xff]  ;;  %v2134_v12 = vld [vmem:[%s237_s17 + $0x8] sm:$0xff]  ;;  %p2577_p9 = scmp.ne.s32.totalorder %s2570_s28, 0 }
  0x3c   : > { %318 = vrot.lane.b32.xlu1 %v313_v7, %s1986_s9  ;;  %259 = vrot.lane.b32.xlu0 %v254_v8, %s1987_s10  ;;  %v1744_v14 = vpack.i.bf16 %v2134_v12, %v2132_v11  ;;  %v1764_v46 = vpack.i.bf16 %v1985_v2, %v2134_v12 }
  0x40   : > { %320 = vrot.lane.b32.xlu1 %v317_v9, %s1986_s9  ;;  %261 = vrot.lane.b32.xlu0 %v258_v10, %s1987_s10 }
  0x44   : > { %351 = vrot.lane.b32.xlu1 %v258_v10, %s1988_s12  ;;  %349 = vrot.lane.b32.xlu0 %v254_v8, %s1988_s12 }
  0x48   : > { %386 = vrot.lane.b32.xlu1 %v317_v9, %s1989_s14  ;;  %384 = vrot.lane.b32.xlu0 %v313_v7, %s1989_s14 }
  0x4c   : > { %415 = vrot.lane.b32.xlu1 %v258_v10, %s1990_s23  ;;  %413 = vrot.lane.b32.xlu0 %v254_v8, %s1990_s23 }
  0x50   : > { %463 = vrot.lane.b32.xlu1 %v317_v9, %s1992_s25  ;;  %461 = vrot.lane.b32.xlu0 %v313_v7, %s1992_s25 }
  0x54   : > { %1745 = vrot.lane.b32.xlu1 %v1744_v14, %s1993_s26 }
  0x58   : > { %293 = vrot.lane.b32.xlu1 %v1985_v2, %s1993_s26 }
  0xae   : > { %v319_v15 = vpop.permute.xlu1 %318  ;;  %v260_v16 = vpop.permute.xlu0 %259 }
  0xaf   : > { %v2143_v17 = vmul.f32 0.0, %v260_v16  ;;  %v2145_v18 = vmul.f32 0.0, %v319_v15 }
  0xb1   : > { %274 = vrot.lane.b32.xlu0 %v2143_v17, %s1992_s25 }
  0xb2   : > { %v2149_v19 = vpop.permute.xlu1 %320  ;;  %v2151_v20 = vpop.permute.xlu0 %261 }
  0xb3   : > { %v2155_v21 = vsel %vm263_vm0, %v260_v16, %v2151_v20  ;;  %v270_v22 = vmul.f32 %v2151_v20, %v2134_v12  ;;  %v2161_v23 = vsel %vm322_vm1, %v319_v15, %v2149_v19  ;;  %v329_v28 = vmul.f32 %v2149_v19, %v2134_v12 }
  0xb4   : > { %v269_v24 = vmul.f32 %v2155_v21, %v2132_v11  ;;  %v328_v31 = vmul.f32 %v2161_v23, %v2132_v11 }
  0xb5   : > { %333 = vrot.lane.b32.xlu0 %v2145_v18, %s1990_s23 }
  0xb6   : > { %v2167_v25 = vpop.permute.xlu1 %351  ;;  %v350_v26 = vpop.permute.xlu0 %349  ;;  %v1749_v27 = vpack.i.bf16 %v270_v22, %v269_v24  ;;  %v1754_v37 = vpack.i.bf16 %v329_v28, %v328_v31 }
  0xb7   : > { %v2173_v29 = vsel %vm353_vm2, %v350_v26, %v2167_v25  ;;  %v2175_v30 = vmul.f32 0.0, %v350_v26  ;;  %v360_v32 = vmul.f32 %v2167_v25, %v2134_v12 }
  0xb8   : > { %v359_v33 = vmul.f32 %v2173_v29, %v2132_v11 }
  0xb9   : > { %1750 = vrot.lane.b32.xlu0 %v1749_v27, %s1992_s25  ;;  %364 = vrot.lane.b32.xlu1 %v2175_v30, %s1989_s14 }
  0xba   : > { %v387_v34 = vpop.permute.xlu1 %386  ;;  %v2186_v35 = vpop.permute.xlu0 %384  ;;  %v1759_v36 = vpack.i.bf16 %v360_v32, %v359_v33 }
  0xbb   : > { %v2190_v38 = vsel %vm370_vm3, %v2186_v35, %v387_v34  ;;  %v2196_v41 = vmul.f32 0.0, %v387_v34  ;;  %v392_v42 = vmul.f32 %v2186_v35, %v2132_v11 }
  0xbc   : > { %v393_v44 = vmul.f32 %v2190_v38, %v2134_v12 }
  0xbd   : > { %1755 = vrot.lane.b32.xlu0 %v1754_v37, %s1990_s23  ;;  %1760 = vrot.lane.b32.xlu1 %v1759_v36, %s1989_s14 }
  0xbe   : > { %v416_v39 = vpop.permute.xlu1 %415  ;;  %v2194_v40 = vpop.permute.xlu0 %413  ;;  %v1769_v48 = vpack.i.bf16 %v2196_v41, %v393_v44 }
  0xbf   : > { %v421_v43 = vmul.f32 %v2194_v40, %v2132_v11  ;;  %v2206_v45 = vsel %vm339_vm4, %v2194_v40, %v416_v39  ;;  %v2212_v47 = vmul.f32 0.0, %v416_v39 }
  0xc0   : > { %v422_v50 = vmul.f32 %v2206_v45, %v2134_v12 }
  0xc1   : > { %398 = vrot.lane.b32.xlu1 %v392_v42, %s1988_s12  ;;  %427 = vrot.lane.b32.xlu0 %v421_v43, %s1986_s9 }
  0xc2   : > { %v464_v49 = vpop.permute.xlu1 %463  ;;  %v2217_v51 = vpop.permute.xlu0 %461  ;;  %v1774_v53 = vpack.i.bf16 %v2212_v47, %v422_v50 }
  0xc3   : > { %v2223_v52 = vsel %vm280_vm5, %v2217_v51, %v464_v49  ;;  %v2226_v54 = vmul.f32 0.0, %v464_v49  ;;  %v469_v57 = vmul.f32 %v2217_v51, %v2132_v11 }
  0xc4   : > { %v470_v55 = vmul.f32 %v2223_v52, %v2134_v12 }
  0xc5   : > { %1765 = vrot.lane.b32.xlu1 %v1764_v46, %s1994_s6  ;;  %1770 = vrot.lane.b32.xlu0 %v1769_v48, %s1988_s12 }
  0xc6   : > { %v1746_v58 = vpop.permute.xlu1 %1745 }
  0xc7   : > { %v1748_v62 = vunpack.i.h.bf16 %v1746_v58  ;;  %v1747_v63 = vunpack.i.l.bf16 %v1746_v58 }
  0xc9   : > { %445 = vrot.lane.b32.xlu1 %v2132_v11, %s1994_s6  ;;  %1775 = vrot.lane.b32.xlu0 %v1774_v53, %s1986_s9  ;;  %v301_v7 = vsel %vm299_vm6, %v1747_v63, %v1748_v62 }
  0xca   : > { %v294_v60 = vpop.permute.xlu1 %293 }
  0xcb   : > { %v300_v5 = vsel %vm299_vm6, %v294_v60, %v1747_v63 }
  0xcd   : > { %479 = vrot.lane.b32.xlu1 %v2226_v54, %s1987_s10  ;;  %477 = vrot.lane.b32.xlu0 %v470_v55, %s1987_s10 }
  0xd1   : > { %509 = vperm.xlu1 %1779, %v506_v56   ;;  %475 = vrot.lane.b32.xlu0 %v469_v57, %s1987_s10 }
  0xd5   : > { %618 = vrot.lane.b32.xlu1 %v1985_v2, %s1993_s26  ;;  %600 = vrot.lane.b32.xlu0 %v2143_v17, %s1992_s25 }
  0xd9   : > { %660 = vrot.lane.b32.xlu1 %v2175_v30, %s1989_s14  ;;  %639 = vrot.lane.b32.xlu0 %v2145_v18, %s1990_s23 }
 0x123   : > { %v275_v59 = vpop.permute.xlu0 %274 }
 0x127   : > { %v334_v61 = vpop.permute.xlu0 %333 }
 0x12b   : > { %v365_v0 = vpop.permute.xlu1 %364  ;;  %v1751_v1 = vpop.permute.xlu0 %1750 }
 0x12c   : > { %v1753_v3 = vunpack.i.h.bf16 %v1751_v1  ;;  %v1752_v4 = vunpack.i.l.bf16 %v1751_v1 }
 0x12e   : > { %v282_v6 = vsel %vm280_vm5, %v1752_v4, %v1753_v3  ;;  %v281_v8 = vsel %vm280_vm5, %v275_v59, %v1752_v4 }
 0x12f   : > { %v1761_v9 = vpop.permute.xlu1 %1760  ;;  %v1756_v10 = vpop.permute.xlu0 %1755  ;;  %v1614_v13 = vpack.c.bf16 %v301_v7, %v282_v6  ;;  %v1616_v14 = vpack.c.bf16 %v300_v5, %v281_v8  ;;  %v487_v7 = vld [vmem:[#allocation4] sm:$0xff] }
 0x130   : > { %v1763_v15 = vunpack.i.h.bf16 %v1761_v9  ;;  %v1762_v16 = vunpack.i.l.bf16 %v1761_v9  ;;  %v1758_v22 = vunpack.i.h.bf16 %v1756_v10  ;;  %v1757_v24 = vunpack.i.l.bf16 %v1756_v10 }
 0x131   : > { %1615 = vmatprep.subr.bf16.mxu0 %v1614_v13 }
 0x132   : > { %1617 = vmatpush1.bf16.msra.mxu0 %v1616_v14  ;;  %v341_v26 = vsel %vm339_vm4, %v1757_v24, %v1758_v22  ;;  %v372_v27 = vsel %vm370_vm3, %v1762_v16, %v1763_v15  ;;  %v340_v28 = vsel %vm339_vm4, %v334_v61, %v1757_v24  ;;  %v371_v31 = vsel %vm370_vm3, %v365_v0, %v1762_v16 }
 0x133   : > { %v399_v32 = vpop.permute.xlu1 %398  ;;  %v428_v33 = vpop.permute.xlu0 %427  ;;  %v1618_v34 = vpack.c.bf16 %v372_v27, %v341_v26  ;;  %v1620_v36 = vpack.c.bf16 %v371_v31, %v340_v28 }
 0x135   : > { %1619 = vmatprep.subr.bf16.mxu0 %v1618_v34 }
 0x136   : > { %1621 = vmatpush1.bf16.msra.mxu0 %v1620_v36 }
 0x137   : > { %v1766_v37 = vpop.permute.xlu1 %1765  ;;  %v1771_v39 = vpop.permute.xlu0 %1770 }
 0x138   : > { %v1768_v42 = vunpack.i.h.bf16 %v1766_v37  ;;  %v1767_v43 = vunpack.i.l.bf16 %v1766_v37  ;;  %v1773_v44 = vunpack.i.h.bf16 %v1771_v39  ;;  %v1772_v46 = vunpack.i.l.bf16 %v1771_v39 }
 0x13a   : > { %v405_v48 = vsel %vm353_vm2, %v1772_v46, %v1773_v44  ;;  %v404_v49 = vsel %vm353_vm2, %v399_v32, %v1772_v46  ;;  %v453_v60 = vsel %vm451_vm7, %v1767_v43, %v1768_v42 }
 0x13b   : > { %v446_v50 = vpop.permute.xlu1 %445  ;;  %v1776_v53 = vpop.permute.xlu0 %1775  ;;  %v1622_v55 = vpack.c.bf16 %v405_v48, %v2134_v12  ;;  %v1624_v56 = vpack.c.bf16 %v404_v49, %v2132_v11 }
 0x13c   : > { %v452_v57 = vsel %vm451_vm7, %v446_v50, %v1767_v43  ;;  %v1778_v58 = vunpack.i.h.bf16 %v1776_v53  ;;  %v1777_v59 = vunpack.i.l.bf16 %v1776_v53  ;;  %v1599_v50 = vld [vmem:[%s2564_s3 + $0x8] sm:$0xff] }
 0x13d   : > { %1623 = vmatprep.subr.bf16.mxu0 %v1622_v55 }
 0x13e   : > { %1625 = vmatpush1.bf16.msra.mxu0 %v1624_v56  ;;  %v434_v61 = vsel %vm322_vm1, %v1777_v59, %v1778_v58  ;;  %v433_v62 = vsel %vm322_vm1, %v428_v33, %v1777_v59 }
 0x13f   : > { %v480_v63 = vpop.permute.xlu1 %479  ;;  %v478_v0 = vpop.permute.xlu0 %477  ;;  %v1626_v1 = vpack.c.bf16 %v453_v60, %v434_v61  ;;  %v1628_v3 = vpack.c.bf16 %v452_v57, %v433_v62 }
 0x140   : > { %v482_v4 = vsel %vm263_vm0, %v478_v0, %v480_v63 }
 0x141   : > { %1627 = vmatprep.subr.bf16.mxu0 %v1626_v1 }
 0x142   : > { %1629 = vmatpush1.bf16.msra.mxu0 %v1628_v3 }
 0x143   : > { %v476_v5 = vpop.permute.xlu0 %475  ;;  %532 = vmatprep.subr.mxu0 %v482_v4 }
 0x144   : > { %v481_v6 = vsel %vm263_vm0, %v476_v5, %v478_v0 }
 0x146   : > { %533 = vmatpush1.msra.mxu0 %v481_v6 }
 0x147   : > { %1598 = vmatmul.mubr.msk.f32.vlgmr.msra.gmra.mrb[0].mxu0 %vm512_vm8, %v487_v7  ;;  %v601_v56 = vpop.permute.xlu0 %600 }
 0x148   : > { %1126 = vmatprep.mubr.f32.mxu0 %v1985_v2 }
 0x14b   : > { %v640_v58 = vpop.permute.xlu0 %639 }
 0x150   : > { %v510_v8 = vpop.permute.xlu1 %509 }
 0x154   : > { %v619_v55 = vpop.permute.xlu1 %618 }
 0x158   : > { %v661_v57 = vpop.permute.xlu1 %660 }
 0x21a   : > { %v582_v9 = vpop.f32.mrb[0].mxu0 }
 0x21b   : > { %v583_v10 = vadd.f32 %v582_v9, %v510_v8  ;;  %v584_v13 = vpop.f32.mrb[1].mxu0 }
 0x21c   : > { %v585_v14 = vadd.f32 %v584_v13, %v510_v8 }
 0x21d   : > { %v2270_v15 = vmax.f32 %v583_v10, 0.0 }
 0x21e   : > { %v2272_v16 = vmax.f32 %v585_v14, 0.0 }
 0x21f   : > { %v595_v22 = vmul.f32 %v2270_v15, %v2155_v21  ;;  %v655_v27 = vmul.f32 %v2270_v15, %v2173_v29  ;;  %v634_v32 = vmul.f32 %v2270_v15, %v2161_v23  ;;  %v679_v37 = vmul.f32 %v2270_v15, %v2186_v35 }
 0x220   : > { %v1780_v24 = vpack.i.bf16 %v2272_v16, %v2270_v15  ;;  %v596_v26 = vmul.f32 %v2272_v16, %v2151_v20  ;;  %v656_v28 = vmul.f32 %v2272_v16, %v2167_v25  ;;  %v635_v33 = vmul.f32 %v2272_v16, %v2149_v19 }
 0x221   : > { %v700_v39 = vmul.f32 %v2270_v15, %v2194_v40  ;;  %v680_v42 = vmul.f32 %v2272_v16, %v2190_v38  ;;  %v1800_v43 = vpack.i.bf16 %v1985_v2, %v2272_v16  ;;  %v701_v46 = vmul.f32 %v2272_v16, %v2206_v45 }
 0x222   : > { %1781 = vrot.lane.b32.xlu1 %v1780_v24, %s1993_s26  ;;  %v1785_v31 = vpack.i.bf16 %v596_v26, %v595_v22  ;;  %v1795_v34 = vpack.i.bf16 %v656_v28, %v655_v27  ;;  %v1790_v36 = vpack.i.bf16 %v635_v33, %v634_v32  ;;  %v740_v49 = vmul.f32 %v2272_v16, %v2223_v52 }
 0x223   : > { %v1805_v44 = vpack.i.bf16 %v2196_v41, %v680_v42  ;;  %v1810_v48 = vpack.i.bf16 %v2212_v47, %v701_v46  ;;  %v739_v53 = vmul.f32 %v2270_v15, %v2217_v51 }
 0x224   : > { %1786 = vrot.lane.b32.xlu0 %v1785_v31, %s1992_s25 }
 0x226   : > { %1796 = vrot.lane.b32.xlu1 %v1795_v34, %s1989_s14 }
 0x228   : > { %1791 = vrot.lane.b32.xlu0 %v1790_v36, %s1990_s23 }
 0x22a   : > { %685 = vrot.lane.b32.xlu1 %v679_v37, %s1988_s12 }
 0x22c   : > { %706 = vrot.lane.b32.xlu0 %v700_v39, %s1986_s9 }
 0x22e   : > { %1801 = vrot.lane.b32.xlu1 %v1800_v43, %s1994_s6 }
 0x230   : > { %1806 = vrot.lane.b32.xlu0 %v1805_v44, %s1988_s12 }
 0x232   : > { %724 = vrot.lane.b32.xlu1 %v2270_v15, %s1994_s6 }
 0x234   : > { %1811 = vrot.lane.b32.xlu0 %v1810_v48, %s1986_s9 }
 0x236   : > { %749 = vrot.lane.b32.xlu1 %v2226_v54, %s1987_s10 }
 0x238   : > { %747 = vrot.lane.b32.xlu0 %v740_v49, %s1987_s10 }
 0x23a   : > { %781 = vperm.xlu1 %1779, %v1599_v50  }
 0x23c   : > { %745 = vrot.lane.b32.xlu0 %v739_v53, %s1987_s10 }
 0x23e   : > { %893 = vrot.lane.b32.xlu1 %v1985_v2, %s1993_s26 }
 0x240   : > { %875 = vrot.lane.b32.xlu0 %v2143_v17, %s1992_s25 }
 0x242   : > { %935 = vrot.lane.b32.xlu1 %v2175_v30, %s1989_s14 }
 0x244   : > { %914 = vrot.lane.b32.xlu0 %v2145_v18, %s1990_s23 }
 0x294   : > { %v1782_v59 = vpop.permute.xlu1 %1781 }
 0x295   : > { %v1784_v60 = vunpack.i.h.bf16 %v1782_v59  ;;  %v1783_v61 = vunpack.i.l.bf16 %v1782_v59 }
 0x296   : > { %v1787_v62 = vpop.permute.xlu0 %1786 }
 0x297   : > { %v1789_v63 = vunpack.i.h.bf16 %v1787_v62  ;;  %v1788_v0 = vunpack.i.l.bf16 %v1787_v62  ;;  %v625_v3 = vsel %vm299_vm6, %v1783_v61, %v1784_v60  ;;  %v624_v4 = vsel %vm299_vm6, %v619_v55, %v1783_v61 }
 0x298   : > { %v1797_v1 = vpop.permute.xlu1 %1796 }
 0x299   : > { %v1799_v5 = vunpack.i.h.bf16 %v1797_v1  ;;  %v1798_v6 = vunpack.i.l.bf16 %v1797_v1  ;;  %v607_v7 = vsel %vm280_vm5, %v1788_v0, %v1789_v63  ;;  %v606_v8 = vsel %vm280_vm5, %v601_v56, %v1788_v0 }
 0x29a   : > { %v1792_v9 = vpop.permute.xlu0 %1791  ;;  %v1630_v10 = vpack.c.bf16 %v625_v3, %v607_v7  ;;  %v1632_v13 = vpack.c.bf16 %v624_v4, %v606_v8  ;;  %v758_v4 = vld [vmem:[#allocation4 + $0x8] sm:$0xff] }
 0x29b   : > { %v1794_v14 = vunpack.i.h.bf16 %v1792_v9  ;;  %v1793_v22 = vunpack.i.l.bf16 %v1792_v9  ;;  %v667_v27 = vsel %vm370_vm3, %v1798_v6, %v1799_v5  ;;  %v666_v31 = vsel %vm370_vm3, %v661_v57, %v1798_v6 }
 0x29c   : > { %v686_v24 = vpop.permute.xlu1 %685  ;;  %1631 = vmatprep.subr.bf16.mxu1 %v1630_v10 }
 0x29d   : > { %1633 = vmatpush1.bf16.msra.mxu1 %v1632_v13  ;;  %v646_v26 = vsel %vm339_vm4, %v1793_v22, %v1794_v14  ;;  %v645_v28 = vsel %vm339_vm4, %v640_v58, %v1793_v22 }
 0x29e   : > { %v707_v32 = vpop.permute.xlu0 %706  ;;  %v1634_v33 = vpack.c.bf16 %v667_v27, %v646_v26  ;;  %v1636_v34 = vpack.c.bf16 %v666_v31, %v645_v28 }
 0x2a0   : > { %v1802_v36 = vpop.permute.xlu1 %1801  ;;  %1635 = vmatprep.subr.bf16.mxu1 %v1634_v33 }
 0x2a1   : > { %1637 = vmatpush1.bf16.msra.mxu1 %v1636_v34  ;;  %v1804_v43 = vunpack.i.h.bf16 %v1802_v36  ;;  %v1803_v44 = vunpack.i.l.bf16 %v1802_v36 }
 0x2a2   : > { %v1807_v37 = vpop.permute.xlu0 %1806 }
 0x2a3   : > { %v1809_v39 = vunpack.i.h.bf16 %v1807_v37  ;;  %v1808_v42 = vunpack.i.l.bf16 %v1807_v37  ;;  %v731_v60 = vsel %vm451_vm7, %v1803_v44, %v1804_v43 }
 0x2a4   : > { %v725_v49 = vpop.permute.xlu1 %724 }
 0x2a5   : > { %v692_v46 = vsel %vm353_vm2, %v1808_v42, %v1809_v39  ;;  %v691_v48 = vsel %vm353_vm2, %v686_v24, %v1808_v42  ;;  %v730_v58 = vsel %vm451_vm7, %v725_v49, %v1803_v44  ;;  %v1601_v49 = vld [vmem:[%s2564_s3 + $0x10] sm:$0xff] }
 0x2a6   : > { %v1812_v50 = vpop.permute.xlu0 %1811  ;;  %v1638_v53 = vpack.c.bf16 %v692_v46, %v2272_v16  ;;  %v1640_v55 = vpack.c.bf16 %v691_v48, %v2270_v15 }
 0x2a7   : > { %v1814_v56 = vunpack.i.h.bf16 %v1812_v50  ;;  %v1813_v57 = vunpack.i.l.bf16 %v1812_v50 }
 0x2a8   : > { %1639 = vmatprep.subr.bf16.mxu1 %v1638_v53  ;;  %v750_v1 = vpop.permute.xlu1 %749 }
 0x2a9   : > { %1641 = vmatpush1.bf16.msra.mxu1 %v1640_v55  ;;  %v713_v59 = vsel %vm322_vm1, %v1813_v57, %v1814_v56  ;;  %v712_v61 = vsel %vm322_vm1, %v707_v32, %v1813_v57 }
 0x2aa   : > { %v748_v62 = vpop.permute.xlu0 %747  ;;  %v1642_v63 = vpack.c.bf16 %v731_v60, %v713_v59  ;;  %v1644_v0 = vpack.c.bf16 %v730_v58, %v712_v61 }
 0x2ab   : > { %v752_v15 = vsel %vm263_vm0, %v748_v62, %v750_v1 }
 0x2ac   : > { %1643 = vmatprep.subr.bf16.mxu1 %v1642_v63 }
 0x2ad   : > { %1645 = vmatpush1.bf16.msra.mxu1 %v1644_v0 }
 0x2ae   : > { %v746_v16 = vpop.permute.xlu0 %745  ;;  %803 = vmatprep.subr.mxu1 %v752_v15 }
 0x2af   : > { %v751_v3 = vsel %vm263_vm0, %v746_v16, %v748_v62 }
 0x2b1   : > { %804 = vmatpush1.msra.mxu1 %v751_v3 }
 0x2b2   : > { %1600 = vmatmul.mubr.msk.f32.vlgmr.msra.gmra.mrb[0].mxu1 %vm512_vm8, %v758_v4  ;;  %v876_v55 = vpop.permute.xlu0 %875 }
 0x2b3   : > { %1397 = vmatprep.mubr.f32.mxu1 %v1985_v2 }
 0x2b6   : > { %v915_v57 = vpop.permute.xlu0 %914 }
 0x2b9   : > { %v782_v5 = vpop.permute.xlu1 %781 }
 0x2bd   : > { %v894_v53 = vpop.permute.xlu1 %893 }
 0x2c1   : > { %v936_v56 = vpop.permute.xlu1 %935 }
 0x385   : > { %v853_v6 = vpop.f32.mrb[0].mxu1 }
 0x386   : > { %v854_v7 = vadd.f32 %v853_v6, %v782_v5  ;;  %v855_v8 = vpop.f32.mrb[1].mxu1 }
 0x387   : > { %v856_v9 = vadd.f32 %v855_v8, %v782_v5 }
 0x388   : > { %v860_v10 = vadd.f32 %v854_v7, %v2132_v11 }
 0x389   : > { %v861_v13 = vadd.f32 %v856_v9, %v2134_v12 }
 0x38a   : > { %v2352_v14 = vmax.f32 %v860_v10, 0.0 }
 0x38b   : > { %v2354_v22 = vmax.f32 %v861_v13, 0.0 }
 0x38c   : > { %v870_v24 = vmul.f32 %v2352_v14, %v2155_v21  ;;  %v930_v28 = vmul.f32 %v2352_v14, %v2173_v29  ;;  %v909_v31 = vmul.f32 %v2352_v14, %v2161_v23  ;;  %v954_v36 = vmul.f32 %v2352_v14, %v2186_v35 }
 0x38d   : > { %v1815_v26 = vpack.i.bf16 %v2354_v22, %v2352_v14  ;;  %v871_v27 = vmul.f32 %v2354_v22, %v2151_v20  ;;  %v931_v11 = vmul.f32 %v2354_v22, %v2167_v25  ;;  %v910_v32 = vmul.f32 %v2354_v22, %v2149_v19 }
 0x38e   : > { %v975_v37 = vmul.f32 %v2352_v14, %v2194_v40  ;;  %v955_v39 = vmul.f32 %v2354_v22, %v2190_v38  ;;  %v1835_v42 = vpack.i.bf16 %v1985_v2, %v2354_v22  ;;  %v976_v44 = vmul.f32 %v2354_v22, %v2206_v45 }
 0x38f   : > { %1816 = vrot.lane.b32.xlu1 %v1815_v26, %s1993_s26  ;;  %v1820_v12 = vpack.i.bf16 %v871_v27, %v870_v24  ;;  %v1830_v33 = vpack.i.bf16 %v931_v11, %v930_v28  ;;  %v1825_v34 = vpack.i.bf16 %v910_v32, %v909_v31  ;;  %v1015_v48 = vmul.f32 %v2354_v22, %v2223_v52 }
 0x390   : > { %v1840_v43 = vpack.i.bf16 %v2196_v41, %v955_v39  ;;  %v1845_v46 = vpack.i.bf16 %v2212_v47, %v976_v44  ;;  %v1014_v50 = vmul.f32 %v2352_v14, %v2217_v51 }
 0x391   : > { %1821 = vrot.lane.b32.xlu0 %v1820_v12, %s1992_s25 }
 0x393   : > { %1831 = vrot.lane.b32.xlu1 %v1830_v33, %s1989_s14 }
 0x395   : > { %1826 = vrot.lane.b32.xlu0 %v1825_v34, %s1990_s23 }
 0x397   : > { %960 = vrot.lane.b32.xlu1 %v954_v36, %s1988_s12 }
 0x399   : > { %981 = vrot.lane.b32.xlu0 %v975_v37, %s1986_s9 }
 0x39b   : > { %1836 = vrot.lane.b32.xlu1 %v1835_v42, %s1994_s6 }
 0x39d   : > { %1841 = vrot.lane.b32.xlu0 %v1840_v43, %s1988_s12 }
 0x39f   : > { %999 = vrot.lane.b32.xlu1 %v2352_v14, %s1994_s6 }
 0x3a1   : > { %1846 = vrot.lane.b32.xlu0 %v1845_v46, %s1986_s9 }
 0x3a3   : > { %1024 = vrot.lane.b32.xlu1 %v2226_v54, %s1987_s10 }
 0x3a5   : > { %1022 = vrot.lane.b32.xlu0 %v1015_v48, %s1987_s10 }
 0x3a7   : > { %1056 = vperm.xlu1 %1779, %v1601_v49  }
 0x3a9   : > { %1020 = vrot.lane.b32.xlu0 %v1014_v50, %s1987_s10 }
 0x3ab   : > { %1164 = vrot.lane.b32.xlu1 %v1985_v2, %s1993_s26 }
 0x3ad   : > { %1146 = vrot.lane.b32.xlu0 %v2143_v17, %s1992_s25 }
 0x3af   : > { %1206 = vrot.lane.b32.xlu1 %v2175_v30, %s1989_s14 }
 0x3b1   : > { %1185 = vrot.lane.b32.xlu0 %v2145_v18, %s1990_s23 }
 0x401   : > { %v1817_v58 = vpop.permute.xlu1 %1816 }
 0x402   : > { %v1819_v59 = vunpack.i.h.bf16 %v1817_v58  ;;  %v1818_v60 = vunpack.i.l.bf16 %v1817_v58 }
 0x403   : > { %v1822_v61 = vpop.permute.xlu0 %1821 }
 0x404   : > { %v1824_v62 = vunpack.i.h.bf16 %v1822_v61  ;;  %v1823_v63 = vunpack.i.l.bf16 %v1822_v61  ;;  %v899_v0 = vsel %vm299_vm6, %v894_v53, %v1818_v60  ;;  %v900_v17 = vsel %vm299_vm6, %v1818_v60, %v1819_v59 }
 0x405   : > { %v1832_v1 = vpop.permute.xlu1 %1831 }
 0x406   : > { %v881_v30 = vsel %vm280_vm5, %v876_v55, %v1823_v63  ;;  %v1834_v15 = vunpack.i.h.bf16 %v1832_v1  ;;  %v1833_v16 = vunpack.i.l.bf16 %v1832_v1  ;;  %v882_v18 = vsel %vm280_vm5, %v1823_v63, %v1824_v62  ;;  %v1033_v63 = vld [vmem:[#allocation4 + $0x10] sm:$0xff] }
 0x407   : > { %v1648_v3 = vpack.c.bf16 %v899_v0, %v881_v30  ;;  %v1827_v4 = vpop.permute.xlu0 %1826  ;;  %v1646_v5 = vpack.c.bf16 %v900_v17, %v882_v18 }
 0x408   : > { %v1829_v6 = vunpack.i.h.bf16 %v1827_v4  ;;  %v1828_v7 = vunpack.i.l.bf16 %v1827_v4  ;;  %v941_v9 = vsel %vm370_vm3, %v936_v56, %v1833_v16  ;;  %v942_v24 = vsel %vm370_vm3, %v1833_v16, %v1834_v15 }
 0x409   : > { %v961_v8 = vpop.permute.xlu1 %960  ;;  %1647 = vmatprep.subr.bf16.mxu0 %v1646_v5 }
 0x40a   : > { %v920_v10 = vsel %vm339_vm4, %v915_v57, %v1828_v7  ;;  %1649 = vmatpush1.bf16.msra.mxu0 %v1648_v3  ;;  %v921_v13 = vsel %vm339_vm4, %v1828_v7, %v1829_v6 }
 0x40b   : > { %v1652_v26 = vpack.c.bf16 %v941_v9, %v920_v10  ;;  %v982_v27 = vpop.permute.xlu0 %981  ;;  %v1650_v28 = vpack.c.bf16 %v942_v24, %v921_v13 }
 0x40d   : > { %v1837_v11 = vpop.permute.xlu1 %1836  ;;  %1651 = vmatprep.subr.bf16.mxu0 %v1650_v28 }
 0x40e   : > { %1653 = vmatpush1.bf16.msra.mxu0 %v1652_v26  ;;  %v1839_v33 = vunpack.i.h.bf16 %v1837_v11  ;;  %v1838_v34 = vunpack.i.l.bf16 %v1837_v11 }
 0x40f   : > { %v1842_v12 = vpop.permute.xlu0 %1841 }
 0x410   : > { %v1844_v31 = vunpack.i.h.bf16 %v1842_v12  ;;  %v1843_v32 = vunpack.i.l.bf16 %v1842_v12  ;;  %v1006_v55 = vsel %vm451_vm7, %v1838_v34, %v1839_v33 }
 0x411   : > { %v1000_v42 = vpop.permute.xlu1 %999 }
 0x412   : > { %v966_v36 = vsel %vm353_vm2, %v961_v8, %v1843_v32  ;;  %v967_v37 = vsel %vm353_vm2, %v1843_v32, %v1844_v31  ;;  %v1005_v49 = vsel %vm451_vm7, %v1000_v42, %v1838_v34 }
 0x413   : > { %v1656_v39 = vpack.c.bf16 %v966_v36, %v2352_v14  ;;  %v1847_v43 = vpop.permute.xlu0 %1846  ;;  %v1654_v44 = vpack.c.bf16 %v967_v37, %v2354_v22 }
 0x414   : > { %v1849_v46 = vunpack.i.h.bf16 %v1847_v43  ;;  %v1848_v48 = vunpack.i.l.bf16 %v1847_v43 }
 0x415   : > { %1655 = vmatprep.subr.bf16.mxu0 %v1654_v44  ;;  %v1025_v59 = vpop.permute.xlu1 %1024 }
 0x416   : > { %v987_v50 = vsel %vm322_vm1, %v982_v27, %v1848_v48  ;;  %1657 = vmatpush1.bf16.msra.mxu0 %v1656_v39  ;;  %v988_v53 = vsel %vm322_vm1, %v1848_v48, %v1849_v46 }
 0x417   : > { %v1660_v56 = vpack.c.bf16 %v1005_v49, %v987_v50  ;;  %v1023_v57 = vpop.permute.xlu0 %1022  ;;  %v1658_v58 = vpack.c.bf16 %v1006_v55, %v988_v53 }
 0x418   : > { %v1027_v60 = vsel %vm263_vm0, %v1023_v57, %v1025_v59 }
 0x419   : > { %1659 = vmatprep.subr.bf16.mxu0 %v1658_v58 }
 0x41a   : > { %1661 = vmatpush1.bf16.msra.mxu0 %v1660_v56 }
 0x41b   : > { %v1021_v61 = vpop.permute.xlu0 %1020  ;;  %1078 = vmatprep.subr.mxu0 %v1027_v60 }
 0x41c   : > { %v1026_v62 = vsel %vm263_vm0, %v1021_v61, %v1023_v57 }
 0x41e   : > { %1079 = vmatpush1.msra.mxu0 %v1026_v62 }
 0x41f   : > { %1602 = vmatmul.mubr.msk.f32.vlgmr.msra.gmra.mrb[2].mxu0 %vm512_vm8, %v1033_v63 }
 0x420   : > { %1491 = vmatprep.mubr.f32.mxu0 %v1985_v2 }
 0x426   : > { %v1057_v0 = vpop.permute.xlu1 %1056 }
 0x4f2   : > { %v1128_v1 = vpop.f32.mrb[2].mxu0 }
 0x4f3   : > { %v1129_v17 = vadd.f32 %v1128_v1, %v1057_v0  ;;  %v1130_v30 = vpop.f32.mrb[3].mxu0 }
 0x4f4   : > { %v1131_v15 = vadd.f32 %v1130_v30, %v1057_v0 }
 0x4f5   : > { %v2432_v16 = vmax.f32 %v1129_v17, 0.0 }
 0x4f6   : > { %v2434_v18 = vmax.f32 %v1131_v15, 0.0 }
 0x4f7   : > { %v1141_v3 = vmul.f32 %v2432_v16, %v2155_v21  ;;  %v1201_v6 = vmul.f32 %v2432_v16, %v2173_v29  ;;  %v1180_v9 = vmul.f32 %v2432_v16, %v2161_v23  ;;  %v1246_v29 = vmul.f32 %v2432_v16, %v2194_v40 }
 0x4f8   : > { %v1850_v4 = vpack.i.bf16 %v2434_v18, %v2432_v16  ;;  %v1142_v5 = vmul.f32 %v2434_v18, %v2151_v20  ;;  %v1202_v7 = vmul.f32 %v2434_v18, %v2167_v25  ;;  %v1181_v21 = vmul.f32 %v2434_v18, %v2149_v19 }
 0x4f9   : > { %v1225_v25 = vmul.f32 %v2432_v16, %v2186_v35  ;;  %v1226_v23 = vmul.f32 %v2434_v18, %v2190_v38  ;;  %v1870_v19 = vpack.i.bf16 %v1985_v2, %v2434_v18  ;;  %v1247_v35 = vmul.f32 %v2434_v18, %v2206_v45  ;;  %v1603_v38 = vld [vmem:[%s2564_s3 + $0x18] sm:$0xff]  ;;  %v1165_v45 = vpop.permute.xlu1 %1164 }
 0x4fa   : > { %1851 = vrot.lane.b32.xlu1 %v1850_v4, %s1993_s26  ;;  %v1855_v8 = vpack.i.bf16 %v1142_v5, %v1141_v3  ;;  %v1865_v10 = vpack.i.bf16 %v1202_v7, %v1201_v6  ;;  %v1860_v20 = vpack.i.bf16 %v1181_v21, %v1180_v9  ;;  %v1286_v2 = vmul.f32 %v2434_v18, %v2223_v52  ;;  %s1613_s26 = sshll.u32 %s2047_s22, 8  ;;  %s1995_s22 = smov [#allocation7]  }
 0x4fb   : > { %v1875_v13 = vpack.i.bf16 %v2196_v41, %v1226_v23  ;;  %v1880_v40 = vpack.i.bf16 %v2212_v47, %v1247_v35  ;;  %v1285_v41 = vmul.f32 %v2432_v16, %v2217_v51  ;;  %v1147_v47 = vpop.permute.xlu0 %1146  ;;  %s2519_s11 = scalar_lea.hbm %s2566_s5, %s1613_s26 }
 0x4fc   : > { %1856 = vrot.lane.b32.xlu0 %v1855_v8, %s1992_s25 }
 0x4fd   : > { %v1207_v24 = vpop.permute.xlu1 %1206 }
 0x4fe   : > { %1866 = vrot.lane.b32.xlu1 %v1865_v10, %s1989_s14  ;;  %s1918_s14 = sshll.u32 %s1995_s22, 4  ;;  %s1919_s14 = int_to_ptr.vmem [resolvable:$false] %s1918_s14 }
 0x4ff   : > { %v1186_v26 = vpop.permute.xlu0 %1185  ;;  %s1920_s16 = scalar_lea.vmem %s1919_s14, 512 }
 0x500   : > { %1861 = vrot.lane.b32.xlu0 %v1860_v20, %s1990_s23  ;;  %s230_s23 = sand.u32 1, %s1972_s19  }
 0x501   : > { %s1594_s25 = sshll.u32 %s230_s23, 4  ;;  %s1503_s13 = scalar_lea.sflag [#allocation6], %s230_s23 }
 0x502   : > { %1231 = vrot.lane.b32.xlu1 %v1225_v25, %s1988_s12 }
 0x504   : > { %1252 = vrot.lane.b32.xlu0 %v1246_v29, %s1986_s9 }
 0x506   : > { %1871 = vrot.lane.b32.xlu1 %v1870_v19, %s1994_s6  ;;  %v1304_v19 = vld [vmem:[#allocation4 + $0x18] sm:$0xff] }
 0x508   : > { %1876 = vrot.lane.b32.xlu0 %v1875_v13, %s1988_s12  ;;  %v1605_v13 = vld [vmem:[%s2564_s3 + $0x20] sm:$0xff] }
 0x50a   : > { %1270 = vrot.lane.b32.xlu1 %v2432_v16, %s1994_s6  ;;  %s232_s6 = scalar_lea.vmem [#allocation7], %s1594_s25 }
 0x50b   : > { %s1517_s30 = sshll.u32 %s232_s6, 4  ;;  %s2521_s30 = int_to_ptr.vmem [resolvable:$true] %s1517_s30 }
 0x50c   : > { %1881 = vrot.lane.b32.xlu0 %v1880_v40, %s1986_s9  ;;  %s1914_s15 = scalar_lea.vmem %s2521_s30, 256  ;;  %p1921_p2 = scmp.lt.s32.totalorder %s2521_s30, %s1919_s14 }
 0x50d   : > { %p1915_p6 = scmp.ne.s32.totalorder %s2521_s30, %s1914_s15  ;;  %p1922_p3 = scmp.lt.s32.totalorder %s1920_s16, %s1914_s15 }
 0x50e   : > { %1295 = vrot.lane.b32.xlu1 %v2226_v54, %s1987_s10 }
 0x50f   : > { %p1916_p10 = pnand %p1915_p6, %p2577_p9  ;;  %p1923_p4 = por %p1922_p3, %p1921_p2 }
 0x510   : > { %1293 = vrot.lane.b32.xlu0 %v1286_v2, %s1987_s10 }
 0x511   : > { %p1917_p12 = pneg %p1916_p10 }
 0x512   : > { %1327 = vperm.xlu1 %1779, %v1603_v38  }
 0x513   : > { %p1924_p7 = pnand %p1923_p4, %p1917_p12 }
 0x514   : > { %1291 = vrot.lane.b32.xlu0 %v1285_v41, %s1987_s10 }
 0x518   : > { %1421 = vperm.xlu0 %1885, %v1605_v13  }
 0x56c   : > { %v1852_v54 = vpop.permute.xlu1 %1851 }
 0x56d   : > { %v1854_v27 = vunpack.i.h.bf16 %v1852_v54  ;;  %v1853_v28 = vunpack.i.l.bf16 %v1852_v54 }
 0x56e   : > { %v1857_v52 = vpop.permute.xlu0 %1856 }
 0x56f   : > { %v1859_v11 = vunpack.i.h.bf16 %v1857_v52  ;;  %v1858_v12 = vunpack.i.l.bf16 %v1857_v52  ;;  %v1170_v31 = vsel %vm299_vm6, %v1165_v45, %v1853_v28  ;;  %v1171_v33 = vsel %vm299_vm6, %v1853_v28, %v1854_v27  ;;  %v1412_v28 = vld [vmem:[%s2563_s2] sm:$0xff] }
 0x570   : > { %v1867_v32 = vpop.permute.xlu1 %1866 }
 0x571   : > { %v1152_v34 = vsel %vm280_vm5, %v1147_v47, %v1858_v12  ;;  %v1869_v51 = vunpack.i.h.bf16 %v1867_v32  ;;  %v1868_v36 = vunpack.i.l.bf16 %v1867_v32  ;;  %v1153_v37 = vsel %vm280_vm5, %v1858_v12, %v1859_v11 }
 0x572   : > { %v1664_v39 = vpack.c.bf16 %v1170_v31, %v1152_v34  ;;  %v1862_v42 = vpop.permute.xlu0 %1861  ;;  %v1662_v43 = vpack.c.bf16 %v1171_v33, %v1153_v37 }
 0x573   : > { %v1864_v44 = vunpack.i.h.bf16 %v1862_v42  ;;  %v1863_v46 = vunpack.i.l.bf16 %v1862_v42  ;;  %v1212_v49 = vsel %vm370_vm3, %v1207_v24, %v1868_v36  ;;  %v1213_v55 = vsel %vm370_vm3, %v1868_v36, %v1869_v51 }
 0x574   : > { %v1232_v48 = vpop.permute.xlu1 %1231  ;;  %1663 = vmatprep.subr.bf16.mxu1 %v1662_v43 }
 0x575   : > { %v1191_v50 = vsel %vm339_vm4, %v1186_v26, %v1863_v46  ;;  %1665 = vmatpush1.bf16.msra.mxu1 %v1664_v39  ;;  %v1192_v53 = vsel %vm339_vm4, %v1863_v46, %v1864_v44 }
 0x576   : > { %v1668_v56 = vpack.c.bf16 %v1212_v49, %v1191_v50  ;;  %v1253_v57 = vpop.permute.xlu0 %1252  ;;  %v1666_v58 = vpack.c.bf16 %v1213_v55, %v1192_v53 }
 0x578   : > { %v1872_v59 = vpop.permute.xlu1 %1871  ;;  %1667 = vmatprep.subr.bf16.mxu1 %v1666_v58 }
 0x579   : > { %1669 = vmatpush1.bf16.msra.mxu1 %v1668_v56  ;;  %v1874_v63 = vunpack.i.h.bf16 %v1872_v59  ;;  %v1873_v0 = vunpack.i.l.bf16 %v1872_v59 }
 0x57a   : > { %v1877_v60 = vpop.permute.xlu0 %1876 }
 0x57b   : > { %v1879_v61 = vunpack.i.h.bf16 %v1877_v60  ;;  %v1878_v62 = vunpack.i.l.bf16 %v1877_v60  ;;  %v1277_v21 = vsel %vm451_vm7, %v1873_v0, %v1874_v63 }
 0x57c   : > { %v1271_v15 = vpop.permute.xlu1 %1270 }
 0x57d   : > { %v1237_v1 = vsel %vm353_vm2, %v1232_v48, %v1878_v62  ;;  %v1238_v17 = vsel %vm353_vm2, %v1878_v62, %v1879_v61  ;;  %v1276_v7 = vsel %vm451_vm7, %v1271_v15, %v1873_v0 }
 0x57e   : > { %v1672_v30 = vpack.c.bf16 %v1237_v1, %v2432_v16  ;;  %v1882_v3 = vpop.permute.xlu0 %1881  ;;  %v1670_v4 = vpack.c.bf16 %v1238_v17, %v2434_v18 }
 0x57f   : > { %v1884_v5 = vunpack.i.h.bf16 %v1882_v3  ;;  %v1883_v6 = vunpack.i.l.bf16 %v1882_v3 }
 0x580   : > { %1671 = vmatprep.subr.bf16.mxu1 %v1670_v4  ;;  %v1296_v16 = vpop.permute.xlu1 %1295 }
 0x581   : > { %v1258_v8 = vsel %vm322_vm1, %v1253_v57, %v1883_v6  ;;  %1673 = vmatpush1.bf16.msra.mxu1 %v1672_v30  ;;  %v1259_v9 = vsel %vm322_vm1, %v1883_v6, %v1884_v5 }
 0x582   : > { %v1676_v10 = vpack.c.bf16 %v1276_v7, %v1258_v8  ;;  %v1294_v20 = vpop.permute.xlu0 %1293  ;;  %v1674_v25 = vpack.c.bf16 %v1277_v21, %v1259_v9 }
 0x583   : > { %v1298_v18 = vsel %vm263_vm0, %v1294_v20, %v1296_v16 }
 0x584   : > { %1675 = vmatprep.subr.bf16.mxu1 %v1674_v25 }
 0x585   : > { %1677 = vmatpush1.bf16.msra.mxu1 %v1676_v10 }
 0x586   : > { %v1292_v29 = vpop.permute.xlu0 %1291  ;;  %1349 = vmatprep.subr.mxu1 %v1298_v18 }
 0x587   : > { %v1297_v23 = vsel %vm263_vm0, %v1292_v29, %v1294_v20 }
 0x589   : > { %1350 = vmatpush1.msra.mxu1 %v1297_v23 }
 0x58a   : > { %1604 = vmatmul.mubr.msk.f32.vlgmr.msra.gmra.mrb[2].mxu1 %vm512_vm8, %v1304_v19 }
 0x591   : > { %v1328_v35 = vpop.permute.xlu1 %1327 }
 0x597   : > { %v1422_v52 = vpop.permute.xlu0 %1421 }
 0x65d   : > { %v1399_v40 = vpop.f32.mrb[2].mxu1 }
 0x65e   : > { %v1400_v2 = vadd.f32 %v1399_v40, %v1328_v35  ;;  %v1401_v38 = vpop.f32.mrb[3].mxu1 }
 0x65f   : > { %v1402_v41 = vadd.f32 %v1401_v38, %v1328_v35 }
 0x660   : > { %v1404_v45 = vadd.f32 %v1400_v2, %v2352_v14 }
 0x661   : > { %v1405_v47 = vadd.f32 %v1402_v41, %v2354_v22 }
 0x662   : > { %v1406_v24 = vmax.f32 %v1404_v45, 0.0 }
 0x663   : > { %v1407_v26 = vmax.f32 %v1405_v47, 0.0 }
 0x664   : > { %v1680_v27 = vpack.c.bf16 %v2352_v14, %v1406_v24 }
 0x665   : > { %v1678_v54 = vpack.c.bf16 %v2354_v22, %v1407_v26 }
 0x667   : > { %1679 = vmatprep.subr.bf16.mxu0 %v1678_v54 }
 0x668   : > { %1681 = vmatpush1.bf16.msra.mxu0 %v1680_v27 }
 0x66b   : > { %1606 = vmatmul.mubr.msk.f32.vlgmr.msra.gmra.mrb[4].mxu0 %vm299_vm6, %v1412_v28 }
 0x73e   : > { %v1493_v11 = vpop.f32.mrb[4].mxu0 }
 0x73f   : > { %v1494_v12 = vadd.f32 %v1493_v11, %v1422_v52  ;;  %v1495_v31 = vpop.f32.mrb[5].mxu0 }
 0x740   : > { %v1496_v22 = vadd.f32 %v1495_v31, %v1422_v52 }
 0x741   : > { %v1498_v14 = vmax.f32 %v1494_v12, 0.0 }
 0x742   : > { %v1499_v32 = vmax.f32 %v1496_v22, 0.0 }
 0x743   : > { %1500 = vst [vmem:[%s232_s6] sm:$0xff] %v1498_v14 }
 0x744   : > { %1501 = vst [vmem:[%s232_s6 + $0x8] sm:$0xff] %v1499_v32 }
 0x745   : > { %1927 = shalt.err (!%p1924_p7)
}
 0x746   : > { %s1928_s9 = scalar_lea.hbm %s2519_s11, 256  ;;  %s1932_s17 = scalar_lea.hbm %s2566_s5, 512 }
 0x747   : > { %p1929_p8 = scmp.ne.s32.totalorder %s2519_s11, %s1928_s9  ;;  %p1933_p1 = scmp.lt.u32.totalorder %s2519_s11, %s2566_s5 }
 0x748   : > { %p1934_p0 = scmp.lt.u32.totalorder %s1932_s17, %s1928_s9  ;;  %p1936_p6 = scmp.lt.u32.totalorder %s1928_s9, %s2519_s11 }
 0x749   : > { %p1930_p11 = pnand %p1929_p8, %p2577_p9 }
 0x74a   : > { %p1935_p5 = por %p1934_p0, %p1933_p1 }
 0x74b   : > { %p1931_p13 = pneg %p1930_p11 }
 0x74c   : > { %p1937_p10 = por %p1936_p6, %p1935_p5 }
 0x74e   : > { %p1938_p12 = pnand %p1937_p10, %p1931_p13 }
 0x750   : > { %1941 = shalt.err (!%p1938_p12)
}
 0x751   : > { %1686 = dma.vmem_to_hbm [thread:$0]  (%p2577_p9), %s2521_s30, 256, %s2519_s11, %s1503_s13  }
 0x752 PF: > { %p1698_p2 = scmp.ge.s32.totalorder %s1980_s21, 2  ;;  %s1529_s26 = sand.u32 1, %s1968_s18  }
 0x753   : > { %p2578_p3 = scmp.ne.s32.totalorder %s2571_s29, 0  ;;  %s1530_s6 = scalar_lea.sflag [#allocation6], %s1529_s26 }
 0x755   : > { %p1693_p4 = pnand %p1698_p2, %p2578_p3 }
 0x757   : > { %1963 = dma.done.wait (!%p1693_p4), %s1530_s6, 256  }
 0x758   : > { %1965 = vsyncadd (!%p1693_p4), %s1530_s6, 4294967040  ;;  %p16_p7 = scmp.ge.s32.totalorder %s2051_s24, 4   ;;  %s2579_s18 = smov %s1972_s19 }
 0x759   : > { %s2580_s19 = smov %s1976_s20  ;;  %s2581_s20 = smov %s2062_s27 }
 0x75a   : > { %s2582_s21 = smov %s2051_s24  ;;  %18 = sbr.rel (!%p16_p7) target bundleno = 4 (0x4), region = 88 }
 0x761   :  { %1535 = vsyncpa [#allocation5], 1 }
 0x762   :  { %1537 = vsyncpa [#allocation5 + $0x1], 1 }
 0x763   :  { %1538 = vsyncpa [#allocation6], 1 }
 0x764   :  { %1540 = vsyncpa [#allocation6 + $0x1], 1 }

</bundles_post_ra>
